<compile_context>
chip_gen: v7x
topology: tpu7x:2x2x1
jax: 0.10.0
libtpu: 0.0.40
codegen_flags: <defaults>
</compile_context>

<pallas_src>
import jax
import jax.numpy as jnp
from jax.experimental import pallas as pl
from jax.experimental.pallas import tpu as pltpu

# Constants from the PyTorch source
N_SAMPLES = 2 ** 14
N_FRAMES = N_SAMPLES // 256      # 64
N_CLUSTERS = 512
MODEL_DIM = 128
LEAK = 0.2

_PAD_OFF = 16                    # sublane-aligned time halo; >= max conv pad (9)
_COL_W = 256                     # lane-padded width of the EmbedAmp im2col scratch


# --------------------------------- kernel ---------------------------------

def _cond_context_kernel(
    emb_ref, norms_ref,
    aw1_ref, ab1_ref, aw2_ref, ab2_ref, aw3_ref, ab3_ref,
    rw0a_ref, rw0b_ref, rb0_ref, rw1_ref, rb1_ref, rw2_ref, rb2_ref,
    d1w_ref, d1b_ref, c1w_ref, c1b_ref,
    d2w_ref, d2b_ref, c2w_ref, c2b_ref,
    d3w_ref, d3b_ref, c3w_ref, c3b_ref,
    out_ref,
    pad_scr, col_scr,
):
    Bt, T, D = emb_ref.shape
    R = Bt * T
    P = _PAD_OFF

    def lrelu(v):
        return jnp.where(v >= 0, v, LEAK * v)

    def mm(a, w):
        # bf16 MXU operands (no-op cast if already bf16), f32 accumulation.
        return jnp.dot(a.astype(jnp.bfloat16), w,
                       preferred_element_type=jnp.float32)

    # Zero the time halo of the padded scratch and the lane-pad columns of the
    # im2col scratch every step (cheap; keeps megacore-parallel steps safe from
    # stale VMEM).  Only these regions are ever read without being rewritten.
    pad_scr[:, :P, :] = jnp.zeros((Bt, P, D), jnp.float32)
    tail = pad_scr.shape[1] - (P + T)
    pad_scr[:, P + T:, :] = jnp.zeros((Bt, tail, D), jnp.float32)
    col_scr[:, :, 7 * 16:128] = jnp.zeros((Bt, T, 128 - 7 * 16), jnp.bfloat16)
    col_scr[:, :, 7 * 32:] = jnp.zeros((Bt, T, _COL_W - 7 * 32), jnp.bfloat16)

    # ---- EmbedAmp conv1: Conv1d(1->16, k7, p3) + LReLU, on the VPU.
    # norms replicated across 16 lanes once; 7 shifted FMAs with lane-constant
    # per-tap weights (no 1-lane MXU matmul, no masked im2col stores).
    pad_scr[:, P:P + T, :16] = jnp.broadcast_to(norms_ref[...], (Bt, T, 16))
    h = jnp.broadcast_to(ab1_ref[...].reshape(1, 1, 16), (Bt, T, 16))
    for k in range(7):
        off = P + k - 3
        h = h + pad_scr[:, off:off + T, :16] * aw1_ref[k, :]
    h = lrelu(h)                                                     # (Bt,T,16)

    # ---- EmbedAmp conv2: Conv1d(16->32, k7, p3) + LReLU, lane-padded im2col.
    pad_scr[:, P:P + T, :16] = h
    for k in range(7):
        off = P + k - 3
        col_scr[:, :, k * 16:(k + 1) * 16] = (
            pad_scr[:, off:off + T, :16].astype(jnp.bfloat16))
    h = lrelu(mm(col_scr[:, :, :128].reshape(R, 128), aw2_ref[...])
              + ab2_ref[...])                                        # (R, 32)

    # ---- EmbedAmp conv3: Conv1d(32->128, k7, p3), lane-padded im2col.
    pad_scr[:, P:P + T, :32] = h.reshape(Bt, T, 32)
    for k in range(7):
        off = P + k - 3
        col_scr[:, :, k * 32:(k + 1) * 32] = (
            pad_scr[:, off:off + T, :32].astype(jnp.bfloat16))
    amp = mm(col_scr[...].reshape(R, _COL_W), aw3_ref[...]) + ab3_ref[...]  # (R,128)

    # ---- EmbedConditioning: cat([emb, amp], -1) -> LinearOutputStack.
    #      The concat is folded into the first Linear by splitting its weight.
    emb = emb_ref[...].reshape(R, D)
    r = lrelu(mm(emb, rw0a_ref[...]) + mm(amp, rw0b_ref[...]) + rb0_ref[...])
    r = lrelu(mm(r, rw1_ref[...]) + rb1_ref[...])
    x = mm(r, rw2_ref[...]) + rb2_ref[...]                           # (R, 128) f32

    # ---- context: 3 x DilatedBlock (dilations 1, 3, 9).
    # Activation stays resident in pad_scr's center; each dilated conv is three
    # direct per-tap matmuls on shifted views (no im2col scratch traffic).
    pad_scr[:, P:P + T, :] = x.reshape(Bt, T, D)
    for dw_ref, db_ref, cw_ref, cb_ref, dil, last in (
        (d1w_ref, d1b_ref, c1w_ref, c1b_ref, 1, False),
        (d2w_ref, d2b_ref, c2w_ref, c2b_ref, 3, False),
        (d3w_ref, d3b_ref, c3w_ref, c3b_ref, 9, True),
    ):
        left = pad_scr[:, P - dil:P - dil + T, :].reshape(R, D)
        right = pad_scr[:, P + dil:P + dil + T, :].reshape(R, D)
        y = (mm(left, dw_ref[0]) + mm(x, dw_ref[1]) + mm(right, dw_ref[2])
             + db_ref[...])                                          # dilated k3
        y = mm(y, cw_ref[...]) + cb_ref[...]                         # 1x1 conv
        x = lrelu(y + x)                                             # residual
        if last:
            out_ref[...] = x.reshape(Bt, T, D)
        else:
            pad_scr[:, P:P + T, :] = x.reshape(Bt, T, D)


# --------------------------------- wrapper ---------------------------------

_PARAM_ORDER = [
    "aw1", "ab1", "aw2", "ab2", "aw3", "ab3",
    "rw0a", "rw0b", "rb0", "rw1", "rb1", "rw2", "rb2",
    "d1w", "d1b", "c1w", "c1b",
    "d2w", "d2b", "c2w", "c2b",
    "d3w", "d3b", "c3w", "c3b",
]


def _full_spec(shape):
    ndim = len(shape)
    return pl.BlockSpec(shape, lambda b: (0,) * ndim)


def _prep_weights(p):
    """Reshape/lane-pad conv weights and cast MXU weights to bf16."""
    bf = lambda a: jnp.asarray(a, jnp.bfloat16)
    row = lambda a: jnp.asarray(a, jnp.float32).reshape(1, -1)
    aw2 = jnp.pad(p["aw2"].reshape(7 * 16, 32), ((0, 128 - 7 * 16), (0, 0)))
    aw3 = jnp.pad(p["aw3"].reshape(7 * 32, MODEL_DIM),
                  ((0, _COL_W - 7 * 32), (0, 0)))
    w = {
        "aw1": jnp.asarray(p["aw1"], jnp.float32),        # (7,16)  VPU path: f32
        "ab1": row(p["ab1"]),
        "aw2": bf(aw2), "ab2": row(p["ab2"]),              # (128, 32)
        "aw3": bf(aw3), "ab3": row(p["ab3"]),              # (256, 128)
        "rw0a": bf(p["rw0a"]), "rw0b": bf(p["rw0b"]), "rb0": row(p["rb0"]),
        "rw1": bf(p["rw1"]), "rb1": row(p["rb1"]),
        "rw2": bf(p["rw2"]), "rb2": row(p["rb2"]),
    }
    for i in (1, 2, 3):
        w[f"d{i}w"] = bf(p[f"d{i}w"])                       # (3,128,128) per-tap
        w[f"d{i}b"] = row(p[f"d{i}b"])
        w[f"c{i}w"] = bf(p[f"c{i}w"])
        w[f"c{i}b"] = row(p[f"c{i}b"])
    return w


def conditioning_context_forward(indices, norms, params, block_b=None):
    """indices: (B, N_FRAMES) int32; norms: (B, N_FRAMES) f32.

    Returns (B, MODEL_DIM, N_FRAMES) f32, matching the PyTorch module output.
    """
    B = indices.shape[0]
    T, D = N_FRAMES, MODEL_DIM

    # Glue: embedding lookup is a data-dependent gather, done in plain JAX.
    emb = jnp.take(params["emb_table"], indices, axis=0).astype(jnp.float32)   # (B,T,D)
    norms3 = norms.astype(jnp.float32)[..., None]                              # (B,T,1)

    # Batch tile: up to 8 batch elements (512 matmul rows / step), but keep at
    # least 2 grid steps when B > 1 so v7x's dual TensorCores both get work.
    if block_b is not None:
        Bt = int(block_b)
    else:
        Bt = min(8, B)
        if B > 1 and -(-B // Bt) < 2:
            Bt = (B + 1) // 2
    Bp = -(-B // Bt) * Bt
    if Bp != B:
        emb = jnp.pad(emb, ((0, Bp - B), (0, 0), (0, 0)))
        norms3 = jnp.pad(norms3, ((0, Bp - B), (0, 0), (0, 0)))

    w = _prep_weights(params)
    ordered = [w[k] for k in _PARAM_ORDER]

    in_specs = [
        pl.BlockSpec((Bt, T, D), lambda b: (b, 0, 0)),
        pl.BlockSpec((Bt, T, 1), lambda b: (b, 0, 0)),
    ] + [_full_spec(p.shape) for p in ordered]

    out = pl.pallas_call(
        _cond_context_kernel,
        grid=(Bp // Bt,),
        in_specs=in_specs,
        out_specs=pl.BlockSpec((Bt, T, D), lambda b: (b, 0, 0)),
        out_shape=jax.ShapeDtypeStruct((Bp, T, D), jnp.float32),
        scratch_shapes=[
            pltpu.VMEM((Bt, T + 2 * _PAD_OFF, D), jnp.float32),   # time-pad scratch
            pltpu.VMEM((Bt, T, _COL_W), jnp.bfloat16),            # EmbedAmp im2col
        ],
        compiler_params=pltpu.CompilerParams(dimension_semantics=("parallel",)),
    )(emb, norms3, *ordered)

    return jnp.transpose(out[:B], (0, 2, 1))      # (B, D, T) == PyTorch NCW output


# --------------------------- deterministic params --------------------------

def init_params(key):
    ks = iter(jax.random.split(key, 40))

    def w(shape, fan_in):
        return jax.random.normal(next(ks), shape, jnp.float32) / jnp.sqrt(fan_in)

    def b(shape):
        return jax.random.normal(next(ks), shape, jnp.float32) * 0.01

    p = {}
    p["emb_table"] = jax.random.normal(next(ks), (N_CLUSTERS, MODEL_DIM), jnp.float32)
    # EmbedAmp convs, stored tap-major (K, Cin, Cout)  [torch weight is (Cout, Cin, K)]
    p["aw1"] = w((7, 16), 7.0);              p["ab1"] = b((16,))
    p["aw2"] = w((7, 16, 32), 7.0 * 16);     p["ab2"] = b((32,))
    p["aw3"] = w((7, 32, 128), 7.0 * 32);    p["ab3"] = b((128,))
    # reduce (LinearOutputStack): Linear(256->128) split into emb/amp halves
    p["rw0a"] = w((128, 128), 256.0)
    p["rw0b"] = w((128, 128), 256.0)
    p["rb0"] = b((128,))
    p["rw1"] = w((128, 128), 128.0);         p["rb1"] = b((128,))
    p["rw2"] = w((128, 128), 128.0);         p["rb2"] = b((128,))
    # DilatedBlocks: dilated 3-tap conv (K, Cin, Cout) + 1x1 conv (Cin, Cout)
    for i in (1, 2, 3):
        p[f"d{i}w"] = w((3, 128, 128), 3.0 * 128)
        p[f"d{i}b"] = b((128,))
        p[f"c{i}w"] = w((128, 128), 128.0)
        p[f"c{i}b"] = b((128,))
    return p


# ------------------------------ pure-JAX reference -------------------------

def _conv1d_same_ref(x, w_taps, bias, dilation):
    # x: (B, Cin, T), w_taps: (K, Cin, Cout)
    Bx, Cin, T = x.shape
    K = w_taps.shape[0]
    pad = (K - 1) // 2 * dilation
    xp = jnp.pad(x, ((0, 0), (0, 0), (pad, pad)))
    out = jnp.zeros((Bx, w_taps.shape[2], T), jnp.float32)
    for k in range(K):
        xs = jax.lax.dynamic_slice_in_dim(xp, k * dilation, T, axis=2)
        out = out + jnp.einsum("bct,co->bot", xs, w_taps[k], precision="highest")
    return out + bias[None, :, None]


def reference_forward(indices, norms, p):
    lrelu = lambda v: jnp.where(v >= 0, v, LEAK * v)
    emb = p["emb_table"][indices]                              # (B,T,128)
    xn = norms[:, None, :]                                     # (B,1,T)
    h = lrelu(_conv1d_same_ref(xn, p["aw1"][:, None, :], p["ab1"], 1))
    h = lrelu(_conv1d_same_ref(h, p["aw2"], p["ab2"], 1))
    amp = jnp.transpose(_conv1d_same_ref(h, p["aw3"], p["ab3"], 1), (0, 2, 1))  # (B,T,128)
    mm = lambda a, ww: jnp.einsum("btc,cd->btd", a, ww, precision="highest")
    r = lrelu(mm(emb, p["rw0a"]) + mm(amp, p["rw0b"]) + p["rb0"])
    r = lrelu(mm(r, p["rw1"]) + p["rb1"])
    x = mm(r, p["rw2"]) + p["rb2"]
    x = jnp.transpose(x, (0, 2, 1))                            # (B,128,T)
    for i, dil in ((1, 1), (2, 3), (3, 9)):
        y = _conv1d_same_ref(x, p[f"d{i}w"], p[f"d{i}b"], dil)
        y = (jnp.einsum("bct,co->bot", y, p[f"c{i}w"], precision="highest")
             + p[f"c{i}b"][None, :, None])
        x = lrelu(y + x)
    return x


# ----------------------------------- main -----------------------------------

if __name__ == "__main__":
    key = jax.random.PRNGKey(0)
    kp, ki, kn = jax.random.split(key, 3)
    params = init_params(kp)

    B = 4
    indices = jax.random.randint(ki, (B, N_FRAMES), 0, N_CLUSTERS, dtype=jnp.int32)
    norms = jax.random.uniform(kn, (B, N_FRAMES), dtype=jnp.float32)

    fwd = jax.jit(lambda i, n: conditioning_context_forward(i, n, params))
    out = jax.block_until_ready(fwd(indices, norms))
    assert out.shape == (B, MODEL_DIM, N_FRAMES), out.shape
    assert bool(jnp.all(jnp.isfinite(out)))

    ref = jax.block_until_ready(reference_forward(indices, norms, params))
    scale = float(jnp.max(jnp.abs(ref)))
    max_err = float(jnp.max(jnp.abs(out - ref)))
    # bf16 MXU operands with f32 accumulation vs an f32 "highest" reference:
    # scale-aware tolerance (structural bugs would be orders of magnitude larger).
    assert max_err <= 3e-2 * (1.0 + scale), f"max abs err {max_err} (scale {scale})"

    print("KERNEL_OK")
</pallas_src>

<mosaic_0001>
module attributes {stable_mosaic.version = 11 : i64} {
  func.func @_cond_context_kernel(%arg0: i32, %arg1: memref<2x64x128xf32, #tpu.memory_space<vmem>>, %arg2: memref<2x64x1xf32, #tpu.memory_space<vmem>>, %arg3: memref<7x16xf32, #tpu.memory_space<vmem>>, %arg4: memref<1x16xf32, #tpu.memory_space<vmem>>, %arg5: memref<128x32xbf16, #tpu.memory_space<vmem>>, %arg6: memref<1x32xf32, #tpu.memory_space<vmem>>, %arg7: memref<256x128xbf16, #tpu.memory_space<vmem>>, %arg8: memref<1x128xf32, #tpu.memory_space<vmem>>, %arg9: memref<128x128xbf16, #tpu.memory_space<vmem>>, %arg10: memref<128x128xbf16, #tpu.memory_space<vmem>>, %arg11: memref<1x128xf32, #tpu.memory_space<vmem>>, %arg12: memref<128x128xbf16, #tpu.memory_space<vmem>>, %arg13: memref<1x128xf32, #tpu.memory_space<vmem>>, %arg14: memref<128x128xbf16, #tpu.memory_space<vmem>>, %arg15: memref<1x128xf32, #tpu.memory_space<vmem>>, %arg16: memref<3x128x128xbf16, #tpu.memory_space<vmem>>, %arg17: memref<1x128xf32, #tpu.memory_space<vmem>>, %arg18: memref<128x128xbf16, #tpu.memory_space<vmem>>, %arg19: memref<1x128xf32, #tpu.memory_space<vmem>>, %arg20: memref<3x128x128xbf16, #tpu.memory_space<vmem>>, %arg21: memref<1x128xf32, #tpu.memory_space<vmem>>, %arg22: memref<128x128xbf16, #tpu.memory_space<vmem>>, %arg23: memref<1x128xf32, #tpu.memory_space<vmem>>, %arg24: memref<3x128x128xbf16, #tpu.memory_space<vmem>>, %arg25: memref<1x128xf32, #tpu.memory_space<vmem>>, %arg26: memref<128x128xbf16, #tpu.memory_space<vmem>>, %arg27: memref<1x128xf32, #tpu.memory_space<vmem>>, %arg28: memref<2x64x128xf32, #tpu.memory_space<vmem>>, %arg29: memref<2x96x128xf32, #tpu.memory_space<vmem>>, %arg30: memref<2x64x256xbf16, #tpu.memory_space<vmem>>) attributes {dimension_semantics = [#tpu.dimension_semantics<parallel>], iteration_bounds = array<i64: 2>, scalar_prefetch = 0 : i64, scratch_operands = 2 : i64, tpu.core_type = #tpu.core_type<tc>, window_params = [{transform_indices = @transform_0, window_bounds = array<i64: 2, 64, 128>}, {transform_indices = @transform_1, window_bounds = array<i64: 2, 64, 1>}, {pipeline_mode = #tpu.pipeline_mode<synchronous>, transform_indices = @transform_2, window_bounds = array<i64: 7, 16>}, {pipeline_mode = #tpu.pipeline_mode<synchronous>, transform_indices = @transform_3, window_bounds = array<i64: 1, 16>}, {pipeline_mode = #tpu.pipeline_mode<synchronous>, transform_indices = @transform_4, window_bounds = array<i64: 128, 32>}, {pipeline_mode = #tpu.pipeline_mode<synchronous>, transform_indices = @transform_5, window_bounds = array<i64: 1, 32>}, {pipeline_mode = #tpu.pipeline_mode<synchronous>, transform_indices = @transform_6, window_bounds = array<i64: 256, 128>}, {pipeline_mode = #tpu.pipeline_mode<synchronous>, transform_indices = @transform_7, window_bounds = array<i64: 1, 128>}, {pipeline_mode = #tpu.pipeline_mode<synchronous>, transform_indices = @transform_8, window_bounds = array<i64: 128, 128>}, {pipeline_mode = #tpu.pipeline_mode<synchronous>, transform_indices = @transform_9, window_bounds = array<i64: 128, 128>}, {pipeline_mode = #tpu.pipeline_mode<synchronous>, transform_indices = @transform_10, window_bounds = array<i64: 1, 128>}, {pipeline_mode = #tpu.pipeline_mode<synchronous>, transform_indices = @transform_11, window_bounds = array<i64: 128, 128>}, {pipeline_mode = #tpu.pipeline_mode<synchronous>, transform_indices = @transform_12, window_bounds = array<i64: 1, 128>}, {pipeline_mode = #tpu.pipeline_mode<synchronous>, transform_indices = @transform_13, window_bounds = array<i64: 128, 128>}, {pipeline_mode = #tpu.pipeline_mode<synchronous>, transform_indices = @transform_14, window_bounds = array<i64: 1, 128>}, {pipeline_mode = #tpu.pipeline_mode<synchronous>, transform_indices = @transform_15, window_bounds = array<i64: 3, 128, 128>}, {pipeline_mode = #tpu.pipeline_mode<synchronous>, transform_indices = @transform_16, window_bounds = array<i64: 1, 128>}, {pipeline_mode = #tpu.pipeline_mode<synchronous>, transform_indices = @transform_17, window_bounds = array<i64: 128, 128>}, {pipeline_mode = #tpu.pipeline_mode<synchronous>, transform_indices = @transform_18, window_bounds = array<i64: 1, 128>}, {pipeline_mode = #tpu.pipeline_mode<synchronous>, transform_indices = @transform_19, window_bounds = array<i64: 3, 128, 128>}, {pipeline_mode = #tpu.pipeline_mode<synchronous>, transform_indices = @transform_20, window_bounds = array<i64: 1, 128>}, {pipeline_mode = #tpu.pipeline_mode<synchronous>, transform_indices = @transform_21, window_bounds = array<i64: 128, 128>}, {pipeline_mode = #tpu.pipeline_mode<synchronous>, transform_indices = @transform_22, window_bounds = array<i64: 1, 128>}, {pipeline_mode = #tpu.pipeline_mode<synchronous>, transform_indices = @transform_23, window_bounds = array<i64: 3, 128, 128>}, {pipeline_mode = #tpu.pipeline_mode<synchronous>, transform_indices = @transform_24, window_bounds = array<i64: 1, 128>}, {pipeline_mode = #tpu.pipeline_mode<synchronous>, transform_indices = @transform_25, window_bounds = array<i64: 128, 128>}, {pipeline_mode = #tpu.pipeline_mode<synchronous>, transform_indices = @transform_26, window_bounds = array<i64: 1, 128>}, {transform_indices = @transform_27, window_bounds = array<i64: 2, 64, 128>}]} {
    %cst = arith.constant 0.000000e+00 : f32
    %0 = vector.broadcast %cst : f32 to vector<2x16x128xf32>
    %c0 = arith.constant 0 : index
    %c0_0 = arith.constant 0 : index
    %c0_1 = arith.constant 0 : index
    %1 = vector.load %arg29[%c0, %c0_0, %c0_1] : memref<2x96x128xf32, #tpu.memory_space<vmem>>, vector<2x16x128xf32>
    tpu.vector_store %arg29[%c0, %c0_0, %c0_1], %0 {strides = array<i32>} : memref<2x96x128xf32, #tpu.memory_space<vmem>>, vector<2x16x128xf32>,
    %cst_2 = arith.constant 0.000000e+00 : f32
    %2 = vector.broadcast %cst_2 : f32 to vector<2x16x128xf32>
    %c0_3 = arith.constant 0 : index
    %c80 = arith.constant 80 : index
    %c0_4 = arith.constant 0 : index
    %3 = vector.load %arg29[%c0_3, %c80, %c0_4] : memref<2x96x128xf32, #tpu.memory_space<vmem>>, vector<2x16x128xf32>
    tpu.vector_store %arg29[%c0_3, %c80, %c0_4], %2 {strides = array<i32>} : memref<2x96x128xf32, #tpu.memory_space<vmem>>, vector<2x16x128xf32>,
    %cst_5 = arith.constant 0.000000e+00 : bf16
    %4 = vector.broadcast %cst_5 : bf16 to vector<2x64x16xbf16>
    %c0_6 = arith.constant 0 : index
    %c0_7 = arith.constant 0 : index
    %c112 = arith.constant 112 : index
    %5 = vector.load %arg30[%c0_6, %c0_7, %c112] : memref<2x64x256xbf16, #tpu.memory_space<vmem>>, vector<2x64x16xbf16>
    tpu.vector_store %arg30[%c0_6, %c0_7, %c112], %4 {strides = array<i32>} : memref<2x64x256xbf16, #tpu.memory_space<vmem>>, vector<2x64x16xbf16>,
    %cst_8 = arith.constant 0.000000e+00 : bf16
    %6 = vector.broadcast %cst_8 : bf16 to vector<2x64x32xbf16>
    %c0_9 = arith.constant 0 : index
    %c0_10 = arith.constant 0 : index
    %c224 = arith.constant 224 : index
    %7 = vector.load %arg30[%c0_9, %c0_10, %c224] : memref<2x64x256xbf16, #tpu.memory_space<vmem>>, vector<2x64x32xbf16>
    tpu.vector_store %arg30[%c0_9, %c0_10, %c224], %6 {strides = array<i32>} : memref<2x64x256xbf16, #tpu.memory_space<vmem>>, vector<2x64x32xbf16>,
    %c0_11 = arith.constant 0 : index
    %c0_12 = arith.constant 0 : index
    %c0_13 = arith.constant 0 : index
    %8 = vector.load %arg2[%c0_11, %c0_12, %c0_13] : memref<2x64x1xf32, #tpu.memory_space<vmem>>, vector<2x64x1xf32>
    %9 = vector.shape_cast %8 : vector<2x64x1xf32> to vector<2x64x1xf32>
    %10 = vector.broadcast %9 : vector<2x64x1xf32> to vector<2x64x16xf32>
    %c0_14 = arith.constant 0 : index
    %c16 = arith.constant 16 : index
    %c0_15 = arith.constant 0 : index
    %11 = vector.load %arg29[%c0_14, %c16, %c0_15] : memref<2x96x128xf32, #tpu.memory_space<vmem>>, vector<2x64x16xf32>
    tpu.vector_store %arg29[%c0_14, %c16, %c0_15], %10 {strides = array<i32>} : memref<2x96x128xf32, #tpu.memory_space<vmem>>, vector<2x64x16xf32>,
    %c0_16 = arith.constant 0 : index
    %c0_17 = arith.constant 0 : index
    %12 = vector.load %arg4[%c0_16, %c0_17] : memref<1x16xf32, #tpu.memory_space<vmem>>, vector<1x16xf32>
    %13 = vector.shape_cast %12 : vector<1x16xf32> to vector<1x1x16xf32>
    %14 = vector.shape_cast %13 : vector<1x1x16xf32> to vector<1x1x16xf32>
    %15 = vector.broadcast %14 : vector<1x1x16xf32> to vector<2x64x16xf32>
    %c0_18 = arith.constant 0 : index
    %c13 = arith.constant 13 : index
    %c0_19 = arith.constant 0 : index
    %16 = vector.load %arg29[%c0_18, %c13, %c0_19] : memref<2x96x128xf32, #tpu.memory_space<vmem>>, vector<2x64x16xf32>
    %c0_20 = arith.constant 0 : index
    %c0_21 = arith.constant 0 : index
    %17 = vector.load %arg3[%c0_20, %c0_21] : memref<7x16xf32, #tpu.memory_space<vmem>>, vector<1x16xf32>
    %18 = vector.shape_cast %17 : vector<1x16xf32> to vector<16xf32>
    %19 = vector.shape_cast %18 : vector<16xf32> to vector<1x1x16xf32>
    %20 = vector.broadcast %19 : vector<1x1x16xf32> to vector<2x64x16xf32>
    %21 = arith.mulf %16, %20 : vector<2x64x16xf32>
    %22 = arith.addf %15, %21 : vector<2x64x16xf32>
    %c0_22 = arith.constant 0 : index
    %c14 = arith.constant 14 : index
    %c0_23 = arith.constant 0 : index
    %23 = vector.load %arg29[%c0_22, %c14, %c0_23] : memref<2x96x128xf32, #tpu.memory_space<vmem>>, vector<2x64x16xf32>
    %c1 = arith.constant 1 : index
    %c0_24 = arith.constant 0 : index
    %24 = vector.load %arg3[%c1, %c0_24] : memref<7x16xf32, #tpu.memory_space<vmem>>, vector<1x16xf32>
    %25 = vector.shape_cast %24 : vector<1x16xf32> to vector<16xf32>
    %26 = vector.shape_cast %25 : vector<16xf32> to vector<1x1x16xf32>
    %27 = vector.broadcast %26 : vector<1x1x16xf32> to vector<2x64x16xf32>
    %28 = arith.mulf %23, %27 : vector<2x64x16xf32>
    %29 = arith.addf %22, %28 : vector<2x64x16xf32>
    %c0_25 = arith.constant 0 : index
    %c15 = arith.constant 15 : index
    %c0_26 = arith.constant 0 : index
    %30 = vector.load %arg29[%c0_25, %c15, %c0_26] : memref<2x96x128xf32, #tpu.memory_space<vmem>>, vector<2x64x16xf32>
    %c2 = arith.constant 2 : index
    %c0_27 = arith.constant 0 : index
    %31 = vector.load %arg3[%c2, %c0_27] : memref<7x16xf32, #tpu.memory_space<vmem>>, vector<1x16xf32>
    %32 = vector.shape_cast %31 : vector<1x16xf32> to vector<16xf32>
    %33 = vector.shape_cast %32 : vector<16xf32> to vector<1x1x16xf32>
    %34 = vector.broadcast %33 : vector<1x1x16xf32> to vector<2x64x16xf32>
    %35 = arith.mulf %30, %34 : vector<2x64x16xf32>
    %36 = arith.addf %29, %35 : vector<2x64x16xf32>
    %c0_28 = arith.constant 0 : index
    %c16_29 = arith.constant 16 : index
    %c0_30 = arith.constant 0 : index
    %37 = vector.load %arg29[%c0_28, %c16_29, %c0_30] : memref<2x96x128xf32, #tpu.memory_space<vmem>>, vector<2x64x16xf32>
    %c3 = arith.constant 3 : index
    %c0_31 = arith.constant 0 : index
    %38 = vector.load %arg3[%c3, %c0_31] : memref<7x16xf32, #tpu.memory_space<vmem>>, vector<1x16xf32>
    %39 = vector.shape_cast %38 : vector<1x16xf32> to vector<16xf32>
    %40 = vector.shape_cast %39 : vector<16xf32> to vector<1x1x16xf32>
    %41 = vector.broadcast %40 : vector<1x1x16xf32> to vector<2x64x16xf32>
    %42 = arith.mulf %37, %41 : vector<2x64x16xf32>
    %43 = arith.addf %36, %42 : vector<2x64x16xf32>
    %c0_32 = arith.constant 0 : index
    %c17 = arith.constant 17 : index
    %c0_33 = arith.constant 0 : index
    %44 = vector.load %arg29[%c0_32, %c17, %c0_33] : memref<2x96x128xf32, #tpu.memory_space<vmem>>, vector<2x64x16xf32>
    %c4 = arith.constant 4 : index
    %c0_34 = arith.constant 0 : index
    %45 = vector.load %arg3[%c4, %c0_34] : memref<7x16xf32, #tpu.memory_space<vmem>>, vector<1x16xf32>
    %46 = vector.shape_cast %45 : vector<1x16xf32> to vector<16xf32>
    %47 = vector.shape_cast %46 : vector<16xf32> to vector<1x1x16xf32>
    %48 = vector.broadcast %47 : vector<1x1x16xf32> to vector<2x64x16xf32>
    %49 = arith.mulf %44, %48 : vector<2x64x16xf32>
    %50 = arith.addf %43, %49 : vector<2x64x16xf32>
    %c0_35 = arith.constant 0 : index
    %c18 = arith.constant 18 : index
    %c0_36 = arith.constant 0 : index
    %51 = vector.load %arg29[%c0_35, %c18, %c0_36] : memref<2x96x128xf32, #tpu.memory_space<vmem>>, vector<2x64x16xf32>
    %c5 = arith.constant 5 : index
    %c0_37 = arith.constant 0 : index
    %52 = vector.load %arg3[%c5, %c0_37] : memref<7x16xf32, #tpu.memory_space<vmem>>, vector<1x16xf32>
    %53 = vector.shape_cast %52 : vector<1x16xf32> to vector<16xf32>
    %54 = vector.shape_cast %53 : vector<16xf32> to vector<1x1x16xf32>
    %55 = vector.broadcast %54 : vector<1x1x16xf32> to vector<2x64x16xf32>
    %56 = arith.mulf %51, %55 : vector<2x64x16xf32>
    %57 = arith.addf %50, %56 : vector<2x64x16xf32>
    %c0_38 = arith.constant 0 : index
    %c19 = arith.constant 19 : index
    %c0_39 = arith.constant 0 : index
    %58 = vector.load %arg29[%c0_38, %c19, %c0_39] : memref<2x96x128xf32, #tpu.memory_space<vmem>>, vector<2x64x16xf32>
    %c6 = arith.constant 6 : index
    %c0_40 = arith.constant 0 : index
    %59 = vector.load %arg3[%c6, %c0_40] : memref<7x16xf32, #tpu.memory_space<vmem>>, vector<1x16xf32>
    %60 = vector.shape_cast %59 : vector<1x16xf32> to vector<16xf32>
    %61 = vector.shape_cast %60 : vector<16xf32> to vector<1x1x16xf32>
    %62 = vector.broadcast %61 : vector<1x1x16xf32> to vector<2x64x16xf32>
    %63 = arith.mulf %58, %62 : vector<2x64x16xf32>
    %64 = arith.addf %57, %63 : vector<2x64x16xf32>
    %cst_41 = arith.constant 0.000000e+00 : f32
    %65 = vector.broadcast %cst_41 : f32 to vector<2x64x16xf32>
    %66 = arith.cmpf oge, %64, %65 : vector<2x64x16xf32>
    %cst_42 = arith.constant 2.000000e-01 : f32
    %67 = vector.broadcast %cst_42 : f32 to vector<2x64x16xf32>
    %68 = arith.mulf %67, %64 : vector<2x64x16xf32>
    %69 = arith.select %66, %64, %68 : vector<2x64x16xi1>, vector<2x64x16xf32>
    %c0_43 = arith.constant 0 : index
    %c16_44 = arith.constant 16 : index
    %c0_45 = arith.constant 0 : index
    %70 = vector.load %arg29[%c0_43, %c16_44, %c0_45] : memref<2x96x128xf32, #tpu.memory_space<vmem>>, vector<2x64x16xf32>
    tpu.vector_store %arg29[%c0_43, %c16_44, %c0_45], %69 {strides = array<i32>} : memref<2x96x128xf32, #tpu.memory_space<vmem>>, vector<2x64x16xf32>,
    %c0_46 = arith.constant 0 : index
    %c13_47 = arith.constant 13 : index
    %c0_48 = arith.constant 0 : index
    %71 = vector.load %arg29[%c0_46, %c13_47, %c0_48] : memref<2x96x128xf32, #tpu.memory_space<vmem>>, vector<2x64x16xf32>
    %72 = arith.truncf %71 : vector<2x64x16xf32> to vector<2x64x16xbf16>
    %c0_49 = arith.constant 0 : index
    %c0_50 = arith.constant 0 : index
    %c0_51 = arith.constant 0 : index
    %73 = vector.load %arg30[%c0_49, %c0_50, %c0_51] : memref<2x64x256xbf16, #tpu.memory_space<vmem>>, vector<2x64x16xbf16>
    tpu.vector_store %arg30[%c0_49, %c0_50, %c0_51], %72 {strides = array<i32>} : memref<2x64x256xbf16, #tpu.memory_space<vmem>>, vector<2x64x16xbf16>,
    %c0_52 = arith.constant 0 : index
    %c14_53 = arith.constant 14 : index
    %c0_54 = arith.constant 0 : index
    %74 = vector.load %arg29[%c0_52, %c14_53, %c0_54] : memref<2x96x128xf32, #tpu.memory_space<vmem>>, vector<2x64x16xf32>
    %75 = arith.truncf %74 : vector<2x64x16xf32> to vector<2x64x16xbf16>
    %c0_55 = arith.constant 0 : index
    %c0_56 = arith.constant 0 : index
    %c16_57 = arith.constant 16 : index
    %76 = vector.load %arg30[%c0_55, %c0_56, %c16_57] : memref<2x64x256xbf16, #tpu.memory_space<vmem>>, vector<2x64x16xbf16>
    tpu.vector_store %arg30[%c0_55, %c0_56, %c16_57], %75 {strides = array<i32>} : memref<2x64x256xbf16, #tpu.memory_space<vmem>>, vector<2x64x16xbf16>,
    %c0_58 = arith.constant 0 : index
    %c15_59 = arith.constant 15 : index
    %c0_60 = arith.constant 0 : index
    %77 = vector.load %arg29[%c0_58, %c15_59, %c0_60] : memref<2x96x128xf32, #tpu.memory_space<vmem>>, vector<2x64x16xf32>
    %78 = arith.truncf %77 : vector<2x64x16xf32> to vector<2x64x16xbf16>
    %c0_61 = arith.constant 0 : index
    %c0_62 = arith.constant 0 : index
    %c32 = arith.constant 32 : index
    %79 = vector.load %arg30[%c0_61, %c0_62, %c32] : memref<2x64x256xbf16, #tpu.memory_space<vmem>>, vector<2x64x16xbf16>
    tpu.vector_store %arg30[%c0_61, %c0_62, %c32], %78 {strides = array<i32>} : memref<2x64x256xbf16, #tpu.memory_space<vmem>>, vector<2x64x16xbf16>,
    %c0_63 = arith.constant 0 : index
    %c16_64 = arith.constant 16 : index
    %c0_65 = arith.constant 0 : index
    %80 = vector.load %arg29[%c0_63, %c16_64, %c0_65] : memref<2x96x128xf32, #tpu.memory_space<vmem>>, vector<2x64x16xf32>
    %81 = arith.truncf %80 : vector<2x64x16xf32> to vector<2x64x16xbf16>
    %c0_66 = arith.constant 0 : index
    %c0_67 = arith.constant 0 : index
    %c48 = arith.constant 48 : index
    %82 = vector.load %arg30[%c0_66, %c0_67, %c48] : memref<2x64x256xbf16, #tpu.memory_space<vmem>>, vector<2x64x16xbf16>
    tpu.vector_store %arg30[%c0_66, %c0_67, %c48], %81 {strides = array<i32>} : memref<2x64x256xbf16, #tpu.memory_space<vmem>>, vector<2x64x16xbf16>,
    %c0_68 = arith.constant 0 : index
    %c17_69 = arith.constant 17 : index
    %c0_70 = arith.constant 0 : index
    %83 = vector.load %arg29[%c0_68, %c17_69, %c0_70] : memref<2x96x128xf32, #tpu.memory_space<vmem>>, vector<2x64x16xf32>
    %84 = arith.truncf %83 : vector<2x64x16xf32> to vector<2x64x16xbf16>
    %c0_71 = arith.constant 0 : index
    %c0_72 = arith.constant 0 : index
    %c64 = arith.constant 64 : index
    %85 = vector.load %arg30[%c0_71, %c0_72, %c64] : memref<2x64x256xbf16, #tpu.memory_space<vmem>>, vector<2x64x16xbf16>
    tpu.vector_store %arg30[%c0_71, %c0_72, %c64], %84 {strides = array<i32>} : memref<2x64x256xbf16, #tpu.memory_space<vmem>>, vector<2x64x16xbf16>,
    %c0_73 = arith.constant 0 : index
    %c18_74 = arith.constant 18 : index
    %c0_75 = arith.constant 0 : index
    %86 = vector.load %arg29[%c0_73, %c18_74, %c0_75] : memref<2x96x128xf32, #tpu.memory_space<vmem>>, vector<2x64x16xf32>
    %87 = arith.truncf %86 : vector<2x64x16xf32> to vector<2x64x16xbf16>
    %c0_76 = arith.constant 0 : index
    %c0_77 = arith.constant 0 : index
    %c80_78 = arith.constant 80 : index
    %88 = vector.load %arg30[%c0_76, %c0_77, %c80_78] : memref<2x64x256xbf16, #tpu.memory_space<vmem>>, vector<2x64x16xbf16>
    tpu.vector_store %arg30[%c0_76, %c0_77, %c80_78], %87 {strides = array<i32>} : memref<2x64x256xbf16, #tpu.memory_space<vmem>>, vector<2x64x16xbf16>,
    %c0_79 = arith.constant 0 : index
    %c19_80 = arith.constant 19 : index
    %c0_81 = arith.constant 0 : index
    %89 = vector.load %arg29[%c0_79, %c19_80, %c0_81] : memref<2x96x128xf32, #tpu.memory_space<vmem>>, vector<2x64x16xf32>
    %90 = arith.truncf %89 : vector<2x64x16xf32> to vector<2x64x16xbf16>
    %c0_82 = arith.constant 0 : index
    %c0_83 = arith.constant 0 : index
    %c96 = arith.constant 96 : index
    %91 = vector.load %arg30[%c0_82, %c0_83, %c96] : memref<2x64x256xbf16, #tpu.memory_space<vmem>>, vector<2x64x16xbf16>
    tpu.vector_store %arg30[%c0_82, %c0_83, %c96], %90 {strides = array<i32>} : memref<2x64x256xbf16, #tpu.memory_space<vmem>>, vector<2x64x16xbf16>,
    %c0_84 = arith.constant 0 : index
    %c0_85 = arith.constant 0 : index
    %c0_86 = arith.constant 0 : index
    %92 = vector.load %arg30[%c0_84, %c0_85, %c0_86] : memref<2x64x256xbf16, #tpu.memory_space<vmem>>, vector<2x64x128xbf16>
    %93 = vector.shape_cast %92 : vector<2x64x128xbf16> to vector<128x128xbf16>
    %c0_87 = arith.constant 0 : index
    %c0_88 = arith.constant 0 : index
    %94 = vector.load %arg5[%c0_87, %c0_88] : memref<128x32xbf16, #tpu.memory_space<vmem>>, vector<128x32xbf16>
    %cst_89 = arith.constant dense<0.000000e+00> : vector<128x32xf32>
    %95 = tpu.matmul %93, %94, %cst_89 {dimension_numbers = #tpu.dot_dimension_numbers<[1], [0], [0], [1], [0, 0, 1, 1], [], []>} : vector<128x128xbf16>, vector<128x32xbf16>, vector<128x32xf32> -> vector<128x32xf32>
    %c0_90 = arith.constant 0 : index
    %c0_91 = arith.constant 0 : index
    %96 = vector.load %arg6[%c0_90, %c0_91] : memref<1x32xf32, #tpu.memory_space<vmem>>, vector<1x32xf32>
    %97 = vector.broadcast %96 : vector<1x32xf32> to vector<128x32xf32>
    %98 = arith.addf %95, %97 : vector<128x32xf32>
    %cst_92 = arith.constant 0.000000e+00 : f32
    %99 = vector.broadcast %cst_92 : f32 to vector<128x32xf32>
    %100 = arith.cmpf oge, %98, %99 : vector<128x32xf32>
    %cst_93 = arith.constant 2.000000e-01 : f32
    %101 = vector.broadcast %cst_93 : f32 to vector<128x32xf32>
    %102 = arith.mulf %101, %98 : vector<128x32xf32>
    %103 = arith.select %100, %98, %102 : vector<128x32xi1>, vector<128x32xf32>
    %104 = vector.shape_cast %103 : vector<128x32xf32> to vector<2x64x32xf32>
    %c0_94 = arith.constant 0 : index
    %c16_95 = arith.constant 16 : index
    %c0_96 = arith.constant 0 : index
    %105 = vector.load %arg29[%c0_94, %c16_95, %c0_96] : memref<2x96x128xf32, #tpu.memory_space<vmem>>, vector<2x64x32xf32>
    tpu.vector_store %arg29[%c0_94, %c16_95, %c0_96], %104 {strides = array<i32>} : memref<2x96x128xf32, #tpu.memory_space<vmem>>, vector<2x64x32xf32>,
    %c0_97 = arith.constant 0 : index
    %c13_98 = arith.constant 13 : index
    %c0_99 = arith.constant 0 : index
    %106 = vector.load %arg29[%c0_97, %c13_98, %c0_99] : memref<2x96x128xf32, #tpu.memory_space<vmem>>, vector<2x64x32xf32>
    %107 = arith.truncf %106 : vector<2x64x32xf32> to vector<2x64x32xbf16>
    %c0_100 = arith.constant 0 : index
    %c0_101 = arith.constant 0 : index
    %c0_102 = arith.constant 0 : index
    %108 = vector.load %arg30[%c0_100, %c0_101, %c0_102] : memref<2x64x256xbf16, #tpu.memory_space<vmem>>, vector<2x64x32xbf16>
    tpu.vector_store %arg30[%c0_100, %c0_101, %c0_102], %107 {strides = array<i32>} : memref<2x64x256xbf16, #tpu.memory_space<vmem>>, vector<2x64x32xbf16>,
    %c0_103 = arith.constant 0 : index
    %c14_104 = arith.constant 14 : index
    %c0_105 = arith.constant 0 : index
    %109 = vector.load %arg29[%c0_103, %c14_104, %c0_105] : memref<2x96x128xf32, #tpu.memory_space<vmem>>, vector<2x64x32xf32>
    %110 = arith.truncf %109 : vector<2x64x32xf32> to vector<2x64x32xbf16>
    %c0_106 = arith.constant 0 : index
    %c0_107 = arith.constant 0 : index
    %c32_108 = arith.constant 32 : index
    %111 = vector.load %arg30[%c0_106, %c0_107, %c32_108] : memref<2x64x256xbf16, #tpu.memory_space<vmem>>, vector<2x64x32xbf16>
    tpu.vector_store %arg30[%c0_106, %c0_107, %c32_108], %110 {strides = array<i32>} : memref<2x64x256xbf16, #tpu.memory_space<vmem>>, vector<2x64x32xbf16>,
    %c0_109 = arith.constant 0 : index
    %c15_110 = arith.constant 15 : index
    %c0_111 = arith.constant 0 : index
    %112 = vector.load %arg29[%c0_109, %c15_110, %c0_111] : memref<2x96x128xf32, #tpu.memory_space<vmem>>, vector<2x64x32xf32>
    %113 = arith.truncf %112 : vector<2x64x32xf32> to vector<2x64x32xbf16>
    %c0_112 = arith.constant 0 : index
    %c0_113 = arith.constant 0 : index
    %c64_114 = arith.constant 64 : index
    %114 = vector.load %arg30[%c0_112, %c0_113, %c64_114] : memref<2x64x256xbf16, #tpu.memory_space<vmem>>, vector<2x64x32xbf16>
    tpu.vector_store %arg30[%c0_112, %c0_113, %c64_114], %113 {strides = array<i32>} : memref<2x64x256xbf16, #tpu.memory_space<vmem>>, vector<2x64x32xbf16>,
    %c0_115 = arith.constant 0 : index
    %c16_116 = arith.constant 16 : index
    %c0_117 = arith.constant 0 : index
    %115 = vector.load %arg29[%c0_115, %c16_116, %c0_117] : memref<2x96x128xf32, #tpu.memory_space<vmem>>, vector<2x64x32xf32>
    %116 = arith.truncf %115 : vector<2x64x32xf32> to vector<2x64x32xbf16>
    %c0_118 = arith.constant 0 : index
    %c0_119 = arith.constant 0 : index
    %c96_120 = arith.constant 96 : index
    %117 = vector.load %arg30[%c0_118, %c0_119, %c96_120] : memref<2x64x256xbf16, #tpu.memory_space<vmem>>, vector<2x64x32xbf16>
    tpu.vector_store %arg30[%c0_118, %c0_119, %c96_120], %116 {strides = array<i32>} : memref<2x64x256xbf16, #tpu.memory_space<vmem>>, vector<2x64x32xbf16>,
    %c0_121 = arith.constant 0 : index
    %c17_122 = arith.constant 17 : index
    %c0_123 = arith.constant 0 : index
    %118 = vector.load %arg29[%c0_121, %c17_122, %c0_123] : memref<2x96x128xf32, #tpu.memory_space<vmem>>, vector<2x64x32xf32>
    %119 = arith.truncf %118 : vector<2x64x32xf32> to vector<2x64x32xbf16>
    %c0_124 = arith.constant 0 : index
    %c0_125 = arith.constant 0 : index
    %c128 = arith.constant 128 : index
    %120 = vector.load %arg30[%c0_124, %c0_125, %c128] : memref<2x64x256xbf16, #tpu.memory_space<vmem>>, vector<2x64x32xbf16>
    tpu.vector_store %arg30[%c0_124, %c0_125, %c128], %119 {strides = array<i32>} : memref<2x64x256xbf16, #tpu.memory_space<vmem>>, vector<2x64x32xbf16>,
    %c0_126 = arith.constant 0 : index
    %c18_127 = arith.constant 18 : index
    %c0_128 = arith.constant 0 : index
    %121 = vector.load %arg29[%c0_126, %c18_127, %c0_128] : memref<2x96x128xf32, #tpu.memory_space<vmem>>, vector<2x64x32xf32>
    %122 = arith.truncf %121 : vector<2x64x32xf32> to vector<2x64x32xbf16>
    %c0_129 = arith.constant 0 : index
    %c0_130 = arith.constant 0 : index
    %c160 = arith.constant 160 : index
    %123 = vector.load %arg30[%c0_129, %c0_130, %c160] : memref<2x64x256xbf16, #tpu.memory_space<vmem>>, vector<2x64x32xbf16>
    tpu.vector_store %arg30[%c0_129, %c0_130, %c160], %122 {strides = array<i32>} : memref<2x64x256xbf16, #tpu.memory_space<vmem>>, vector<2x64x32xbf16>,
    %c0_131 = arith.constant 0 : index
    %c19_132 = arith.constant 19 : index
    %c0_133 = arith.constant 0 : index
    %124 = vector.load %arg29[%c0_131, %c19_132, %c0_133] : memref<2x96x128xf32, #tpu.memory_space<vmem>>, vector<2x64x32xf32>
    %125 = arith.truncf %124 : vector<2x64x32xf32> to vector<2x64x32xbf16>
    %c0_134 = arith.constant 0 : index
    %c0_135 = arith.constant 0 : index
    %c192 = arith.constant 192 : index
    %126 = vector.load %arg30[%c0_134, %c0_135, %c192] : memref<2x64x256xbf16, #tpu.memory_space<vmem>>, vector<2x64x32xbf16>
    tpu.vector_store %arg30[%c0_134, %c0_135, %c192], %125 {strides = array<i32>} : memref<2x64x256xbf16, #tpu.memory_space<vmem>>, vector<2x64x32xbf16>,
    %c0_136 = arith.constant 0 : index
    %c0_137 = arith.constant 0 : index
    %c0_138 = arith.constant 0 : index
    %127 = vector.load %arg30[%c0_136, %c0_137, %c0_138] : memref<2x64x256xbf16, #tpu.memory_space<vmem>>, vector<2x64x256xbf16>
    %128 = vector.shape_cast %127 : vector<2x64x256xbf16> to vector<128x256xbf16>
    %c0_139 = arith.constant 0 : index
    %c0_140 = arith.constant 0 : index
    %129 = vector.load %arg7[%c0_139, %c0_140] : memref<256x128xbf16, #tpu.memory_space<vmem>>, vector<256x128xbf16>
    %cst_141 = arith.constant dense<0.000000e+00> : vector<128x128xf32>
    %130 = tpu.matmul %128, %129, %cst_141 {dimension_numbers = #tpu.dot_dimension_numbers<[1], [0], [0], [1], [0, 0, 1, 1], [], []>} : vector<128x256xbf16>, vector<256x128xbf16>, vector<128x128xf32> -> vector<128x128xf32>
    %c0_142 = arith.constant 0 : index
    %c0_143 = arith.constant 0 : index
    %131 = vector.load %arg8[%c0_142, %c0_143] : memref<1x128xf32, #tpu.memory_space<vmem>>, vector<1x128xf32>
    %132 = vector.broadcast %131 : vector<1x128xf32> to vector<128x128xf32>
    %133 = arith.addf %130, %132 : vector<128x128xf32>
    %c0_144 = arith.constant 0 : index
    %c0_145 = arith.constant 0 : index
    %c0_146 = arith.constant 0 : index
    %134 = vector.load %arg1[%c0_144, %c0_145, %c0_146] : memref<2x64x128xf32, #tpu.memory_space<vmem>>, vector<2x64x128xf32>
    %135 = vector.shape_cast %134 : vector<2x64x128xf32> to vector<128x128xf32>
    %c0_147 = arith.constant 0 : index
    %c0_148 = arith.constant 0 : index
    %136 = vector.load %arg9[%c0_147, %c0_148] : memref<128x128xbf16, #tpu.memory_space<vmem>>, vector<128x128xbf16>
    %137 = arith.truncf %135 : vector<128x128xf32> to vector<128x128xbf16>
    %cst_149 = arith.constant dense<0.000000e+00> : vector<128x128xf32>
    %138 = tpu.matmul %137, %136, %cst_149 {dimension_numbers = #tpu.dot_dimension_numbers<[1], [0], [0], [1], [0, 0, 1, 1], [], []>} : vector<128x128xbf16>, vector<128x128xbf16>, vector<128x128xf32> -> vector<128x128xf32>
    %c0_150 = arith.constant 0 : index
    %c0_151 = arith.constant 0 : index
    %139 = vector.load %arg10[%c0_150, %c0_151] : memref<128x128xbf16, #tpu.memory_space<vmem>>, vector<128x128xbf16>
    %140 = arith.truncf %133 : vector<128x128xf32> to vector<128x128xbf16>
    %cst_152 = arith.constant dense<0.000000e+00> : vector<128x128xf32>
    %141 = tpu.matmul %140, %139, %cst_152 {dimension_numbers = #tpu.dot_dimension_numbers<[1], [0], [0], [1], [0, 0, 1, 1], [], []>} : vector<128x128xbf16>, vector<128x128xbf16>, vector<128x128xf32> -> vector<128x128xf32>
    %142 = arith.addf %138, %141 : vector<128x128xf32>
    %c0_153 = arith.constant 0 : index
    %c0_154 = arith.constant 0 : index
    %143 = vector.load %arg11[%c0_153, %c0_154] : memref<1x128xf32, #tpu.memory_space<vmem>>, vector<1x128xf32>
    %144 = vector.broadcast %143 : vector<1x128xf32> to vector<128x128xf32>
    %145 = arith.addf %142, %144 : vector<128x128xf32>
    %cst_155 = arith.constant 0.000000e+00 : f32
    %146 = vector.broadcast %cst_155 : f32 to vector<128x128xf32>
    %147 = arith.cmpf oge, %145, %146 : vector<128x128xf32>
    %cst_156 = arith.constant 2.000000e-01 : f32
    %148 = vector.broadcast %cst_156 : f32 to vector<128x128xf32>
    %149 = arith.mulf %148, %145 : vector<128x128xf32>
    %150 = arith.select %147, %145, %149 : vector<128x128xi1>, vector<128x128xf32>
    %c0_157 = arith.constant 0 : index
    %c0_158 = arith.constant 0 : index
    %151 = vector.load %arg12[%c0_157, %c0_158] : memref<128x128xbf16, #tpu.memory_space<vmem>>, vector<128x128xbf16>
    %152 = arith.truncf %150 : vector<128x128xf32> to vector<128x128xbf16>
    %cst_159 = arith.constant dense<0.000000e+00> : vector<128x128xf32>
    %153 = tpu.matmul %152, %151, %cst_159 {dimension_numbers = #tpu.dot_dimension_numbers<[1], [0], [0], [1], [0, 0, 1, 1], [], []>} : vector<128x128xbf16>, vector<128x128xbf16>, vector<128x128xf32> -> vector<128x128xf32>
    %c0_160 = arith.constant 0 : index
    %c0_161 = arith.constant 0 : index
    %154 = vector.load %arg13[%c0_160, %c0_161] : memref<1x128xf32, #tpu.memory_space<vmem>>, vector<1x128xf32>
    %155 = vector.broadcast %154 : vector<1x128xf32> to vector<128x128xf32>
    %156 = arith.addf %153, %155 : vector<128x128xf32>
    %cst_162 = arith.constant 0.000000e+00 : f32
    %157 = vector.broadcast %cst_162 : f32 to vector<128x128xf32>
    %158 = arith.cmpf oge, %156, %157 : vector<128x128xf32>
    %cst_163 = arith.constant 2.000000e-01 : f32
    %159 = vector.broadcast %cst_163 : f32 to vector<128x128xf32>
    %160 = arith.mulf %159, %156 : vector<128x128xf32>
    %161 = arith.select %158, %156, %160 : vector<128x128xi1>, vector<128x128xf32>
    %c0_164 = arith.constant 0 : index
    %c0_165 = arith.constant 0 : index
    %162 = vector.load %arg14[%c0_164, %c0_165] : memref<128x128xbf16, #tpu.memory_space<vmem>>, vector<128x128xbf16>
    %163 = arith.truncf %161 : vector<128x128xf32> to vector<128x128xbf16>
    %cst_166 = arith.constant dense<0.000000e+00> : vector<128x128xf32>
    %164 = tpu.matmul %163, %162, %cst_166 {dimension_numbers = #tpu.dot_dimension_numbers<[1], [0], [0], [1], [0, 0, 1, 1], [], []>} : vector<128x128xbf16>, vector<128x128xbf16>, vector<128x128xf32> -> vector<128x128xf32>
    %c0_167 = arith.constant 0 : index
    %c0_168 = arith.constant 0 : index
    %165 = vector.load %arg15[%c0_167, %c0_168] : memref<1x128xf32, #tpu.memory_space<vmem>>, vector<1x128xf32>
    %166 = vector.broadcast %165 : vector<1x128xf32> to vector<128x128xf32>
    %167 = arith.addf %164, %166 : vector<128x128xf32>
    %168 = vector.shape_cast %167 : vector<128x128xf32> to vector<2x64x128xf32>
    %c0_169 = arith.constant 0 : index
    %c16_170 = arith.constant 16 : index
    %c0_171 = arith.constant 0 : index
    %169 = vector.load %arg29[%c0_169, %c16_170, %c0_171] : memref<2x96x128xf32, #tpu.memory_space<vmem>>, vector<2x64x128xf32>
    tpu.vector_store %arg29[%c0_169, %c16_170, %c0_171], %168 {strides = array<i32>} : memref<2x96x128xf32, #tpu.memory_space<vmem>>, vector<2x64x128xf32>,
    %c0_172 = arith.constant 0 : index
    %c15_173 = arith.constant 15 : index
    %c0_174 = arith.constant 0 : index
    %170 = vector.load %arg29[%c0_172, %c15_173, %c0_174] : memref<2x96x128xf32, #tpu.memory_space<vmem>>, vector<2x64x128xf32>
    %171 = vector.shape_cast %170 : vector<2x64x128xf32> to vector<128x128xf32>
    %c0_175 = arith.constant 0 : index
    %c17_176 = arith.constant 17 : index
    %c0_177 = arith.constant 0 : index
    %172 = vector.load %arg29[%c0_175, %c17_176, %c0_177] : memref<2x96x128xf32, #tpu.memory_space<vmem>>, vector<2x64x128xf32>
    %173 = vector.shape_cast %172 : vector<2x64x128xf32> to vector<128x128xf32>
    %c0_178 = arith.constant 0 : index
    %c0_179 = arith.constant 0 : index
    %c0_180 = arith.constant 0 : index
    %174 = vector.load %arg16[%c0_178, %c0_179, %c0_180] : memref<3x128x128xbf16, #tpu.memory_space<vmem>>, vector<1x128x128xbf16>
    %175 = vector.shape_cast %174 : vector<1x128x128xbf16> to vector<128x128xbf16>
    %176 = arith.truncf %171 : vector<128x128xf32> to vector<128x128xbf16>
    %cst_181 = arith.constant dense<0.000000e+00> : vector<128x128xf32>
    %177 = tpu.matmul %176, %175, %cst_181 {dimension_numbers = #tpu.dot_dimension_numbers<[1], [0], [0], [1], [0, 0, 1, 1], [], []>} : vector<128x128xbf16>, vector<128x128xbf16>, vector<128x128xf32> -> vector<128x128xf32>
    %c1_182 = arith.constant 1 : index
    %c0_183 = arith.constant 0 : index
    %c0_184 = arith.constant 0 : index
    %178 = vector.load %arg16[%c1_182, %c0_183, %c0_184] : memref<3x128x128xbf16, #tpu.memory_space<vmem>>, vector<1x128x128xbf16>
    %179 = vector.shape_cast %178 : vector<1x128x128xbf16> to vector<128x128xbf16>
    %180 = arith.truncf %167 : vector<128x128xf32> to vector<128x128xbf16>
    %cst_185 = arith.constant dense<0.000000e+00> : vector<128x128xf32>
    %181 = tpu.matmul %180, %179, %cst_185 {dimension_numbers = #tpu.dot_dimension_numbers<[1], [0], [0], [1], [0, 0, 1, 1], [], []>} : vector<128x128xbf16>, vector<128x128xbf16>, vector<128x128xf32> -> vector<128x128xf32>
    %182 = arith.addf %177, %181 : vector<128x128xf32>
    %c2_186 = arith.constant 2 : index
    %c0_187 = arith.constant 0 : index
    %c0_188 = arith.constant 0 : index
    %183 = vector.load %arg16[%c2_186, %c0_187, %c0_188] : memref<3x128x128xbf16, #tpu.memory_space<vmem>>, vector<1x128x128xbf16>
    %184 = vector.shape_cast %183 : vector<1x128x128xbf16> to vector<128x128xbf16>
    %185 = arith.truncf %173 : vector<128x128xf32> to vector<128x128xbf16>
    %cst_189 = arith.constant dense<0.000000e+00> : vector<128x128xf32>
    %186 = tpu.matmul %185, %184, %cst_189 {dimension_numbers = #tpu.dot_dimension_numbers<[1], [0], [0], [1], [0, 0, 1, 1], [], []>} : vector<128x128xbf16>, vector<128x128xbf16>, vector<128x128xf32> -> vector<128x128xf32>
    %187 = arith.addf %182, %186 : vector<128x128xf32>
    %c0_190 = arith.constant 0 : index
    %c0_191 = arith.constant 0 : index
    %188 = vector.load %arg17[%c0_190, %c0_191] : memref<1x128xf32, #tpu.memory_space<vmem>>, vector<1x128xf32>
    %189 = vector.broadcast %188 : vector<1x128xf32> to vector<128x128xf32>
    %190 = arith.addf %187, %189 : vector<128x128xf32>
    %c0_192 = arith.constant 0 : index
    %c0_193 = arith.constant 0 : index
    %191 = vector.load %arg18[%c0_192, %c0_193] : memref<128x128xbf16, #tpu.memory_space<vmem>>, vector<128x128xbf16>
    %192 = arith.truncf %190 : vector<128x128xf32> to vector<128x128xbf16>
    %cst_194 = arith.constant dense<0.000000e+00> : vector<128x128xf32>
    %193 = tpu.matmul %192, %191, %cst_194 {dimension_numbers = #tpu.dot_dimension_numbers<[1], [0], [0], [1], [0, 0, 1, 1], [], []>} : vector<128x128xbf16>, vector<128x128xbf16>, vector<128x128xf32> -> vector<128x128xf32>
    %c0_195 = arith.constant 0 : index
    %c0_196 = arith.constant 0 : index
    %194 = vector.load %arg19[%c0_195, %c0_196] : memref<1x128xf32, #tpu.memory_space<vmem>>, vector<1x128xf32>
    %195 = vector.broadcast %194 : vector<1x128xf32> to vector<128x128xf32>
    %196 = arith.addf %193, %195 : vector<128x128xf32>
    %197 = arith.addf %196, %167 : vector<128x128xf32>
    %cst_197 = arith.constant 0.000000e+00 : f32
    %198 = vector.broadcast %cst_197 : f32 to vector<128x128xf32>
    %199 = arith.cmpf oge, %197, %198 : vector<128x128xf32>
    %cst_198 = arith.constant 2.000000e-01 : f32
    %200 = vector.broadcast %cst_198 : f32 to vector<128x128xf32>
    %201 = arith.mulf %200, %197 : vector<128x128xf32>
    %202 = arith.select %199, %197, %201 : vector<128x128xi1>, vector<128x128xf32>
    %203 = vector.shape_cast %202 : vector<128x128xf32> to vector<2x64x128xf32>
    %c0_199 = arith.constant 0 : index
    %c16_200 = arith.constant 16 : index
    %c0_201 = arith.constant 0 : index
    %204 = vector.load %arg29[%c0_199, %c16_200, %c0_201] : memref<2x96x128xf32, #tpu.memory_space<vmem>>, vector<2x64x128xf32>
    tpu.vector_store %arg29[%c0_199, %c16_200, %c0_201], %203 {strides = array<i32>} : memref<2x96x128xf32, #tpu.memory_space<vmem>>, vector<2x64x128xf32>,
    %c0_202 = arith.constant 0 : index
    %c13_203 = arith.constant 13 : index
    %c0_204 = arith.constant 0 : index
    %205 = vector.load %arg29[%c0_202, %c13_203, %c0_204] : memref<2x96x128xf32, #tpu.memory_space<vmem>>, vector<2x64x128xf32>
    %206 = vector.shape_cast %205 : vector<2x64x128xf32> to vector<128x128xf32>
    %c0_205 = arith.constant 0 : index
    %c19_206 = arith.constant 19 : index
    %c0_207 = arith.constant 0 : index
    %207 = vector.load %arg29[%c0_205, %c19_206, %c0_207] : memref<2x96x128xf32, #tpu.memory_space<vmem>>, vector<2x64x128xf32>
    %208 = vector.shape_cast %207 : vector<2x64x128xf32> to vector<128x128xf32>
    %c0_208 = arith.constant 0 : index
    %c0_209 = arith.constant 0 : index
    %c0_210 = arith.constant 0 : index
    %209 = vector.load %arg20[%c0_208, %c0_209, %c0_210] : memref<3x128x128xbf16, #tpu.memory_space<vmem>>, vector<1x128x128xbf16>
    %210 = vector.shape_cast %209 : vector<1x128x128xbf16> to vector<128x128xbf16>
    %211 = arith.truncf %206 : vector<128x128xf32> to vector<128x128xbf16>
    %cst_211 = arith.constant dense<0.000000e+00> : vector<128x128xf32>
    %212 = tpu.matmul %211, %210, %cst_211 {dimension_numbers = #tpu.dot_dimension_numbers<[1], [0], [0], [1], [0, 0, 1, 1], [], []>} : vector<128x128xbf16>, vector<128x128xbf16>, vector<128x128xf32> -> vector<128x128xf32>
    %c1_212 = arith.constant 1 : index
    %c0_213 = arith.constant 0 : index
    %c0_214 = arith.constant 0 : index
    %213 = vector.load %arg20[%c1_212, %c0_213, %c0_214] : memref<3x128x128xbf16, #tpu.memory_space<vmem>>, vector<1x128x128xbf16>
    %214 = vector.shape_cast %213 : vector<1x128x128xbf16> to vector<128x128xbf16>
    %215 = arith.truncf %202 : vector<128x128xf32> to vector<128x128xbf16>
    %cst_215 = arith.constant dense<0.000000e+00> : vector<128x128xf32>
    %216 = tpu.matmul %215, %214, %cst_215 {dimension_numbers = #tpu.dot_dimension_numbers<[1], [0], [0], [1], [0, 0, 1, 1], [], []>} : vector<128x128xbf16>, vector<128x128xbf16>, vector<128x128xf32> -> vector<128x128xf32>
    %217 = arith.addf %212, %216 : vector<128x128xf32>
    %c2_216 = arith.constant 2 : index
    %c0_217 = arith.constant 0 : index
    %c0_218 = arith.constant 0 : index
    %218 = vector.load %arg20[%c2_216, %c0_217, %c0_218] : memref<3x128x128xbf16, #tpu.memory_space<vmem>>, vector<1x128x128xbf16>
    %219 = vector.shape_cast %218 : vector<1x128x128xbf16> to vector<128x128xbf16>
    %220 = arith.truncf %208 : vector<128x128xf32> to vector<128x128xbf16>
    %cst_219 = arith.constant dense<0.000000e+00> : vector<128x128xf32>
    %221 = tpu.matmul %220, %219, %cst_219 {dimension_numbers = #tpu.dot_dimension_numbers<[1], [0], [0], [1], [0, 0, 1, 1], [], []>} : vector<128x128xbf16>, vector<128x128xbf16>, vector<128x128xf32> -> vector<128x128xf32>
    %222 = arith.addf %217, %221 : vector<128x128xf32>
    %c0_220 = arith.constant 0 : index
    %c0_221 = arith.constant 0 : index
    %223 = vector.load %arg21[%c0_220, %c0_221] : memref<1x128xf32, #tpu.memory_space<vmem>>, vector<1x128xf32>
    %224 = vector.broadcast %223 : vector<1x128xf32> to vector<128x128xf32>
    %225 = arith.addf %222, %224 : vector<128x128xf32>
    %c0_222 = arith.constant 0 : index
    %c0_223 = arith.constant 0 : index
    %226 = vector.load %arg22[%c0_222, %c0_223] : memref<128x128xbf16, #tpu.memory_space<vmem>>, vector<128x128xbf16>
    %227 = arith.truncf %225 : vector<128x128xf32> to vector<128x128xbf16>
    %cst_224 = arith.constant dense<0.000000e+00> : vector<128x128xf32>
    %228 = tpu.matmul %227, %226, %cst_224 {dimension_numbers = #tpu.dot_dimension_numbers<[1], [0], [0], [1], [0, 0, 1, 1], [], []>} : vector<128x128xbf16>, vector<128x128xbf16>, vector<128x128xf32> -> vector<128x128xf32>
    %c0_225 = arith.constant 0 : index
    %c0_226 = arith.constant 0 : index
    %229 = vector.load %arg23[%c0_225, %c0_226] : memref<1x128xf32, #tpu.memory_space<vmem>>, vector<1x128xf32>
    %230 = vector.broadcast %229 : vector<1x128xf32> to vector<128x128xf32>
    %231 = arith.addf %228, %230 : vector<128x128xf32>
    %232 = arith.addf %231, %202 : vector<128x128xf32>
    %cst_227 = arith.constant 0.000000e+00 : f32
    %233 = vector.broadcast %cst_227 : f32 to vector<128x128xf32>
    %234 = arith.cmpf oge, %232, %233 : vector<128x128xf32>
    %cst_228 = arith.constant 2.000000e-01 : f32
    %235 = vector.broadcast %cst_228 : f32 to vector<128x128xf32>
    %236 = arith.mulf %235, %232 : vector<128x128xf32>
    %237 = arith.select %234, %232, %236 : vector<128x128xi1>, vector<128x128xf32>
    %238 = vector.shape_cast %237 : vector<128x128xf32> to vector<2x64x128xf32>
    %c0_229 = arith.constant 0 : index
    %c16_230 = arith.constant 16 : index
    %c0_231 = arith.constant 0 : index
    %239 = vector.load %arg29[%c0_229, %c16_230, %c0_231] : memref<2x96x128xf32, #tpu.memory_space<vmem>>, vector<2x64x128xf32>
    tpu.vector_store %arg29[%c0_229, %c16_230, %c0_231], %238 {strides = array<i32>} : memref<2x96x128xf32, #tpu.memory_space<vmem>>, vector<2x64x128xf32>,
    %c0_232 = arith.constant 0 : index
    %c7 = arith.constant 7 : index
    %c0_233 = arith.constant 0 : index
    %240 = vector.load %arg29[%c0_232, %c7, %c0_233] : memref<2x96x128xf32, #tpu.memory_space<vmem>>, vector<2x64x128xf32>
    %241 = vector.shape_cast %240 : vector<2x64x128xf32> to vector<128x128xf32>
    %c0_234 = arith.constant 0 : index
    %c25 = arith.constant 25 : index
    %c0_235 = arith.constant 0 : index
    %242 = vector.load %arg29[%c0_234, %c25, %c0_235] : memref<2x96x128xf32, #tpu.memory_space<vmem>>, vector<2x64x128xf32>
    %243 = vector.shape_cast %242 : vector<2x64x128xf32> to vector<128x128xf32>
    %c0_236 = arith.constant 0 : index
    %c0_237 = arith.constant 0 : index
    %c0_238 = arith.constant 0 : index
    %244 = vector.load %arg24[%c0_236, %c0_237, %c0_238] : memref<3x128x128xbf16, #tpu.memory_space<vmem>>, vector<1x128x128xbf16>
    %245 = vector.shape_cast %244 : vector<1x128x128xbf16> to vector<128x128xbf16>
    %246 = arith.truncf %241 : vector<128x128xf32> to vector<128x128xbf16>
    %cst_239 = arith.constant dense<0.000000e+00> : vector<128x128xf32>
    %247 = tpu.matmul %246, %245, %cst_239 {dimension_numbers = #tpu.dot_dimension_numbers<[1], [0], [0], [1], [0, 0, 1, 1], [], []>} : vector<128x128xbf16>, vector<128x128xbf16>, vector<128x128xf32> -> vector<128x128xf32>
    %c1_240 = arith.constant 1 : index
    %c0_241 = arith.constant 0 : index
    %c0_242 = arith.constant 0 : index
    %248 = vector.load %arg24[%c1_240, %c0_241, %c0_242] : memref<3x128x128xbf16, #tpu.memory_space<vmem>>, vector<1x128x128xbf16>
    %249 = vector.shape_cast %248 : vector<1x128x128xbf16> to vector<128x128xbf16>
    %250 = arith.truncf %237 : vector<128x128xf32> to vector<128x128xbf16>
    %cst_243 = arith.constant dense<0.000000e+00> : vector<128x128xf32>
    %251 = tpu.matmul %250, %249, %cst_243 {dimension_numbers = #tpu.dot_dimension_numbers<[1], [0], [0], [1], [0, 0, 1, 1], [], []>} : vector<128x128xbf16>, vector<128x128xbf16>, vector<128x128xf32> -> vector<128x128xf32>
    %252 = arith.addf %247, %251 : vector<128x128xf32>
    %c2_244 = arith.constant 2 : index
    %c0_245 = arith.constant 0 : index
    %c0_246 = arith.constant 0 : index
    %253 = vector.load %arg24[%c2_244, %c0_245, %c0_246] : memref<3x128x128xbf16, #tpu.memory_space<vmem>>, vector<1x128x128xbf16>
    %254 = vector.shape_cast %253 : vector<1x128x128xbf16> to vector<128x128xbf16>
    %255 = arith.truncf %243 : vector<128x128xf32> to vector<128x128xbf16>
    %cst_247 = arith.constant dense<0.000000e+00> : vector<128x128xf32>
    %256 = tpu.matmul %255, %254, %cst_247 {dimension_numbers = #tpu.dot_dimension_numbers<[1], [0], [0], [1], [0, 0, 1, 1], [], []>} : vector<128x128xbf16>, vector<128x128xbf16>, vector<128x128xf32> -> vector<128x128xf32>
    %257 = arith.addf %252, %256 : vector<128x128xf32>
    %c0_248 = arith.constant 0 : index
    %c0_249 = arith.constant 0 : index
    %258 = vector.load %arg25[%c0_248, %c0_249] : memref<1x128xf32, #tpu.memory_space<vmem>>, vector<1x128xf32>
    %259 = vector.broadcast %258 : vector<1x128xf32> to vector<128x128xf32>
    %260 = arith.addf %257, %259 : vector<128x128xf32>
    %c0_250 = arith.constant 0 : index
    %c0_251 = arith.constant 0 : index
    %261 = vector.load %arg26[%c0_250, %c0_251] : memref<128x128xbf16, #tpu.memory_space<vmem>>, vector<128x128xbf16>
    %262 = arith.truncf %260 : vector<128x128xf32> to vector<128x128xbf16>
    %cst_252 = arith.constant dense<0.000000e+00> : vector<128x128xf32>
    %263 = tpu.matmul %262, %261, %cst_252 {dimension_numbers = #tpu.dot_dimension_numbers<[1], [0], [0], [1], [0, 0, 1, 1], [], []>} : vector<128x128xbf16>, vector<128x128xbf16>, vector<128x128xf32> -> vector<128x128xf32>
    %c0_253 = arith.constant 0 : index
    %c0_254 = arith.constant 0 : index
    %264 = vector.load %arg27[%c0_253, %c0_254] : memref<1x128xf32, #tpu.memory_space<vmem>>, vector<1x128xf32>
    %265 = vector.broadcast %264 : vector<1x128xf32> to vector<128x128xf32>
    %266 = arith.addf %263, %265 : vector<128x128xf32>
    %267 = arith.addf %266, %237 : vector<128x128xf32>
    %cst_255 = arith.constant 0.000000e+00 : f32
    %268 = vector.broadcast %cst_255 : f32 to vector<128x128xf32>
    %269 = arith.cmpf oge, %267, %268 : vector<128x128xf32>
    %cst_256 = arith.constant 2.000000e-01 : f32
    %270 = vector.broadcast %cst_256 : f32 to vector<128x128xf32>
    %271 = arith.mulf %270, %267 : vector<128x128xf32>
    %272 = arith.select %269, %267, %271 : vector<128x128xi1>, vector<128x128xf32>
    %273 = vector.shape_cast %272 : vector<128x128xf32> to vector<2x64x128xf32>
    %c0_257 = arith.constant 0 : index
    %c0_258 = arith.constant 0 : index
    %c0_259 = arith.constant 0 : index
    %274 = vector.load %arg28[%c0_257, %c0_258, %c0_259] : memref<2x64x128xf32, #tpu.memory_space<vmem>>, vector<2x64x128xf32>
    tpu.vector_store %arg28[%c0_257, %c0_258, %c0_259], %273 {strides = array<i32>} : memref<2x64x128xf32, #tpu.memory_space<vmem>>, vector<2x64x128xf32>,
    return
  }
  func.func @transform_0(%arg0: i32) -> (i32, i32, i32) {
    %c0_i32 = arith.constant 0 : i32
    %c0_i32_0 = arith.constant 0 : i32
    %c0_i32_1 = arith.constant 0 : i32
    return %arg0, %c0_i32, %c0_i32_0 : i32, i32, i32
  }
  func.func @transform_1(%arg0: i32) -> (i32, i32, i32) {
    %c0_i32 = arith.constant 0 : i32
    %c0_i32_0 = arith.constant 0 : i32
    %c0_i32_1 = arith.constant 0 : i32
    return %arg0, %c0_i32, %c0_i32_0 : i32, i32, i32
  }
  func.func @transform_2(%arg0: i32) -> (i32, i32) {
    %c0_i32 = arith.constant 0 : i32
    %c0_i32_0 = arith.constant 0 : i32
    %c0_i32_1 = arith.constant 0 : i32
    return %c0_i32, %c0_i32_0 : i32, i32
  }
  func.func @transform_3(%arg0: i32) -> (i32, i32) {
    %c0_i32 = arith.constant 0 : i32
    %c0_i32_0 = arith.constant 0 : i32
    %c0_i32_1 = arith.constant 0 : i32
    return %c0_i32, %c0_i32_0 : i32, i32
  }
  func.func @transform_4(%arg0: i32) -> (i32, i32) {
    %c0_i32 = arith.constant 0 : i32
    %c0_i32_0 = arith.constant 0 : i32
    %c0_i32_1 = arith.constant 0 : i32
    return %c0_i32, %c0_i32_0 : i32, i32
  }
  func.func @transform_5(%arg0: i32) -> (i32, i32) {
    %c0_i32 = arith.constant 0 : i32
    %c0_i32_0 = arith.constant 0 : i32
    %c0_i32_1 = arith.constant 0 : i32
    return %c0_i32, %c0_i32_0 : i32, i32
  }
  func.func @transform_6(%arg0: i32) -> (i32, i32) {
    %c0_i32 = arith.constant 0 : i32
    %c0_i32_0 = arith.constant 0 : i32
    %c0_i32_1 = arith.constant 0 : i32
    return %c0_i32, %c0_i32_0 : i32, i32
  }
  func.func @transform_7(%arg0: i32) -> (i32, i32) {
    %c0_i32 = arith.constant 0 : i32
    %c0_i32_0 = arith.constant 0 : i32
    %c0_i32_1 = arith.constant 0 : i32
    return %c0_i32, %c0_i32_0 : i32, i32
  }
  func.func @transform_8(%arg0: i32) -> (i32, i32) {
    %c0_i32 = arith.constant 0 : i32
    %c0_i32_0 = arith.constant 0 : i32
    %c0_i32_1 = arith.constant 0 : i32
    return %c0_i32, %c0_i32_0 : i32, i32
  }
  func.func @transform_9(%arg0: i32) -> (i32, i32) {
    %c0_i32 = arith.constant 0 : i32
    %c0_i32_0 = arith.constant 0 : i32
    %c0_i32_1 = arith.constant 0 : i32
    return %c0_i32, %c0_i32_0 : i32, i32
  }
  func.func @transform_10(%arg0: i32) -> (i32, i32) {
    %c0_i32 = arith.constant 0 : i32
    %c0_i32_0 = arith.constant 0 : i32
    %c0_i32_1 = arith.constant 0 : i32
    return %c0_i32, %c0_i32_0 : i32, i32
  }
  func.func @transform_11(%arg0: i32) -> (i32, i32) {
    %c0_i32 = arith.constant 0 : i32
    %c0_i32_0 = arith.constant 0 : i32
    %c0_i32_1 = arith.constant 0 : i32
    return %c0_i32, %c0_i32_0 : i32, i32
  }
  func.func @transform_12(%arg0: i32) -> (i32, i32) {
    %c0_i32 = arith.constant 0 : i32
    %c0_i32_0 = arith.constant 0 : i32
    %c0_i32_1 = arith.constant 0 : i32
    return %c0_i32, %c0_i32_0 : i32, i32
  }
  func.func @transform_13(%arg0: i32) -> (i32, i32) {
    %c0_i32 = arith.constant 0 : i32
    %c0_i32_0 = arith.constant 0 : i32
    %c0_i32_1 = arith.constant 0 : i32
    return %c0_i32, %c0_i32_0 : i32, i32
  }
  func.func @transform_14(%arg0: i32) -> (i32, i32) {
    %c0_i32 = arith.constant 0 : i32
    %c0_i32_0 = arith.constant 0 : i32
    %c0_i32_1 = arith.constant 0 : i32
    return %c0_i32, %c0_i32_0 : i32, i32
  }
  func.func @transform_15(%arg0: i32) -> (i32, i32, i32) {
    %c0_i32 = arith.constant 0 : i32
    %c0_i32_0 = arith.constant 0 : i32
    %c0_i32_1 = arith.constant 0 : i32
    %c0_i32_2 = arith.constant 0 : i32
    return %c0_i32, %c0_i32_0, %c0_i32_1 : i32, i32, i32
  }
  func.func @transform_16(%arg0: i32) -> (i32, i32) {
    %c0_i32 = arith.constant 0 : i32
    %c0_i32_0 = arith.constant 0 : i32
    %c0_i32_1 = arith.constant 0 : i32
    return %c0_i32, %c0_i32_0 : i32, i32
  }
  func.func @transform_17(%arg0: i32) -> (i32, i32) {
    %c0_i32 = arith.constant 0 : i32
    %c0_i32_0 = arith.constant 0 : i32
    %c0_i32_1 = arith.constant 0 : i32
    return %c0_i32, %c0_i32_0 : i32, i32
  }
  func.func @transform_18(%arg0: i32) -> (i32, i32) {
    %c0_i32 = arith.constant 0 : i32
    %c0_i32_0 = arith.constant 0 : i32
    %c0_i32_1 = arith.constant 0 : i32
    return %c0_i32, %c0_i32_0 : i32, i32
  }
  func.func @transform_19(%arg0: i32) -> (i32, i32, i32) {
    %c0_i32 = arith.constant 0 : i32
    %c0_i32_0 = arith.constant 0 : i32
    %c0_i32_1 = arith.constant 0 : i32
    %c0_i32_2 = arith.constant 0 : i32
    return %c0_i32, %c0_i32_0, %c0_i32_1 : i32, i32, i32
  }
  func.func @transform_20(%arg0: i32) -> (i32, i32) {
    %c0_i32 = arith.constant 0 : i32
    %c0_i32_0 = arith.constant 0 : i32
    %c0_i32_1 = arith.constant 0 : i32
    return %c0_i32, %c0_i32_0 : i32, i32
  }
  func.func @transform_21(%arg0: i32) -> (i32, i32) {
    %c0_i32 = arith.constant 0 : i32
    %c0_i32_0 = arith.constant 0 : i32
    %c0_i32_1 = arith.constant 0 : i32
    return %c0_i32, %c0_i32_0 : i32, i32
  }
  func.func @transform_22(%arg0: i32) -> (i32, i32) {
    %c0_i32 = arith.constant 0 : i32
    %c0_i32_0 = arith.constant 0 : i32
    %c0_i32_1 = arith.constant 0 : i32
    return %c0_i32, %c0_i32_0 : i32, i32
  }
  func.func @transform_23(%arg0: i32) -> (i32, i32, i32) {
    %c0_i32 = arith.constant 0 : i32
    %c0_i32_0 = arith.constant 0 : i32
    %c0_i32_1 = arith.constant 0 : i32
    %c0_i32_2 = arith.constant 0 : i32
    return %c0_i32, %c0_i32_0, %c0_i32_1 : i32, i32, i32
  }
  func.func @transform_24(%arg0: i32) -> (i32, i32) {
    %c0_i32 = arith.constant 0 : i32
    %c0_i32_0 = arith.constant 0 : i32
    %c0_i32_1 = arith.constant 0 : i32
    return %c0_i32, %c0_i32_0 : i32, i32
  }
  func.func @transform_25(%arg0: i32) -> (i32, i32) {
    %c0_i32 = arith.constant 0 : i32
    %c0_i32_0 = arith.constant 0 : i32
    %c0_i32_1 = arith.constant 0 : i32
    return %c0_i32, %c0_i32_0 : i32, i32
  }
  func.func @transform_26(%arg0: i32) -> (i32, i32) {
    %c0_i32 = arith.constant 0 : i32
    %c0_i32_0 = arith.constant 0 : i32
    %c0_i32_1 = arith.constant 0 : i32
    return %c0_i32, %c0_i32_0 : i32, i32
  }
  func.func @transform_27(%arg0: i32) -> (i32, i32, i32) {
    %c0_i32 = arith.constant 0 : i32
    %c0_i32_0 = arith.constant 0 : i32
    %c0_i32_1 = arith.constant 0 : i32
    return %arg0, %c0_i32, %c0_i32_0 : i32, i32, i32
  }
}

</mosaic_0001>

<bundles_post_ra>
// kernel: _lambda_.1
= control target key start
LH: loop header
LB: loop body
LE: loop exit
PB: predicated region body
PF: predicated region fallthrough
CT: control target
= control target key end

     0   :  { %s9381_s0 = inlined_call_operand.vmem [shape: f32[4,64,128], index: 0, kind: input, shape index: {}]   ;;  %s9382_s1 = inlined_call_operand.vmem [shape: f32[4,64,1], index: 1, kind: input, shape index: {}]   ;;  %s9383_s2 = inlined_call_operand.vmem [shape: f32[7,16], index: 2, kind: input, shape index: {}]   ;;  %s9384_s3 = inlined_call_operand.vmem [shape: f32[1,16], index: 3, kind: input, shape index: {}]   ;;  %s9385_s4 = inlined_call_operand.vmem [shape: bf16[128,32], index: 4, kind: input, shape index: {}]   ;;  %s9386_s5 = inlined_call_operand.vmem [shape: f32[1,32], index: 5, kind: input, shape index: {}]   ;;  %s9387_s6 = inlined_call_operand.vmem [shape: bf16[256,128], index: 6, kind: input, shape index: {}]   ;;  %s9388_s7 = inlined_call_operand.vmem [shape: f32[1,128], index: 7, kind: input, shape index: {}]   ;;  %s9389_s8 = inlined_call_operand.vmem [shape: bf16[128,128], index: 8, kind: input, shape index: {}]   ;;  %s9390_s9 = inlined_call_operand.vmem [shape: bf16[128,128], index: 9, kind: input, shape index: {}]   ;;  %s9391_s10 = inlined_call_operand.vmem [shape: f32[1,128], index: 10, kind: input, shape index: {}]   ;;  %s9392_s11 = inlined_call_operand.vmem [shape: bf16[128,128], index: 11, kind: input, shape index: {}]   ;;  %s9393_s12 = inlined_call_operand.vmem [shape: f32[1,128], index: 12, kind: input, shape index: {}]   ;;  %s9394_s13 = inlined_call_operand.vmem [shape: bf16[128,128], index: 13, kind: input, shape index: {}]   ;;  %s9395_s14 = inlined_call_operand.vmem [shape: f32[1,128], index: 14, kind: input, shape index: {}]   ;;  %s9396_s15 = inlined_call_operand.vmem [shape: bf16[3,128,128], index: 15, kind: input, shape index: {}]   ;;  %s9397_s16 = inlined_call_operand.vmem [shape: f32[1,128], index: 16, kind: input, shape index: {}]   ;;  %s9398_s17 = inlined_call_operand.vmem [shape: bf16[128,128], index: 17, kind: input, shape index: {}]   ;;  %s9399_s18 = inlined_call_operand.vmem [shape: f32[1,128], index: 18, kind: input, shape index: {}]   ;;  %s9400_s19 = inlined_call_operand.vmem [shape: bf16[3,128,128], index: 19, kind: input, shape index: {}]   ;;  %s9401_s20 = inlined_call_operand.vmem [shape: f32[1,128], index: 20, kind: input, shape index: {}]   ;;  %s9402_s21 = inlined_call_operand.vmem [shape: bf16[128,128], index: 21, kind: input, shape index: {}]   ;;  %s9403_s22 = inlined_call_operand.vmem [shape: f32[1,128], index: 22, kind: input, shape index: {}]   ;;  %s9404_s23 = inlined_call_operand.vmem [shape: bf16[3,128,128], index: 23, kind: input, shape index: {}]   ;;  %s9405_s24 = inlined_call_operand.vmem [shape: f32[1,128], index: 24, kind: input, shape index: {}]   ;;  %s9406_s25 = inlined_call_operand.vmem [shape: bf16[128,128], index: 25, kind: input, shape index: {}]   ;;  %s9407_s26 = inlined_call_operand.vmem [shape: f32[1,128], index: 26, kind: input, shape index: {}]   ;;  %s9408_s27 = inlined_call_operand.hbm [shape: f32[4,64,128], index: 27, kind: output, shape index: {}]  }
   0x1   :  { %9434 = sst [smem:[#allocation13_spill]] %s9381_s0 }
   0x2   :  { %9435 = sst [smem:[#allocation14_spill]] %s9382_s1 }
   0x3   :  { %9436 = sst [smem:[#allocation15_spill]] %s9383_s2 }
   0x4   :  { %9437 = sst [smem:[#allocation16_spill]] %s9384_s3 }
   0x5   :  { %9438 = sst [smem:[#allocation17_spill]] %s9385_s4 }
   0x6   :  { %9439 = sst [smem:[#allocation18_spill]] %s9386_s5 }
   0x7   :  { %9440 = sst [smem:[#allocation19_spill]] %s9387_s6 }
   0x8   :  { %9441 = sst [smem:[#allocation20_spill]] %s9388_s7 }
   0x9   :  { %9442 = sst [smem:[#allocation21_spill]] %s9389_s8 }
   0xa   :  { %9443 = sst [smem:[#allocation22_spill]] %s9390_s9 }
   0xb   :  { %9444 = sst [smem:[#allocation23_spill]] %s9391_s10 }
   0xc   :  { %9445 = sst [smem:[#allocation24_spill]] %s9392_s11 }
   0xd   :  { %9446 = sst [smem:[#allocation25_spill]] %s9408_s27 }
   0xe   :  { %32 = vsyncpa [#allocation5], 0 }
   0xf   :  { %34 = vsyncpa [#allocation5 + $0x1], 0  ;;  %s7863_s7 = smov 0   ;;  %s7865_s4 = smov 0  }
  0x10   :  { %s7867_s8 = smov 0   ;;  %s7869_s30 = smov 0  }
  0x11 LB: > { %9447 = sst [smem:[#allocation7_spill]] %s7698_s7  ;;  %s7884_s9 = sadd.s32 4294967295, %s7710_s30   ;;  %s7710_s30 = sphi %s7869_s30, %s9477_s30   ;;  %s7706_s8 = sphi %s7867_s8, %s9479_s8   ;;  %s7702_s4 = sphi %s7865_s4, %s9481_s4   ;;  %s7698_s7 = sphi %s7863_s7, %s9480_s7  }
  0x12   : > { %9448 = sst [smem:[#allocation8_spill]] %s7706_s8  ;;  %s6165_s5 = sadd.s32 4294967294, %s7710_s30  }
  0x13   : > { %9449 = sst [smem:[#allocation9_spill]] %s7710_s30  ;;  %s7888_s28 = sadd.s32 1, %s7710_s30  }
  0x14   : > { %9450 = sst [smem:[#allocation10_spill]] %s7888_s28  ;;  %s624_s0 = sadd.s32 1, %s7706_s8 }
  0x15   : > { %s621_s10 = ssub.s32 %s7710_s30, %s7888_s28  ;;  %p634_p0 = scmp.ne.s32.totalorder %s7706_s8, %s7702_s4 }
  0x16   : > { %p622_p1 = scmp.eq.s32.totalorder %s621_s10, 0  ;;  %p635_p2 = scmp.eq.s32.totalorder %s7884_s9, 1 }
  0x17   : > { %p640_p3 = scmp.ne.s32.totalorder %s7702_s4, %s7698_s7  ;;  %p641_p4 = scmp.eq.s32.totalorder %s6165_s5, 1 }
  0x18   : > { %s7899_s29 = scalar_select %p622_p1, %s7706_s8, %s624_s0  }
  0x19   : > { %p7901_p5 = por %p635_p2, %p634_p0  ;;  %p7905_p6 = por %p641_p4, %p640_p3 }
  0x1a   : > { %9451 = sst [smem:[#allocation11_spill]] %s7899_s29  ;;  %p6168_p7 = scmp.ge.s32.totalorder %s7710_s30, 1 }
  0x1b   : > { %s9453_s6 = scalar_select %p7905_p6, 1, 0 }
  0x1c   : > { %p754_p8 = scmp.lt.s32.totalorder %s7710_s30, 3 }
  0x1d   : > { %9454 = sst [smem:[#allocation12_spill]] %s9453_s6 }
  0x1e   : > { %p755_p9 = pnand %p6168_p7, %p754_p8 }
  0x1f   : > { %s6170_s11 = sshll.u32 (!%p755_p9), %s7884_s9, 1  ;;  %v7712_v0 = vmov (!%p755_p9), 0   ;;  %s9455_s0 = sld [smem:[#allocation14_spill]] (!%p755_p9)  ;;  %v7713_v3 = vmov (!%p755_p9), 0.0   ;;  %vm857_vm0 = vcmask (!%p755_p9), 1048448   ;;  %vm971_vm1 = vcmask (!%p755_p9), 130048  }
  0x20   : > { %758 = sbr.rel (%p755_p9) target bundleno = 3295 (0xcdf), region = 128  ;;  %7495 = vset.pattern.permute.xlu1 (!%p755_p9), %v7712_v0  ;;  %7494 = vset.pattern.permute.xlu0 (!%p755_p9), %v7712_v0  ;;  %p834_p10 = scmp.lt.s32.totalorder (!%p755_p9), %s6170_s11, 3  ;;  %850 = vst [vmem:[#allocation2 + $0x8] sm:$0xff] (!%p755_p9), %v7713_v3  ;;  %849 = vst [vmem:[#allocation2] sm:$0xff] (!%p755_p9), %v7713_v3 }
  0x21   : > { %851 = vst [vmem:[#allocation2 + $0x60] sm:$0xff] (!%p755_p9), %v7713_v3  ;;  %852 = vst [vmem:[#allocation2 + $0x68] sm:$0xff] (!%p755_p9), %v7713_v3  ;;  %s9457_s28 = sld [smem:[#allocation16_spill]] (!%p755_p9)  ;;  %s9458_s5 = sld [smem:[#allocation17_spill]] (!%p755_p9) }
  0x22   : > { %853 = vst [vmem:[#allocation2 + $0x50] sm:$0xff] (!%p755_p9), %v7713_v3  ;;  %854 = vst [vmem:[#allocation2 + $0x58] sm:$0xff] (!%p755_p9), %v7713_v3  ;;  %s7714_s6 = smov (!%p755_p9), 16   ;;  %s9421_s8 = smov (!%p755_p9), 64  }
  0x23   : > { %855 = vst [vmem:[#allocation2 + $0xb0] sm:$0xff] (!%p755_p9), %v7713_v3  ;;  %856 = vst [vmem:[#allocation2 + $0xb8] sm:$0xff] (!%p755_p9), %v7713_v3  ;;  %s9425_s3 = smov (!%p755_p9), 96   ;;  %s9459_s7 = sld [smem:[#allocation19_spill]] (!%p755_p9) }
  0x24   : > { %859 = vst.msk [vmem:[#allocation3 + $0x10] sm:$0xff] (!%p755_p9), %vm857_vm0, %v7712_v0  ;;  %858 = vst.msk [vmem:[#allocation3] sm:$0xff] (!%p755_p9), %vm857_vm0, %v7712_v0  ;;  %s9461_s27 = sld [smem:[#allocation18_spill]] (!%p755_p9)  ;;  %s9467_s30 = sld [smem:[#allocation24_spill]] (!%p755_p9) }
  0x25   : > { %860 = vst.msk [vmem:[#allocation3 + $0x20] sm:$0xff] (!%p755_p9), %vm857_vm0, %v7712_v0  ;;  %861 = vst.msk [vmem:[#allocation3 + $0x30] sm:$0xff] (!%p755_p9), %vm857_vm0, %v7712_v0 }
  0x26   : > { %862 = vst.msk [vmem:[#allocation3 + $0x40] sm:$0xff] (!%p755_p9), %vm857_vm0, %v7712_v0  ;;  %863 = vst.msk [vmem:[#allocation3 + $0x50] sm:$0xff] (!%p755_p9), %vm857_vm0, %v7712_v0 }
  0x27   : > { %s9483_s11 = smov (!%p834_p10, %s6170_s11), 3  ;;  %864 = vst.msk [vmem:[#allocation3 + $0x60] sm:$0xff] %vm857_vm0, %v7712_v0  ;;  %865 = vst.msk [vmem:[#allocation3 + $0x70] sm:$0xff] %vm857_vm0, %v7712_v0  ;;  %v7965_v24 = vld [vmem:[%s9457_s28] ss:$0 sm:$0xff]  ;;  %s9423_s28 = smov 32  }
  0x28   : > { %s9415_s2 = sshll.u32 %s9483_s11, 6 }
  0x29   : > { %s7922_s10 = scalar_lea.vmem %s9455_s0, %s9415_s2  ;;  %s9456_s0 = sld [smem:[#allocation15_spill]] }
  0x2a   : > { %v877_v1 = vld [vmem:[%s7922_s10 + $0x10] sm:$0xff]  ;;  %v875_v2 = vld [vmem:[%s7922_s10] sm:$0xff]  ;;  %v878_v4 = vld [vmem:[%s7922_s10 + $0x18] sm:$0xff]  ;;  %s7716_s2 = smov 48   ;;  %s9460_s29 = smov %s9459_s7 }
  0x2b   : > { %903 = vperm.xlu1 %7495, %v877_v1   ;;  %893 = vperm.xlu0 %7494, %v875_v2   ;;  %v876_v5 = vld [vmem:[%s7922_s10 + $0x8] sm:$0xff]  ;;  %v879_v7 = vld [vmem:[%s7922_s10 + $0x20] sm:$0xff]  ;;  %v882_v8 = vld [vmem:[%s7922_s10 + $0x38] sm:$0xff] }
  0x2c   : > { %v880_v6 = vld [vmem:[%s7922_s10 + $0x28] sm:$0xff]  ;;  %v881_v9 = vld [vmem:[%s7922_s10 + $0x30] sm:$0xff]  ;;  %v883_v11 = vld [vmem:[%s7922_s10 + $0x40] sm:$0xff] }
  0x2d   : > { %v884_v10 = vld [vmem:[%s7922_s10 + $0x48] sm:$0xff]  ;;  %v886_v12 = vld [vmem:[%s7922_s10 + $0x58] sm:$0xff]  ;;  %v885_v13 = vld [vmem:[%s7922_s10 + $0x50] sm:$0xff] }
  0x2e   : > { %v888_v14 = vld [vmem:[%s7922_s10 + $0x68] sm:$0xff]  ;;  %v887_v15 = vld [vmem:[%s7922_s10 + $0x60] sm:$0xff]  ;;  %v890_v16 = vld [vmem:[%s7922_s10 + $0x78] sm:$0xff] }
  0x2f   : > { %908 = vperm.xlu1 %7495, %v878_v4   ;;  %898 = vperm.xlu0 %7494, %v876_v5   ;;  %v889_v17 = vld [vmem:[%s7922_s10 + $0x70] sm:$0xff]  ;;  %v7955_v22 = vld [vmem:[%s9456_s0] ss:$0 sm:$0xff]  ;;  %v7960_v23 = vld [vmem:[%s9456_s0 + $0x1] ss:$0 sm:$0xff]  ;;  %s7718_s10 = smov 80  }
  0x30   : > { %v7970_v29 = vld [vmem:[%s9456_s0 + $0x3] ss:$0 sm:$0xff]  ;;  %v7975_v30 = vld [vmem:[%s9456_s0 + $0x2] ss:$0 sm:$0xff]  ;;  %v7983_v34 = vld [vmem:[%s9456_s0 + $0x4] ss:$0 sm:$0xff] }
  0x31   : > { %v7990_v38 = vld [vmem:[%s9456_s0 + $0x5] ss:$0 sm:$0xff]  ;;  %v7995_v39 = vld [vmem:[%s9456_s0 + $0x6] ss:$0 sm:$0xff]  ;;  %s9462_s0 = smov 96  }
  0x33   : > { %918 = vperm.xlu1 %7495, %v880_v6   ;;  %913 = vperm.xlu0 %7494, %v879_v7  }
  0x37   : > { %928 = vperm.xlu1 %7495, %v882_v8   ;;  %923 = vperm.xlu0 %7494, %v881_v9  }
  0x3b   : > { %938 = vperm.xlu1 %7495, %v884_v10   ;;  %933 = vperm.xlu0 %7494, %v883_v11  }
  0x3f   : > { %948 = vperm.xlu1 %7495, %v886_v12   ;;  %943 = vperm.xlu0 %7494, %v885_v13  }
  0x43   : > { %958 = vperm.xlu1 %7495, %v888_v14   ;;  %953 = vperm.xlu0 %7494, %v887_v15  }
  0x47   : > { %968 = vperm.xlu1 %7495, %v890_v16   ;;  %963 = vperm.xlu0 %7494, %v889_v17  }
  0xaa   : > { %v904_v18 = vpop.permute.xlu1 %903  ;;  %v894_v19 = vpop.permute.xlu0 %893 }
  0xab   : > { %974 = vst.msk [vmem:[#allocation2 + $0x20] sm:$0xff] %vm971_vm1, %v904_v18  ;;  %972 = vst.msk [vmem:[#allocation2 + $0x10] sm:$0xff] %vm971_vm1, %v894_v19 }
  0xae   : > { %v909_v20 = vpop.permute.xlu1 %908  ;;  %v899_v21 = vpop.permute.xlu0 %898 }
  0xaf   : > { %975 = vst.msk [vmem:[#allocation2 + $0x28] sm:$0xff] %vm971_vm1, %v909_v20  ;;  %973 = vst.msk [vmem:[#allocation2 + $0x18] sm:$0xff] %vm971_vm1, %v899_v21 }
  0xb2   : > { %v995_v25 = vld [vmem:[#allocation2 + $0xd] sm:$0xff]  ;;  %v919_v27 = vpop.permute.xlu1 %918  ;;  %v914_v28 = vpop.permute.xlu0 %913  ;;  %v1156_v32 = vld [vmem:[#allocation2 + $0x20] sm:$0xff] }
  0xb3   : > { %v1048_v26 = vld [vmem:[#allocation2 + $0xe] sm:$0xff]  ;;  %v1016_v31 = vmul.f32 %v7955_v22, %v995_v25  ;;  %977 = vst.msk [vmem:[#allocation2 + $0x38] sm:$0xff] %vm971_vm1, %v919_v27  ;;  %976 = vst.msk [vmem:[#allocation2 + $0x30] sm:$0xff] %vm971_vm1, %v914_v28  ;;  %v7998_v45 = vmul.f32 %v7970_v29, %v1156_v32 }
  0xb4   : > { %v1101_v33 = vld [vmem:[#allocation2 + $0xf] sm:$0xff]  ;;  %v1069_v36 = vmul.f32 %v7960_v23, %v1048_v26 }
  0xb5   : > { %v1032_v35 = vadd.f32 %v7965_v24, %v1016_v31  ;;  %v1154_v37 = vld [vmem:[#allocation2 + $0x10] sm:$0xff]  ;;  %v1122_v47 = vmul.f32 %v7975_v30, %v1101_v33 }
  0xb6   : > { %v998_v40 = vld [vmem:[#allocation2 + $0x25] sm:$0xff]  ;;  %v929_v43 = vpop.permute.xlu1 %928  ;;  %v924_v44 = vpop.permute.xlu0 %923  ;;  %v1175_v52 = vmul.f32 %v7970_v29, %v1154_v37  ;;  %v996_v57 = vld [vmem:[#allocation2 + $0x15] sm:$0xff]  ;;  %v997_v58 = vld [vmem:[#allocation2 + $0x1d] sm:$0xff] }
  0xb7   : > { %v1051_v41 = vld [vmem:[#allocation2 + $0x26] sm:$0xff]  ;;  %v1085_v46 = vadd.f32 %v1069_v36, %v1032_v35  ;;  %v1019_v48 = vmul.f32 %v7955_v22, %v998_v40  ;;  %979 = vst.msk [vmem:[#allocation2 + $0x48] sm:$0xff] %vm971_vm1, %v929_v43  ;;  %978 = vst.msk [vmem:[#allocation2 + $0x40] sm:$0xff] %vm971_vm1, %v924_v44  ;;  %v1017_v62 = vmul.f32 %v7955_v22, %v996_v57  ;;  %v1049_v63 = vld [vmem:[#allocation2 + $0x16] sm:$0xff] }
  0xb8   : > { %v1104_v42 = vld [vmem:[#allocation2 + $0x27] sm:$0xff]  ;;  %v1072_v53 = vmul.f32 %v7960_v23, %v1051_v41  ;;  %v1050_v1 = vld [vmem:[#allocation2 + $0x1e] sm:$0xff]  ;;  %v1018_v5 = vmul.f32 %v7955_v22, %v997_v58  ;;  %v1070_v6 = vmul.f32 %v7960_v23, %v1049_v63  ;;  %v1207_v9 = vld [vmem:[#allocation2 + $0x11] sm:$0xff] }
  0xb9   : > { %v1157_v49 = vld [vmem:[#allocation2 + $0x28] sm:$0xff]  ;;  %v1125_v54 = vmul.f32 %v7975_v30, %v1104_v42  ;;  %v1138_v59 = vadd.f32 %v1122_v47, %v1085_v46  ;;  %v1035_v60 = vadd.f32 %v7965_v24, %v1019_v48  ;;  %v1102_v2 = vld [vmem:[#allocation2 + $0x17] sm:$0xff]  ;;  %v1103_v7 = vld [vmem:[#allocation2 + $0x1f] sm:$0xff]  ;;  %v1033_v14 = vadd.f32 %v7965_v24, %v1017_v62 }
  0xba   : > { %v1209_v50 = vld [vmem:[#allocation2 + $0x21] sm:$0xff]  ;;  %v1178_v55 = vmul.f32 %v7970_v29, %v1157_v49  ;;  %v1155_v8 = vld [vmem:[#allocation2 + $0x18] sm:$0xff]  ;;  %v939_v10 = vpop.permute.xlu1 %938  ;;  %v934_v11 = vpop.permute.xlu0 %933  ;;  %v1071_v15 = vmul.f32 %v7960_v23, %v1050_v1  ;;  %v1034_v19 = vadd.f32 %v7965_v24, %v1018_v5  ;;  %v1123_v20 = vmul.f32 %v7975_v30, %v1102_v2  ;;  %v999_v35 = vld [vmem:[#allocation2 + $0x2d] sm:$0xff] }
  0xbb   : > { %v1262_v51 = vld [vmem:[#allocation2 + $0x22] sm:$0xff]  ;;  %v8010_v61 = vmul.f32 %v7983_v34, %v1209_v50  ;;  %v1191_v12 = vadd.f32 %v1175_v52, %v1138_v59  ;;  %v1088_v13 = vadd.f32 %v1072_v53, %v1035_v60  ;;  %v1208_v16 = vld [vmem:[#allocation2 + $0x19] sm:$0xff]  ;;  %981 = vst.msk [vmem:[#allocation2 + $0x78] sm:$0xff] %vm971_vm1, %v939_v10  ;;  %980 = vst.msk [vmem:[#allocation2 + $0x70] sm:$0xff] %vm971_vm1, %v934_v11 }
  0xbc   : > { %v1315_v56 = vld [vmem:[#allocation2 + $0x23] sm:$0xff]  ;;  %v8014_v3 = vmul.f32 %v7990_v38, %v1262_v51  ;;  %v1260_v17 = vld [vmem:[#allocation2 + $0x12] sm:$0xff]  ;;  %v1261_v18 = vld [vmem:[#allocation2 + $0x1a] sm:$0xff]  ;;  %v1124_v21 = vmul.f32 %v7975_v30, %v1103_v7  ;;  %v1228_v25 = vmul.f32 %v7983_v34, %v1207_v9  ;;  %v1086_v31 = vadd.f32 %v1070_v6, %v1033_v14 }
  0xbd   : > { %v8017_v4 = vmul.f32 %v7995_v39, %v1315_v56  ;;  %v1313_v26 = vld [vmem:[#allocation2 + $0x13] sm:$0xff]  ;;  %v1314_v27 = vld [vmem:[#allocation2 + $0x1b] sm:$0xff]  ;;  %v1141_v28 = vadd.f32 %v1125_v54, %v1088_v13  ;;  %v1176_v32 = vmul.f32 %v7970_v29, %v1155_v8  ;;  %v1229_v33 = vmul.f32 %v7983_v34, %v1208_v16  ;;  %v1210_v59 = vld [vmem:[#allocation2 + $0x29] sm:$0xff] }
  0xbe   : > { %v1000_v36 = vld [vmem:[#allocation2 + $0x35] sm:$0xff]  ;;  %v1087_v37 = vadd.f32 %v1071_v15, %v1034_v19  ;;  %v1244_v40 = vadd.f32 %v1228_v25, %v1191_v12  ;;  %v1281_v41 = vmul.f32 %v7990_v38, %v1260_v17  ;;  %v1282_v42 = vmul.f32 %v7990_v38, %v1261_v18  ;;  %v949_v46 = vpop.permute.xlu1 %948  ;;  %v944_v47 = vpop.permute.xlu0 %943  ;;  %v1263_v15 = vld [vmem:[#allocation2 + $0x2a] sm:$0xff] }
  0xbf   : > { %v1052_v43 = vld [vmem:[#allocation2 + $0x2e] sm:$0xff]  ;;  %v1053_v44 = vld [vmem:[#allocation2 + $0x36] sm:$0xff]  ;;  %v1139_v48 = vadd.f32 %v1123_v20, %v1086_v31  ;;  %v1334_v49 = vmul.f32 %v7995_v39, %v1313_v26  ;;  %v1335_v50 = vmul.f32 %v7995_v39, %v1314_v27  ;;  %v1020_v51 = vmul.f32 %v7955_v22, %v999_v35  ;;  %983 = vst.msk [vmem:[#allocation2 + $0x88] sm:$0xff] %vm971_vm1, %v949_v46 }
  0xc0   : > { %v1105_v52 = vld [vmem:[#allocation2 + $0x2f] sm:$0xff]  ;;  %982 = vst.msk [vmem:[#allocation2 + $0x80] sm:$0xff] %vm971_vm1, %v944_v47  ;;  %v1194_v53 = vadd.f32 %v1178_v55, %v1141_v28  ;;  %v1140_v54 = vadd.f32 %v1124_v21, %v1087_v37  ;;  %v1297_v56 = vadd.f32 %v1281_v41, %v1244_v40  ;;  %v1021_v57 = vmul.f32 %v7955_v22, %v1000_v36  ;;  %v1106_v58 = vld [vmem:[#allocation2 + $0x37] sm:$0xff] }
  0xc1   : > { %v1192_v60 = vadd.f32 %v1176_v32, %v1139_v48  ;;  %v1036_v62 = vadd.f32 %v7965_v24, %v1020_v51  ;;  %v1073_v63 = vmul.f32 %v7960_v23, %v1052_v43  ;;  %v1074_v1 = vmul.f32 %v7960_v23, %v1053_v44  ;;  %v1158_v7 = vld [vmem:[#allocation2 + $0x30] sm:$0xff]  ;;  %v1159_v11 = vld [vmem:[#allocation2 + $0x38] sm:$0xff]  ;;  %v1161_v43 = vld [vmem:[#allocation2 + $0x48] sm:$0xff] }
  0xc2   : > { %v1193_v2 = vadd.f32 %v7998_v45, %v1140_v54  ;;  %v1350_v5 = vadd.f32 %v1334_v49, %v1297_v56  ;;  %v1037_v6 = vadd.f32 %v7965_v24, %v1021_v57  ;;  %v1126_v55 = vmul.f32 %v7975_v30, %v1105_v52  ;;  %v959_v8 = vpop.permute.xlu1 %958  ;;  %v954_v9 = vpop.permute.xlu0 %953  ;;  %v1211_v18 = vld [vmem:[#allocation2 + $0x31] sm:$0xff]  ;;  %v1214_v48 = vld [vmem:[#allocation2 + $0x49] sm:$0xff] }
  0xc3   : > { %v1245_v10 = vadd.f32 %v1229_v33, %v1192_v60  ;;  %v1089_v12 = vadd.f32 %v1073_v63, %v1036_v62  ;;  %v1127_v13 = vmul.f32 %v7975_v30, %v1106_v58  ;;  %v1231_v14 = vmul.f32 %v7983_v34, %v1210_v59  ;;  %985 = vst.msk [vmem:[#allocation2 + $0x98] sm:$0xff] %vm971_vm1, %v959_v8  ;;  %v1264_v26 = vld [vmem:[#allocation2 + $0x32] sm:$0xff]  ;;  %v1267_v49 = vld [vmem:[#allocation2 + $0x4a] sm:$0xff] }
  0xc4   : > { %984 = vst.msk [vmem:[#allocation2 + $0x90] sm:$0xff] %vm971_vm1, %v954_v9  ;;  %v1246_v45 = vadd.f32 %v8010_v61, %v1193_v2  ;;  %vm1366_vm2 = vcmp.ge.f32.partialorder %v1350_v5, 0.0  ;;  %v1382_v16 = vmul.f32 0.2, %v1350_v5  ;;  %v1090_v17 = vadd.f32 %v1074_v1, %v1037_v6  ;;  %v1316_v27 = vld [vmem:[#allocation2 + $0x2b] sm:$0xff]  ;;  %v1317_v35 = vld [vmem:[#allocation2 + $0x33] sm:$0xff] }
  0xc5   : > { %v1298_v19 = vadd.f32 %v1282_v42, %v1245_v10  ;;  %v1142_v20 = vadd.f32 %v1126_v55, %v1089_v12  ;;  %v1179_v21 = vmul.f32 %v7970_v29, %v1158_v7  ;;  %v1247_v25 = vadd.f32 %v1231_v14, %v1194_v53  ;;  %v1001_v53 = vld [vmem:[#allocation2 + $0x3d] sm:$0xff]  ;;  %v1002_v58 = vld [vmem:[#allocation2 + $0x45] sm:$0xff] }
  0xc6   : > { %v1299_v28 = vadd.f32 %v8014_v3, %v1246_v45  ;;  %v1398_v31 = vsel %vm1366_vm2, %v1350_v5, %v1382_v16  ;;  %v1180_v32 = vmul.f32 %v7970_v29, %v1159_v11  ;;  %v1284_v33 = vmul.f32 %v7990_v38, %v1263_v15  ;;  %v969_v61 = vpop.permute.xlu1 %968  ;;  %v964_v36 = vpop.permute.xlu0 %963  ;;  %v1054_v1 = vld [vmem:[#allocation2 + $0x3e] sm:$0xff]  ;;  %v1055_v2 = vld [vmem:[#allocation2 + $0x46] sm:$0xff] }
  0xc7   : > { %v1351_v37 = vadd.f32 %v1335_v50, %v1298_v19  ;;  %1414 = vst.msk [vmem:[#allocation2 + $0x10] sm:$0xff] %vm971_vm1, %v1398_v31  ;;  %v1143_v40 = vadd.f32 %v1127_v13, %v1090_v17  ;;  %v1195_v41 = vadd.f32 %v1179_v21, %v1142_v20  ;;  %v1232_v42 = vmul.f32 %v7983_v34, %v1211_v18  ;;  %v1107_v7 = vld [vmem:[#allocation2 + $0x3f] sm:$0xff]  ;;  %v1108_v12 = vld [vmem:[#allocation2 + $0x47] sm:$0xff] }
  0xc8   : > { %987 = vst.msk [vmem:[#allocation2 + $0xa8] sm:$0xff] %vm971_vm1, %v969_v61  ;;  %986 = vst.msk [vmem:[#allocation2 + $0xa0] sm:$0xff] %vm971_vm1, %v964_v36  ;;  %v1352_v3 = vadd.f32 %v8017_v4, %v1299_v28  ;;  %v1285_v44 = vmul.f32 %v7990_v38, %v1264_v26  ;;  %v1300_v46 = vadd.f32 %v1284_v33, %v1247_v25  ;;  %v1320_v4 = vld [vmem:[#allocation2 + $0x4b] sm:$0xff]  ;;  %v1160_v13 = vld [vmem:[#allocation2 + $0x40] sm:$0xff] }
  0xc9   : > { %v1337_v47 = vmul.f32 %v7995_v39, %v1316_v27  ;;  %vm1367_vm3 = vcmp.ge.f32.partialorder %v1351_v37, 0.0  ;;  %v1383_v50 = vmul.f32 0.2, %v1351_v37  ;;  %v1248_v51 = vadd.f32 %v1232_v42, %v1195_v41  ;;  %v1212_v14 = vld [vmem:[#allocation2 + $0x39] sm:$0xff]  ;;  %v1213_v18 = vld [vmem:[#allocation2 + $0x41] sm:$0xff]  ;;  %v1003_v61 = vld [vmem:[#allocation2 + $0x6d] sm:$0xff] }
  0xca   : > { %v1338_v52 = vmul.f32 %v7995_v39, %v1317_v35  ;;  %vm1368_vm4 = vcmp.ge.f32.partialorder %v1352_v3, 0.0  ;;  %v1384_v54 = vmul.f32 0.2, %v1352_v3  ;;  %v8063_v57 = vmul.f32 %v7970_v29, %v1161_v43  ;;  %v1265_v19 = vld [vmem:[#allocation2 + $0x3a] sm:$0xff]  ;;  %v1266_v26 = vld [vmem:[#allocation2 + $0x42] sm:$0xff] }
  0xcb   : > { %v1353_v56 = vadd.f32 %v1337_v47, %v1300_v46  ;;  %v1399_v59 = vsel %vm1367_vm3, %v1351_v37, %v1383_v50  ;;  %v1301_v60 = vadd.f32 %v1285_v44, %v1248_v51  ;;  %v8066_v62 = vmul.f32 %v7983_v34, %v1214_v48  ;;  %v1318_v27 = vld [vmem:[#allocation2 + $0x3b] sm:$0xff]  ;;  %v1319_v35 = vld [vmem:[#allocation2 + $0x43] sm:$0xff] }
  0xcc   : > { %v8069_v63 = vmul.f32 %v7990_v38, %v1267_v49  ;;  %v1400_v5 = vsel %vm1368_vm4, %v1352_v3, %v1384_v54  ;;  %1415 = vst.msk [vmem:[#allocation2 + $0x18] sm:$0xff] %vm971_vm1, %v1399_v59  ;;  %v1022_v55 = vmul.f32 %v7955_v22, %v1001_v53  ;;  %v8075_v9 = vmul.f32 %v7995_v39, %v1320_v4  ;;  %v1004_v36 = vld [vmem:[#allocation2 + $0x75] sm:$0xff] }
  0xcd   : > { %vm1369_vm5 = vcmp.ge.f32.partialorder %v1353_v56, 0.0  ;;  %v1385_v6 = vmul.f32 0.2, %v1353_v56  ;;  %1416 = vst.msk [vmem:[#allocation2 + $0x20] sm:$0xff] %vm971_vm1, %v1400_v5  ;;  %v1354_v8 = vadd.f32 %v1338_v52, %v1301_v60  ;;  %v1196_v10 = vadd.f32 %v1180_v32, %v1143_v40  ;;  %v1163_v43 = vld [vmem:[#allocation2 + $0x78] sm:$0xff]  ;;  %v1056_v3 = vld [vmem:[#allocation2 + $0x6e] sm:$0xff] }
  0xce   : > { %v1023_v11 = vmul.f32 %v7955_v22, %v1002_v58  ;;  %v1038_v45 = vadd.f32 %v7965_v24, %v1022_v55  ;;  %v1075_v16 = vmul.f32 %v7960_v23, %v1054_v1  ;;  %v1076_v17 = vmul.f32 %v7960_v23, %v1055_v2  ;;  %v1057_v49 = vld [vmem:[#allocation2 + $0x76] sm:$0xff] }
  0xcf   : > { %v1401_v15 = vsel %vm1369_vm5, %v1353_v56, %v1385_v6  ;;  %vm1370_vm6 = vcmp.ge.f32.partialorder %v1354_v8, 0.0  ;;  %v1386_v20 = vmul.f32 0.2, %v1354_v8  ;;  %v1128_v25 = vmul.f32 %v7975_v30, %v1107_v7  ;;  %v1109_v54 = vld [vmem:[#allocation2 + $0x6f] sm:$0xff]  ;;  %v1110_v56 = vld [vmem:[#allocation2 + $0x77] sm:$0xff] }
  0xd0   : > { %1417 = vst.msk [vmem:[#allocation2 + $0x28] sm:$0xff] %vm971_vm1, %v1401_v15  ;;  %v1039_v21 = vadd.f32 %v7965_v24, %v1023_v11  ;;  %v1091_v28 = vadd.f32 %v1075_v16, %v1038_v45  ;;  %v1129_v31 = vmul.f32 %v7975_v30, %v1108_v12  ;;  %v1181_v32 = vmul.f32 %v7970_v29, %v1160_v13  ;;  %v1162_v1 = vld [vmem:[#allocation2 + $0x70] sm:$0xff]  ;;  %v1005_v16 = vld [vmem:[#allocation2 + $0x7d] sm:$0xff] }
  0xd1   : > { %v1233_v33 = vmul.f32 %v7983_v34, %v1212_v14  ;;  %v1402_v37 = vsel %vm1370_vm6, %v1354_v8, %v1386_v20  ;;  %v1234_v41 = vmul.f32 %v7983_v34, %v1213_v18  ;;  %v1286_v42 = vmul.f32 %v7990_v38, %v1265_v19  ;;  %v1215_v7 = vld [vmem:[#allocation2 + $0x71] sm:$0xff] }
  0xd2   : > { %v1092_v40 = vadd.f32 %v1076_v17, %v1039_v21  ;;  %1418 = vst.msk [vmem:[#allocation2 + $0x30] sm:$0xff] %vm971_vm1, %v1402_v37  ;;  %v1144_v44 = vadd.f32 %v1128_v25, %v1091_v28  ;;  %v1287_v47 = vmul.f32 %v7990_v38, %v1266_v26  ;;  %v1339_v48 = vmul.f32 %v7995_v39, %v1318_v27  ;;  %v1268_v13 = vld [vmem:[#allocation2 + $0x72] sm:$0xff]  ;;  %v1006_v17 = vld [vmem:[#allocation2 + $0x85] sm:$0xff] }
  0xd3   : > { %v1249_v46 = vadd.f32 %v1233_v33, %v1196_v10  ;;  %v1340_v51 = vmul.f32 %v7995_v39, %v1319_v35  ;;  %v1024_v52 = vmul.f32 %v7955_v22, %v1003_v61  ;;  %v1025_v53 = vmul.f32 %v7955_v22, %v1004_v36  ;;  %v1321_v21 = vld [vmem:[#allocation2 + $0x73] sm:$0xff]  ;;  %v1058_v25 = vld [vmem:[#allocation2 + $0x7e] sm:$0xff]  ;;  %v1059_v61 = vld [vmem:[#allocation2 + $0x86] sm:$0xff] }
  0xd4   : > { %v1145_v50 = vadd.f32 %v1129_v31, %v1092_v40  ;;  %v1197_v4 = vadd.f32 %v1181_v32, %v1144_v44  ;;  %v1184_v59 = vmul.f32 %v7970_v29, %v1163_v43  ;;  %v1077_v60 = vmul.f32 %v7960_v23, %v1056_v3  ;;  %v1112_v44 = vld [vmem:[#allocation2 + $0x87] sm:$0xff] }
  0xd5   : > { %v1302_v58 = vadd.f32 %v1286_v42, %v1249_v46  ;;  %v1040_v5 = vadd.f32 %v7965_v24, %v1024_v52  ;;  %v1041_v6 = vadd.f32 %v7965_v24, %v1025_v53  ;;  %v1078_v55 = vmul.f32 %v7960_v23, %v1057_v49  ;;  %v1216_v49 = vld [vmem:[#allocation2 + $0x79] sm:$0xff] }
  0xd6   : > { %v1198_v2 = vadd.f32 %v8063_v57, %v1145_v50  ;;  %v1250_v8 = vadd.f32 %v1234_v41, %v1197_v4  ;;  %v1130_v11 = vmul.f32 %v7975_v30, %v1109_v54  ;;  %v1131_v12 = vmul.f32 %v7975_v30, %v1110_v56  ;;  %v1111_v41 = vld [vmem:[#allocation2 + $0x7f] sm:$0xff] }
  0xd7   : > { %v1355_v10 = vadd.f32 %v1339_v48, %v1302_v58  ;;  %v1093_v15 = vadd.f32 %v1077_v60, %v1040_v5  ;;  %v1094_v45 = vadd.f32 %v1078_v55, %v1041_v6  ;;  %v1183_v57 = vmul.f32 %v7970_v29, %v1162_v1  ;;  %v1164_v48 = vld [vmem:[#allocation2 + $0x80] sm:$0xff] }
  0xd8   : > { %v1251_v14 = vadd.f32 %v8066_v62, %v1198_v2  ;;  %v1303_v18 = vadd.f32 %v1287_v47, %v1250_v8  ;;  %v1236_v20 = vmul.f32 %v7983_v34, %v1215_v7  ;;  %v1289_v31 = vmul.f32 %v7990_v38, %v1268_v13  ;;  %v1217_v56 = vld [vmem:[#allocation2 + $0x81] sm:$0xff]  ;;  %v1007_v8 = vld [vmem:[#allocation2 + $0x8d] sm:$0xff] }
  0xd9   : > { %vm1371_vm7 = vcmp.ge.f32.partialorder %v1355_v10, 0.0  ;;  %v1387_v19 = vmul.f32 0.2, %v1355_v10  ;;  %v1146_v27 = vadd.f32 %v1130_v11, %v1093_v15  ;;  %v1147_v28 = vadd.f32 %v1131_v12, %v1094_v45  ;;  %v1269_v2 = vld [vmem:[#allocation2 + $0x7a] sm:$0xff]  ;;  %v1270_v5 = vld [vmem:[#allocation2 + $0x82] sm:$0xff] }
  0xda   : > { %v1304_v26 = vadd.f32 %v8069_v63, %v1251_v14  ;;  %v1356_v62 = vadd.f32 %v1340_v51, %v1303_v18  ;;  %v1026_v33 = vmul.f32 %v7955_v22, %v1005_v16  ;;  %v1027_v35 = vmul.f32 %v7955_v22, %v1006_v17  ;;  %v1165_v51 = vld [vmem:[#allocation2 + $0x88] sm:$0xff]  ;;  %v1322_v7 = vld [vmem:[#allocation2 + $0x7b] sm:$0xff] }
  0xdb   : > { %v1403_v32 = vsel %vm1371_vm7, %v1355_v10, %v1387_v19  ;;  %v1199_v37 = vadd.f32 %v1183_v57, %v1146_v27  ;;  %v1342_v40 = vmul.f32 %v7995_v39, %v1321_v21  ;;  %v1079_v63 = vmul.f32 %v7960_v23, %v1058_v25  ;;  %v1323_v14 = vld [vmem:[#allocation2 + $0x83] sm:$0xff]  ;;  %v1008_v15 = vld [vmem:[#allocation2 + $0x95] sm:$0xff] }
  0xdc   : > { %v1357_v36 = vadd.f32 %v8075_v9, %v1304_v26  ;;  %1419 = vst.msk [vmem:[#allocation2 + $0x38] sm:$0xff] %vm971_vm1, %v1403_v32  ;;  %vm1372_vm8 = vcmp.ge.f32.partialorder %v1356_v62, 0.0  ;;  %v1388_v42 = vmul.f32 0.2, %v1356_v62  ;;  %v1042_v43 = vadd.f32 %v7965_v24, %v1026_v33  ;;  %v1060_v18 = vld [vmem:[#allocation2 + $0x8e] sm:$0xff]  ;;  %v1061_v25 = vld [vmem:[#allocation2 + $0x96] sm:$0xff] }
  0xdd   : > { %v1043_v3 = vadd.f32 %v7965_v24, %v1027_v35  ;;  %v1252_v47 = vadd.f32 %v1236_v20, %v1199_v37  ;;  %v1080_v9 = vmul.f32 %v7960_v23, %v1059_v61  ;;  %v1200_v52 = vadd.f32 %v1184_v59, %v1147_v28  ;;  %v1113_v26 = vld [vmem:[#allocation2 + $0x8f] sm:$0xff]  ;;  %v1114_v32 = vld [vmem:[#allocation2 + $0x97] sm:$0xff]  ;;  %v7496_v35 = vld [vmem:[%s9458_s5] sm:$0xff]  }
  0xde   : > { %vm1373_vm9 = vcmp.ge.f32.partialorder %v1357_v36, 0.0  ;;  %v1389_v46 = vmul.f32 0.2, %v1357_v36  ;;  %v1404_v50 = vsel %vm1372_vm8, %v1356_v62, %v1388_v42  ;;  %v1095_v53 = vadd.f32 %v1079_v63, %v1042_v43  ;;  %v1218_v33 = vld [vmem:[#allocation2 + $0x89] sm:$0xff]  ;;  %6789 = vmatprep.subr.bf16.mxu0 %v7496_v35 }
  0xdf   : > { %v1132_v54 = vmul.f32 %v7975_v30, %v1111_v41  ;;  %1420 = vst.msk [vmem:[#allocation2 + $0x40] sm:$0xff] %vm971_vm1, %v1404_v50  ;;  %v1305_v58 = vadd.f32 %v1289_v31, %v1252_v47  ;;  %v1096_v60 = vadd.f32 %v1080_v9, %v1043_v3  ;;  %v1133_v1 = vmul.f32 %v7975_v30, %v1112_v44  ;;  %v1166_v3 = vld [vmem:[#allocation2 + $0x90] sm:$0xff] }
  0xe0   : > { %v1405_v4 = vsel %vm1373_vm9, %v1357_v36, %v1389_v46  ;;  %v1185_v55 = vmul.f32 %v7970_v29, %v1164_v48  ;;  %v1237_v59 = vmul.f32 %v7983_v34, %v1216_v49  ;;  %v1186_v11 = vmul.f32 %v7970_v29, %v1165_v51  ;;  %v1271_v44 = vld [vmem:[#allocation2 + $0x8a] sm:$0xff]  ;;  %6790 = vmatpush3.bf16.msra.mxu0 %v7496_v35 }
  0xe1   : > { %1421 = vst.msk [vmem:[#allocation2 + $0x48] sm:$0xff] %vm971_vm1, %v1405_v4  ;;  %v1148_v6 = vadd.f32 %v1132_v54, %v1095_v53  ;;  %v1358_v10 = vadd.f32 %v1342_v40, %v1305_v58  ;;  %v1149_v12 = vadd.f32 %v1133_v1, %v1096_v60  ;;  %v1238_v13 = vmul.f32 %v7983_v34, %v1217_v56  ;;  %v1219_v48 = vld [vmem:[#allocation2 + $0x91] sm:$0xff] }
  0xe2   : > { %v1253_v57 = vadd.f32 %v1237_v59, %v1200_v52  ;;  %v1290_v16 = vmul.f32 %v7990_v38, %v1269_v2  ;;  %v1291_v17 = vmul.f32 %v7990_v38, %v1270_v5  ;;  %v1343_v20 = vmul.f32 %v7995_v39, %v1322_v7  ;;  %v1324_v53 = vld [vmem:[#allocation2 + $0x8b] sm:$0xff]  ;;  %v1167_v2 = vld [vmem:[#allocation2 + $0x98] sm:$0xff] }
  0xe3   : > { %v1201_v45 = vadd.f32 %v1185_v55, %v1148_v6  ;;  %vm1374_vm10 = vcmp.ge.f32.partialorder %v1358_v10, 0.0  ;;  %v1390_v19 = vmul.f32 0.2, %v1358_v10  ;;  %v1028_v21 = vmul.f32 %v7955_v22, %v1007_v8  ;;  %v1272_v6 = vld [vmem:[#allocation2 + $0x92] sm:$0xff] }
  0xe4   : > { %v1306_v28 = vadd.f32 %v1290_v16, %v1253_v57  ;;  %v1344_v31 = vmul.f32 %v7995_v39, %v1323_v14  ;;  %v1029_v62 = vmul.f32 %v7955_v22, %v1008_v15  ;;  %v1202_v36 = vadd.f32 %v1186_v11, %v1149_v12  ;;  %v1325_v55 = vld [vmem:[#allocation2 + $0x93] sm:$0xff]  ;;  %v1009_v11 = vld [vmem:[#allocation2 + $0x9d] sm:$0xff]  ;;  %v1010_v12 = vld [vmem:[#allocation2 + $0xa5] sm:$0xff] }
  0xe5   : > { %v1254_v27 = vadd.f32 %v1238_v13, %v1201_v45  ;;  %v1406_v61 = vsel %vm1374_vm10, %v1358_v10, %v1390_v19  ;;  %v1044_v37 = vadd.f32 %v7965_v24, %v1028_v21  ;;  %v1081_v40 = vmul.f32 %v7960_v23, %v1060_v18  ;;  %v7497_v13 = vld [vmem:[%s9458_s5 + $0x8] sm:$0xff]  }
  0xe6   : > { %1422 = vst.msk [vmem:[#allocation2 + $0x70] sm:$0xff] %vm971_vm1, %v1406_v61  ;;  %v1359_v41 = vadd.f32 %v1343_v20, %v1306_v28  ;;  %v1045_v42 = vadd.f32 %v7965_v24, %v1029_v62  ;;  %v1082_v43 = vmul.f32 %v7960_v23, %v1061_v25  ;;  %v1134_v47 = vmul.f32 %v7975_v30, %v1113_v26  ;;  %v1063_v18 = vld [vmem:[#allocation2 + $0xa6] sm:$0xff]  ;;  %v1220_v26 = vld [vmem:[#allocation2 + $0x99] sm:$0xff] }
  0xe7   : > { %v1307_v63 = vadd.f32 %v1291_v17, %v1254_v27  ;;  %v1097_v46 = vadd.f32 %v1081_v40, %v1044_v37  ;;  %v1135_v9 = vmul.f32 %v7975_v30, %v1114_v32  ;;  %v1239_v49 = vmul.f32 %v7983_v34, %v1218_v33  ;;  %v1062_v17 = vld [vmem:[#allocation2 + $0x9e] sm:$0xff]  ;;  %6791 = vmatprep.subr.bf16.mxu0 %v7497_v13  ;;  %v1169_v20 = vld [vmem:[#allocation2 + $0xa8] sm:$0xff]  ;;  %v7498_v27 = vld [vmem:[%s9458_s5 + $0x10] sm:$0xff]  }
  0xe8   : > { %vm1375_vm11 = vcmp.ge.f32.partialorder %v1359_v41, 0.0  ;;  %v1391_v51 = vmul.f32 0.2, %v1359_v41  ;;  %v1098_v52 = vadd.f32 %v1082_v43, %v1045_v42  ;;  %v1187_v56 = vmul.f32 %v7970_v29, %v1166_v3  ;;  %6792 = vmatpush3.bf16.msra.mxu0 %v7497_v13  ;;  %v1115_v32 = vld [vmem:[#allocation2 + $0x9f] sm:$0xff]  ;;  %v1116_v33 = vld [vmem:[#allocation2 + $0xa7] sm:$0xff]  ;;  %v1463_v3 = vld [vmem:[#allocation2 + $0x16] sm:$0xff] }
  0xe9   : > { %v1360_v50 = vadd.f32 %v1344_v31, %v1307_v63  ;;  %v1150_v54 = vadd.f32 %v1134_v47, %v1097_v46  ;;  %v1255_v4 = vadd.f32 %v1239_v49, %v1202_v36  ;;  %v1292_v58 = vmul.f32 %v7990_v38, %v1271_v44  ;;  %v1273_v37 = vld [vmem:[#allocation2 + $0x9a] sm:$0xff]  ;;  %6793 = vmatprep.subr.bf16.mxu0 %v7498_v27 }
  0xea   : > { %v1407_v1 = vsel %vm1375_vm11, %v1359_v41, %v1391_v51  ;;  %v1240_v5 = vmul.f32 %v7983_v34, %v1219_v48  ;;  %v1151_v59 = vadd.f32 %v1135_v9, %v1098_v52  ;;  %v1345_v10 = vmul.f32 %v7995_v39, %v1324_v53  ;;  %v1168_v42 = vld [vmem:[#allocation2 + $0xa0] sm:$0xff]  ;;  %v7499_v13 = vld [vmem:[%s9458_s5 + $0x18] sm:$0xff]  }
  0xeb   : > { %vm1376_vm12 = vcmp.ge.f32.partialorder %v1360_v50, 0.0  ;;  %v1392_v60 = vmul.f32 0.2, %v1360_v50  ;;  %1423 = vst.msk [vmem:[#allocation2 + $0x78] sm:$0xff] %vm971_vm1, %v1407_v1  ;;  %v1203_v7 = vadd.f32 %v1187_v56, %v1150_v54  ;;  %v1308_v8 = vadd.f32 %v1292_v58, %v1255_v4  ;;  %v1326_v9 = vld [vmem:[#allocation2 + $0x9b] sm:$0xff]  ;;  %v1465_v48 = vld [vmem:[#allocation2 + $0x26] sm:$0xff] }
  0xec   : > { %v1188_v15 = vmul.f32 %v7970_v29, %v1167_v2  ;;  %v1293_v57 = vmul.f32 %v7990_v38, %v1272_v6  ;;  %v1346_v19 = vmul.f32 %v7995_v39, %v1325_v55  ;;  %v1030_v21 = vmul.f32 %v7955_v22, %v1009_v11  ;;  %6794 = vmatpush3.bf16.msra.mxu0 %v7498_v27  ;;  %v1221_v51 = vld [vmem:[#allocation2 + $0xa1] sm:$0xff]  ;;  %v1462_v54 = vld [vmem:[#allocation2 + $0xe] sm:$0xff] }
  0xed   : > { %v1408_v14 = vsel %vm1376_vm12, %v1360_v50, %v1392_v60  ;;  %v1256_v45 = vadd.f32 %v1240_v5, %v1203_v7  ;;  %v1361_v16 = vadd.f32 %v1345_v10, %v1308_v8  ;;  %v1031_v25 = vmul.f32 %v7955_v22, %v1010_v12  ;;  %v1222_v50 = vld [vmem:[#allocation2 + $0xa9] sm:$0xff]  ;;  %6795 = vmatprep.subr.bf16.mxu0 %v7499_v13 }
  0xee   : > { %1424 = vst.msk [vmem:[#allocation2 + $0x80] sm:$0xff] %vm971_vm1, %v1408_v14  ;;  %v1204_v62 = vadd.f32 %v1188_v15, %v1151_v59  ;;  %v1046_v35 = vadd.f32 %v7965_v24, %v1030_v21  ;;  %v1083_v36 = vmul.f32 %v7960_v23, %v1062_v17  ;;  %v1084_v22 = vmul.f32 %v7960_v23, %v1063_v18  ;;  %v1464_v23 = vld [vmem:[#allocation2 + $0x1e] sm:$0xff]  ;;  %v1275_v56 = vld [vmem:[#allocation2 + $0xaa] sm:$0xff] }
  0xef   : > { %v1309_v28 = vadd.f32 %v1293_v57, %v1256_v45  ;;  %vm1377_vm13 = vcmp.ge.f32.partialorder %v1361_v16, 0.0  ;;  %v1393_v31 = vmul.f32 0.2, %v1361_v16  ;;  %v1047_v61 = vadd.f32 %v7965_v24, %v1031_v25  ;;  %v1528_v59 = vld [vmem:[#allocation2 + $0x17] sm:$0xff]  ;;  %v1530_v12 = vld [vmem:[#allocation2 + $0x27] sm:$0xff] }
  0xf0   : > { %v1190_v41 = vmul.f32 %v7970_v29, %v1169_v20  ;;  %v1241_v43 = vmul.f32 %v7983_v34, %v1220_v26  ;;  %v1099_v44 = vadd.f32 %v1083_v36, %v1046_v35  ;;  %v1136_v24 = vmul.f32 %v7975_v30, %v1115_v32  ;;  %v1328_v15 = vld [vmem:[#allocation2 + $0xab] sm:$0xff]  ;;  %v1327_v45 = vld [vmem:[#allocation2 + $0xa3] sm:$0xff]  ;;  %v1593_v26 = vld [vmem:[#allocation2 + $0x18] sm:$0xff]  ;;  %6796 = vmatpush3.bf16.msra.mxu0 %v7499_v13 }
  0xf1   : > { %v1362_v40 = vadd.f32 %v1346_v19, %v1309_v28  ;;  %v1409_v63 = vsel %vm1377_vm13, %v1361_v16, %v1393_v31  ;;  %v1100_v46 = vadd.f32 %v1084_v22, %v1047_v61  ;;  %v1137_v47 = vmul.f32 %v7975_v30, %v1116_v33  ;;  %v1274_v30 = vld [vmem:[#allocation2 + $0xa2] sm:$0xff]  ;;  %v1527_v16 = vld [vmem:[#allocation2 + $0xf] sm:$0xff] }
  0xf2   : > { %1425 = vst.msk [vmem:[#allocation2 + $0x88] sm:$0xff] %vm971_vm1, %v1409_v63  ;;  %v1257_v52 = vadd.f32 %v1241_v43, %v1204_v62  ;;  %v1294_v53 = vmul.f32 %v7990_v38, %v1273_v37  ;;  %v1152_v4 = vadd.f32 %v1136_v24, %v1099_v44  ;;  %v1189_v60 = vmul.f32 %v7970_v29, %v1168_v42  ;;  %v1529_v29 = vld [vmem:[#allocation2 + $0x1f] sm:$0xff]  ;;  %v1595_v32 = vld [vmem:[#allocation2 + $0x28] sm:$0xff]  ;;  %v1592_v35 = vld [vmem:[#allocation2 + $0x10] sm:$0xff] }
  0xf3   : > { %vm1378_vm14 = vcmp.ge.f32.partialorder %v1362_v40, 0.0  ;;  %v1394_v49 = vmul.f32 0.2, %v1362_v40  ;;  %v1153_v58 = vadd.f32 %v1137_v47, %v1100_v46  ;;  %v1478_v1 = vpack.c.bf16 %v1463_v3, %v1462_v54  ;;  %v7500_v20 = vld [vmem:[%s9458_s5 + $0x20] sm:$0xff]   ;;  %v7501_v61 = vld [vmem:[%s9458_s5 + $0x28] sm:$0xff]   ;;  %v1722_v44 = vld [vmem:[#allocation2 + $0x12] sm:$0xff] }
  0xf4   : > { %v1310_v5 = vadd.f32 %v1294_v53, %v1257_v52  ;;  %v1347_v6 = vmul.f32 %v7995_v39, %v1326_v9  ;;  %v1479_v55 = vpack.c.bf16 %v1465_v48, %v1464_v23  ;;  %v1243_v7 = vmul.f32 %v7983_v34, %v1222_v50  ;;  %6797 = vmatprep.subr.bf16.mxu0 %v7500_v20  ;;  %v1658_v63 = vld [vmem:[#allocation2 + $0x19] sm:$0xff]  ;;  %v1659_v3 = vld [vmem:[#allocation2 + $0x21] sm:$0xff]  ;;  %v1430_v50 = vld [vmem:[#allocation2 + $0xd] sm:$0xff] }
  0xf5   : > { %v1410_v2 = vsel %vm1378_vm14, %v1362_v40, %v1394_v49  ;;  %v1205_v8 = vadd.f32 %v1189_v60, %v1152_v4  ;;  %v1206_v10 = vadd.f32 %v1190_v41, %v1153_v58  ;;  %v1242_v11 = vmul.f32 %v7983_v34, %v1221_v51  ;;  %1494 = vrot.lane.b32.xlu0 %v1478_v1, %s7714_s6  ;;  %v1657_v40 = vld [vmem:[#allocation2 + $0x11] sm:$0xff]  ;;  %v1660_v41 = vld [vmem:[#allocation2 + $0x29] sm:$0xff]  ;;  %v1723_v46 = vld [vmem:[#allocation2 + $0x1a] sm:$0xff] }
  0xf6   : > { %1426 = vst.msk [vmem:[#allocation2 + $0x90] sm:$0xff] %vm971_vm1, %v1410_v2  ;;  %v1296_v14 = vmul.f32 %v7990_v38, %v1275_v56  ;;  %v1363_v57 = vadd.f32 %v1347_v6, %v1310_v5  ;;  %1496 = vrot.lane.b32.xlu1 %v1479_v55, %s7714_s6  ;;  %v1295_v34 = vmul.f32 %v7990_v38, %v1274_v30  ;;  %v1594_v38 = vld [vmem:[#allocation2 + $0x20] sm:$0xff]  ;;  %v1725_v49 = vld [vmem:[#allocation2 + $0x2a] sm:$0xff]  ;;  %v1431_v51 = vld [vmem:[#allocation2 + $0x15] sm:$0xff]  ;;  %vm1583_vm3 = vcmask 392448  }
  0xf7   : > { %v1258_v17 = vadd.f32 %v1242_v11, %v1205_v8  ;;  %v1259_v18 = vadd.f32 %v1243_v7, %v1206_v10  ;;  %v1543_v19 = vpack.c.bf16 %v1528_v59, %v1527_v16  ;;  %v1544_v25 = vpack.c.bf16 %v1530_v12, %v1529_v29  ;;  %6798 = vmatpush3.bf16.msra.mxu0 %v7500_v20  ;;  %v1432_v24 = vld [vmem:[#allocation2 + $0x1d] sm:$0xff]  ;;  %v1433_v47 = vld [vmem:[#allocation2 + $0x25] sm:$0xff]  ;;  %v7502_v52 = vld [vmem:[%s9458_s5 + $0x30] sm:$0xff]  }
  0xf8   : > { %vm1379_vm15 = vcmp.ge.f32.partialorder %v1363_v57, 0.0  ;;  %v1395_v21 = vmul.f32 0.2, %v1363_v57  ;;  %v1349_v27 = vmul.f32 %v7995_v39, %v1328_v15  ;;  %v1348_v62 = vmul.f32 %v7995_v39, %v1327_v45  ;;  %6799 = vmatprep.subr.bf16.mxu0 %v7501_v61  ;;  %v1436_v53 = vld [vmem:[#allocation2 + $0x3d] sm:$0xff]  ;;  %v1437_v56 = vld [vmem:[#allocation2 + $0x45] sm:$0xff]  ;;  %v1434_v4 = vld [vmem:[#allocation2 + $0x2d] sm:$0xff] }
  0xf9   : > { %v1311_v28 = vadd.f32 %v1295_v34, %v1258_v17  ;;  %v1312_v31 = vadd.f32 %v1296_v14, %v1259_v18  ;;  %1559 = vrot.lane.b32.xlu0 %v1543_v19, %s9423_s28  ;;  %v1608_v37 = vpack.c.bf16 %v1593_v26, %v1592_v35  ;;  %v1609_v39 = vpack.c.bf16 %v1595_v32, %v1594_v38  ;;  %v1435_v58 = vld [vmem:[#allocation2 + $0x35] sm:$0xff]  ;;  %v1440_v1 = vld [vmem:[#allocation2 + $0x7d] sm:$0xff]  ;;  %v1438_v2 = vld [vmem:[#allocation2 + $0x6d] sm:$0xff] }
  0xfa   : > { %v1411_v33 = vsel %vm1379_vm15, %v1363_v57, %v1395_v21  ;;  %1561 = vrot.lane.b32.xlu1 %v1544_v25, %s9423_s28  ;;  %v1673_v48 = vpack.c.bf16 %v1658_v63, %v1657_v40  ;;  %v1674_v54 = vpack.c.bf16 %v1660_v41, %v1659_v3  ;;  %v7503_v60 = vld [vmem:[%s9458_s5 + $0x38] sm:$0xff]   ;;  %v1447_v30 = vpack.c.bf16 %v1433_v47, %v1432_v24  ;;  %v1441_v6 = vld [vmem:[#allocation2 + $0x85] sm:$0xff]  ;;  %v1466_v19 = vld [vmem:[#allocation2 + $0x2e] sm:$0xff]  ;;  %s9463_s5 = smov 32  }
  0xfb   : > { %v1364_v36 = vadd.f32 %v1348_v62, %v1311_v28  ;;  %v1365_v22 = vadd.f32 %v1349_v27, %v1312_v31  ;;  %1427 = vst.msk [vmem:[#allocation2 + $0x98] sm:$0xff] %vm971_vm1, %v1411_v33  ;;  %6800 = vmatpush3.bf16.msra.mxu0 %v7501_v61  ;;  %v1446_v5 = vpack.c.bf16 %v1431_v51, %v1430_v50  ;;  %v1439_v55 = vld [vmem:[#allocation2 + $0x75] sm:$0xff]  ;;  %v1724_v8 = vld [vmem:[#allocation2 + $0x22] sm:$0xff]  ;;  %v1790_v15 = vld [vmem:[#allocation2 + $0x2b] sm:$0xff]  ;;  %vm1648_vm4 = vcmask 523648  }
  0xfc   : > { %6801 = vmatprep.subr.bf16.mxu0 %v7502_v52  ;;  %v1738_v7 = vpack.c.bf16 %v1723_v46, %v1722_v44  ;;  %v1739_v10 = vpack.c.bf16 %v1725_v49, %v1724_v8  ;;  %v1787_v11 = vld [vmem:[#allocation2 + $0x13] sm:$0xff]  ;;  %v1788_v29 = vld [vmem:[#allocation2 + $0x1b] sm:$0xff]  ;;  %1455 = vst.msk [vmem:[#allocation3 + $0x10] sm:$0xff] %vm971_vm1, %v1447_v30  ;;  %v1449_v12 = vpack.c.bf16 %v1437_v56, %v1436_v53  ;;  %v1789_v18 = vld [vmem:[#allocation2 + $0x23] sm:$0xff]  ;;  %vm1713_vm5 = vcmask 654848  }
  0xfd   : > { %vm1380_vm0 = vcmp.ge.f32.partialorder %v1364_v36, 0.0  ;;  %vm1381_vm2 = vcmp.ge.f32.partialorder %v1365_v22, 0.0  ;;  %v1396_v42 = vmul.f32 0.2, %v1364_v36  ;;  %v1397_v43 = vmul.f32 0.2, %v1365_v22  ;;  %1624 = vrot.lane.b32.xlu0 %v1608_v37, %s7716_s2 }
  0xfe   : > { %1626 = vrot.lane.b32.xlu1 %v1609_v39, %s7716_s2  ;;  %v1442_v59 = vld [vmem:[#allocation2 + $0x8d] sm:$0xff]  ;;  %1454 = vst.msk [vmem:[#allocation3] sm:$0xff] %vm971_vm1, %v1446_v5  ;;  %v1448_v13 = vpack.c.bf16 %v1435_v58, %v1434_v4  ;;  %v1451_v45 = vpack.c.bf16 %v1441_v6, %v1440_v1  ;;  %v1450_v57 = vpack.c.bf16 %v1439_v55, %v1438_v2  ;;  %1457 = vst.msk [vmem:[#allocation3 + $0x30] sm:$0xff] %vm971_vm1, %v1449_v12  ;;  %v1467_v20 = vld [vmem:[#allocation2 + $0x36] sm:$0xff]  ;;  %vm1778_vm6 = vcmask 786048  }
  0xff   : > { %v1412_v9 = vsel %vm1380_vm0, %v1364_v36, %v1396_v42  ;;  %v1413_v23 = vsel %vm1381_vm2, %v1365_v22, %v1397_v43  ;;  %6802 = vmatpush3.bf16.msra.mxu0 %v7502_v52  ;;  %v1803_v17 = vpack.c.bf16 %v1788_v29, %v1787_v11  ;;  %v1804_v34 = vpack.c.bf16 %v1790_v15, %v1789_v18  ;;  %v1468_v21 = vld [vmem:[#allocation2 + $0x3e] sm:$0xff]  ;;  %v1469_v25 = vld [vmem:[#allocation2 + $0x46] sm:$0xff]  ;;  %v1531_v27 = vld [vmem:[#allocation2 + $0x2f] sm:$0xff] }
 0x100   : > { %1428 = vst.msk [vmem:[#allocation2 + $0xa0] sm:$0xff] %vm971_vm1, %v1412_v9  ;;  %1429 = vst.msk [vmem:[#allocation2 + $0xa8] sm:$0xff] %vm971_vm1, %v1413_v23  ;;  %6803 = vmatprep.subr.bf16.mxu0 %v7503_v60  ;;  %v1480_v26 = vpack.c.bf16 %v1467_v20, %v1466_v19  ;;  %v1481_v28 = vpack.c.bf16 %v1469_v25, %v1468_v21  ;;  %v1532_v31 = vld [vmem:[#allocation2 + $0x37] sm:$0xff]  ;;  %v1533_v32 = vld [vmem:[#allocation2 + $0x3f] sm:$0xff]  ;;  %vm1843_vm7 = vcmask 917248   ;;  %vm866_vm8 = vcmask 1048320  }
 0x101   : > { %1689 = vrot.lane.b32.xlu0 %v1673_v48, %s9421_s8  ;;  %1456 = vst.msk [vmem:[#allocation3 + $0x20] sm:$0xff] %vm971_vm1, %v1448_v13  ;;  %1459 = vst.msk [vmem:[#allocation3 + $0x50] sm:$0xff] %vm971_vm1, %v1451_v45  ;;  %v1534_v33 = vld [vmem:[#allocation2 + $0x47] sm:$0xff]  ;;  %v1545_v61 = vpack.c.bf16 %v1532_v31, %v1531_v27  ;;  %v1596_v22 = vld [vmem:[#allocation2 + $0x30] sm:$0xff]  ;;  %vm2076_vm10 = vcmask 261120  }
 0x102   : > { %1691 = vrot.lane.b32.xlu1 %v1674_v54, %s9421_s8  ;;  %v1443_v14 = vld [vmem:[#allocation2 + $0x95] sm:$0xff]  ;;  %1458 = vst.msk [vmem:[#allocation3 + $0x40] sm:$0xff] %vm971_vm1, %v1450_v57  ;;  %v1546_v36 = vpack.c.bf16 %v1534_v33, %v1533_v32  ;;  %v1598_v39 = vld [vmem:[#allocation2 + $0x40] sm:$0xff]  ;;  %v1599_v40 = vld [vmem:[#allocation2 + $0x48] sm:$0xff] }
 0x103   : > { %v1452_v16 = vpack.c.bf16 %v1443_v14, %v1442_v59  ;;  %6804 = vmatpush3.bf16.msra.mxu0 %v7503_v60  ;;  %v1597_v37 = vld [vmem:[#allocation2 + $0x38] sm:$0xff]  ;;  %v1611_v41 = vpack.c.bf16 %v1599_v40, %v1598_v39  ;;  %v1663_v43 = vld [vmem:[#allocation2 + $0x41] sm:$0xff]  ;;  %v1664_v3 = vld [vmem:[#allocation2 + $0x49] sm:$0xff]  ;;  %867 = vst.msk [vmem:[#allocation3 + $0x8] sm:$0xff] %vm866_vm8, %v7712_v0 }
 0x104   : > { %v1610_v63 = vpack.c.bf16 %v1597_v37, %v1596_v22  ;;  %v1662_v42 = vld [vmem:[#allocation2 + $0x39] sm:$0xff]  ;;  %v1661_v44 = vld [vmem:[#allocation2 + $0x31] sm:$0xff]  ;;  %v1676_v24 = vpack.c.bf16 %v1664_v3, %v1663_v43  ;;  %v1728_v9 = vld [vmem:[#allocation2 + $0x42] sm:$0xff]  ;;  %868 = vst.msk [vmem:[#allocation3 + $0x18] sm:$0xff] %vm866_vm8, %v7712_v0 }
 0x105   : > { %1754 = vrot.lane.b32.xlu0 %v1738_v7, %s7718_s10  ;;  %1460 = vst.msk [vmem:[#allocation3 + $0x60] sm:$0xff] %vm971_vm1, %v1452_v16  ;;  %v1675_v46 = vpack.c.bf16 %v1662_v42, %v1661_v44  ;;  %v1727_v47 = vld [vmem:[#allocation2 + $0x3a] sm:$0xff]  ;;  %v1729_v23 = vld [vmem:[#allocation2 + $0x4a] sm:$0xff]  ;;  %v1726_v48 = vld [vmem:[#allocation2 + $0x32] sm:$0xff] }
 0x106   : > { %1756 = vrot.lane.b32.xlu1 %v1739_v10, %s7718_s10  ;;  %v1740_v49 = vpack.c.bf16 %v1727_v47, %v1726_v48  ;;  %v1741_v50 = vpack.c.bf16 %v1729_v23, %v1728_v9  ;;  %v1792_v51 = vld [vmem:[#allocation2 + $0x3b] sm:$0xff]  ;;  %v1793_v52 = vld [vmem:[#allocation2 + $0x43] sm:$0xff]  ;;  %v1794_v53 = vld [vmem:[#allocation2 + $0x4b] sm:$0xff]  ;;  %869 = vst.msk [vmem:[#allocation3 + $0x28] sm:$0xff] %vm866_vm8, %v7712_v0 }
 0x107   : > { %v1444_v62 = vld [vmem:[#allocation2 + $0x9d] sm:$0xff]  ;;  %v1445_v38 = vld [vmem:[#allocation2 + $0xa5] sm:$0xff]  ;;  %v1791_v54 = vld [vmem:[#allocation2 + $0x33] sm:$0xff]  ;;  %v1806_v4 = vpack.c.bf16 %v1794_v53, %v1793_v52  ;;  %870 = vst.msk [vmem:[#allocation3 + $0x38] sm:$0xff] %vm866_vm8, %v7712_v0 }
 0x108   : > { %v1453_v35 = vpack.c.bf16 %v1445_v38, %v1444_v62  ;;  %v1805_v56 = vpack.c.bf16 %v1792_v51, %v1791_v54  ;;  %v1470_v58 = vld [vmem:[#allocation2 + $0x6e] sm:$0xff]  ;;  %v1471_v60 = vld [vmem:[#allocation2 + $0x76] sm:$0xff]  ;;  %v1472_v1 = vld [vmem:[#allocation2 + $0x7e] sm:$0xff]  ;;  %871 = vst.msk [vmem:[#allocation3 + $0x48] sm:$0xff] %vm866_vm8, %v7712_v0 }
 0x109   : > { %1819 = vrot.lane.b32.xlu0 %v1803_v17, %s9425_s3  ;;  %v1473_v2 = vld [vmem:[#allocation2 + $0x86] sm:$0xff]  ;;  %v1482_v30 = vpack.c.bf16 %v1471_v60, %v1470_v58  ;;  %v1535_v6 = vld [vmem:[#allocation2 + $0x6f] sm:$0xff]  ;;  %v1536_v55 = vld [vmem:[#allocation2 + $0x77] sm:$0xff]  ;;  %872 = vst.msk [vmem:[#allocation3 + $0x58] sm:$0xff] %vm866_vm8, %v7712_v0 }
 0x10a   : > { %1821 = vrot.lane.b32.xlu1 %v1804_v34, %s9425_s3  ;;  %1461 = vst.msk [vmem:[#allocation3 + $0x70] sm:$0xff] %vm971_vm1, %v1453_v35  ;;  %v1483_v5 = vpack.c.bf16 %v1473_v2, %v1472_v1  ;;  %v1537_v59 = vld [vmem:[#allocation2 + $0x7f] sm:$0xff]  ;;  %v1538_v7 = vld [vmem:[#allocation2 + $0x87] sm:$0xff]  ;;  %v1547_v8 = vpack.c.bf16 %v1536_v55, %v1535_v6  ;;  %v1600_v11 = vld [vmem:[#allocation2 + $0x70] sm:$0xff]  ;;  %vm1518_vm1 = vcmask 261248  }
 0x10b   : > { %v1548_v10 = vpack.c.bf16 %v1538_v7, %v1537_v59  ;;  %v1601_v29 = vld [vmem:[#allocation2 + $0x78] sm:$0xff]  ;;  %v1602_v12 = vld [vmem:[#allocation2 + $0x80] sm:$0xff]  ;;  %v1603_v13 = vld [vmem:[#allocation2 + $0x88] sm:$0xff]  ;;  %873 = vst.msk [vmem:[#allocation3 + $0x68] sm:$0xff] %vm866_vm8, %v7712_v0 }
 0x10c   : > { %v1612_v14 = vpack.c.bf16 %v1601_v29, %v1600_v11  ;;  %v1613_v15 = vpack.c.bf16 %v1603_v13, %v1602_v12  ;;  %v1666_v45 = vld [vmem:[#allocation2 + $0x79] sm:$0xff]  ;;  %v1668_v57 = vld [vmem:[#allocation2 + $0x89] sm:$0xff]  ;;  %v1665_v16 = vld [vmem:[#allocation2 + $0x71] sm:$0xff]  ;;  %874 = vst.msk [vmem:[#allocation3 + $0x78] sm:$0xff] %vm866_vm8, %v7712_v0 }
 0x10d   : > { %1498 = vrot.lane.b32.xlu0 %v1480_v26, %s7714_s6  ;;  %v1677_v17 = vpack.c.bf16 %v1666_v45, %v1665_v16  ;;  %v1667_v18 = vld [vmem:[#allocation2 + $0x81] sm:$0xff]  ;;  %v1733_v20 = vld [vmem:[#allocation2 + $0x8a] sm:$0xff]  ;;  %v1730_v21 = vld [vmem:[#allocation2 + $0x72] sm:$0xff] }
 0x10e   : > { %1500 = vrot.lane.b32.xlu1 %v1481_v28, %s7714_s6  ;;  %v1678_v34 = vpack.c.bf16 %v1668_v57, %v1667_v18  ;;  %v1731_v19 = vld [vmem:[#allocation2 + $0x7a] sm:$0xff]  ;;  %v1732_v26 = vld [vmem:[#allocation2 + $0x82] sm:$0xff]  ;;  %v1798_v31 = vld [vmem:[#allocation2 + $0x8b] sm:$0xff] }
 0x10f   : > { %v1742_v25 = vpack.c.bf16 %v1731_v19, %v1730_v21  ;;  %v1743_v27 = vpack.c.bf16 %v1733_v20, %v1732_v26  ;;  %v1796_v28 = vld [vmem:[#allocation2 + $0x7b] sm:$0xff]  ;;  %v1795_v62 = vld [vmem:[#allocation2 + $0x73] sm:$0xff]  ;;  %v1797_v32 = vld [vmem:[#allocation2 + $0x83] sm:$0xff] }
 0x110   : > { %v1807_v38 = vpack.c.bf16 %v1796_v28, %v1795_v62  ;;  %v1808_v33 = vpack.c.bf16 %v1798_v31, %v1797_v32  ;;  %v1474_v35 = vld [vmem:[#allocation2 + $0x8e] sm:$0xff]  ;;  %v1477_v22 = vld [vmem:[#allocation2 + $0xa6] sm:$0xff]  ;;  %v1670_v48 = vld [vmem:[#allocation2 + $0x99] sm:$0xff] }
 0x111   : > { %1563 = vrot.lane.b32.xlu0 %v1545_v61, %s9423_s28  ;;  %v1475_v61 = vld [vmem:[#allocation2 + $0x96] sm:$0xff]  ;;  %v1542_v42 = vld [vmem:[#allocation2 + $0xa7] sm:$0xff] }
 0x112   : > { %1565 = vrot.lane.b32.xlu1 %v1546_v36, %s9423_s28  ;;  %v1476_v36 = vld [vmem:[#allocation2 + $0x9e] sm:$0xff]  ;;  %v1484_v37 = vpack.c.bf16 %v1475_v61, %v1474_v35  ;;  %v1539_v40 = vld [vmem:[#allocation2 + $0x8f] sm:$0xff] }
 0x113   : > { %v1485_v39 = vpack.c.bf16 %v1477_v22, %v1476_v36  ;;  %v1604_v44 = vld [vmem:[#allocation2 + $0x90] sm:$0xff]  ;;  %v1607_v47 = vld [vmem:[#allocation2 + $0xa8] sm:$0xff]  ;;  %v1735_v54 = vld [vmem:[#allocation2 + $0x9a] sm:$0xff] }
 0x114   : > { %v1669_v51 = vld [vmem:[#allocation2 + $0x91] sm:$0xff]  ;;  %v1800_v2 = vld [vmem:[#allocation2 + $0x9b] sm:$0xff] }
 0x115   : > { %1628 = vrot.lane.b32.xlu0 %v1610_v63, %s7716_s2  ;;  %v1540_v63 = vld [vmem:[#allocation2 + $0x97] sm:$0xff]  ;;  %v1679_v52 = vpack.c.bf16 %v1670_v48, %v1669_v51 }
 0x116   : > { %1630 = vrot.lane.b32.xlu1 %v1611_v41, %s7716_s2  ;;  %v1541_v41 = vld [vmem:[#allocation2 + $0x9f] sm:$0xff]  ;;  %v1549_v43 = vpack.c.bf16 %v1540_v63, %v1539_v40  ;;  %v1734_v58 = vld [vmem:[#allocation2 + $0x92] sm:$0xff] }
 0x117   : > { %v1550_v3 = vpack.c.bf16 %v1542_v42, %v1541_v41  ;;  %v1744_v60 = vpack.c.bf16 %v1735_v54, %v1734_v58  ;;  %v1799_v6 = vld [vmem:[#allocation2 + $0x93] sm:$0xff] }
 0x118   : > { %v1809_v55 = vpack.c.bf16 %v1800_v2, %v1799_v6  ;;  %v7505_v2 = vld [vmem:[%s9460_s29] sm:$0xff]   ;;  %v7508_v0 = vld [vmem:[%s9460_s29 + $0x50] sm:$0xff]  }
 0x119   : > { %1693 = vrot.lane.b32.xlu0 %v1675_v46, %s9421_s8  ;;  %v1605_v46 = vld [vmem:[#allocation2 + $0x98] sm:$0xff]  ;;  %v7509_v6 = vld [vmem:[%s9460_s29 + $0x10] sm:$0xff]  }
 0x11a   : > { %1695 = vrot.lane.b32.xlu1 %v1676_v24, %s9421_s8  ;;  %v1606_v24 = vld [vmem:[#allocation2 + $0xa0] sm:$0xff]  ;;  %v1614_v9 = vpack.c.bf16 %v1605_v46, %v1604_v44 }
 0x11b   : > { %v1615_v23 = vpack.c.bf16 %v1607_v47, %v1606_v24 }
 0x11d   : > { %1758 = vrot.lane.b32.xlu0 %v1740_v49, %s7718_s10  ;;  %v1671_v49 = vld [vmem:[#allocation2 + $0xa1] sm:$0xff] }
 0x11e   : > { %1760 = vrot.lane.b32.xlu1 %v1741_v50, %s7718_s10  ;;  %v1672_v50 = vld [vmem:[#allocation2 + $0xa9] sm:$0xff] }
 0x11f   : > { %v1680_v53 = vpack.c.bf16 %v1672_v50, %v1671_v49 }
 0x121   : > { %1823 = vrot.lane.b32.xlu0 %v1805_v56, %s9425_s3  ;;  %v1736_v56 = vld [vmem:[#allocation2 + $0xa2] sm:$0xff] }
 0x122   : > { %1825 = vrot.lane.b32.xlu1 %v1806_v4, %s9425_s3  ;;  %v1737_v4 = vld [vmem:[#allocation2 + $0xaa] sm:$0xff] }
 0x123   : > { %v1745_v1 = vpack.c.bf16 %v1737_v4, %v1736_v56 }
 0x125   : > { %1502 = vrot.lane.b32.xlu0 %v1482_v30, %s7714_s6  ;;  %v1801_v30 = vld [vmem:[#allocation2 + $0xa3] sm:$0xff] }
 0x126   : > { %1504 = vrot.lane.b32.xlu1 %v1483_v5, %s7714_s6  ;;  %v1802_v5 = vld [vmem:[#allocation2 + $0xab] sm:$0xff] }
 0x127   : > { %v1810_v59 = vpack.c.bf16 %v1802_v5, %v1801_v30  ;;  %v7506_v30 = vld [vmem:[%s9460_s29 + $0x48] sm:$0xff]  }
 0x128   : > { %v7507_v5 = vld [vmem:[%s9460_s29 + $0x8] sm:$0xff]  }
 0x129   : > { %1567 = vrot.lane.b32.xlu0 %v1547_v8, %s9423_s28 }
 0x12a   : > { %1569 = vrot.lane.b32.xlu1 %v1548_v10, %s9423_s28 }
 0x12d   : > { %1632 = vrot.lane.b32.xlu0 %v1612_v14, %s7716_s2 }
 0x12e   : > { %1634 = vrot.lane.b32.xlu1 %v1613_v15, %s7716_s2 }
 0x131   : > { %1697 = vrot.lane.b32.xlu0 %v1677_v17, %s9421_s8 }
 0x132   : > { %1699 = vrot.lane.b32.xlu1 %v1678_v34, %s9421_s8 }
 0x135   : > { %1762 = vrot.lane.b32.xlu0 %v1742_v25, %s7718_s10 }
 0x136   : > { %1764 = vrot.lane.b32.xlu1 %v1743_v27, %s7718_s10 }
 0x139   : > { %1827 = vrot.lane.b32.xlu0 %v1807_v38, %s9425_s3 }
 0x13a   : > { %1829 = vrot.lane.b32.xlu1 %v1808_v33, %s9425_s3 }
 0x13d   : > { %1506 = vrot.lane.b32.xlu0 %v1484_v37, %s7714_s6 }
 0x13e   : > { %1508 = vrot.lane.b32.xlu1 %v1485_v39, %s7714_s6 }
 0x141   : > { %1571 = vrot.lane.b32.xlu0 %v1549_v43, %s9423_s28 }
 0x142   : > { %1573 = vrot.lane.b32.xlu1 %v1550_v3, %s9423_s28  ;;  %s9464_s28 = smov 64  }
 0x145   : > { %1636 = vrot.lane.b32.xlu0 %v1614_v9, %s7716_s2 }
 0x146   : > { %1638 = vrot.lane.b32.xlu1 %v1615_v23, %s7716_s2  ;;  %s6452_s2 = sshll.u32 %s7884_s9, 11 }
 0x149   : > { %1701 = vrot.lane.b32.xlu0 %v1679_v52, %s9421_s8 }
 0x14a   : > { %1703 = vrot.lane.b32.xlu1 %v1680_v53, %s9421_s8 }
 0x14d   : > { %1766 = vrot.lane.b32.xlu0 %v1744_v60, %s7718_s10 }
 0x14e   : > { %1768 = vrot.lane.b32.xlu1 %v1745_v1, %s7718_s10  ;;  %v7504_v1 = vld [vmem:[%s9459_s7 + $0x40] sm:$0xff]   ;;  %s9465_s10 = sld [smem:[#allocation22_spill]] }
 0x14f   : > { %6469 = vmatprep.subr.bf16.mxu1 %v7504_v1 }
 0x150   : > { %6470 = vmatpush3.bf16.msra.mxu1 %v7505_v2 }
 0x151   : > { %1831 = vrot.lane.b32.xlu0 %v1809_v55, %s9425_s3  ;;  %6471 = vmatprep.subr.bf16.mxu1 %v7506_v30  ;;  %v7510_v55 = vld [vmem:[%s9460_s29 + $0x58] sm:$0xff]  }
 0x152   : > { %1833 = vrot.lane.b32.xlu1 %v1810_v59, %s9425_s3  ;;  %v7511_v59 = vld [vmem:[%s9460_s29 + $0x18] sm:$0xff]   ;;  %s9466_s3 = sld [smem:[#allocation21_spill]] }
 0x154   : > { %6472 = vmatpush3.bf16.msra.mxu1 %v7507_v5 }
 0x155   : > { %6473 = vmatprep.subr.bf16.mxu1 %v7508_v0 }
 0x158   : > { %6474 = vmatpush3.bf16.msra.mxu1 %v7509_v6 }
 0x159   : > { %6475 = vmatprep.subr.bf16.mxu1 %v7510_v55 }
 0x15c   : > { %6476 = vmatpush3.bf16.msra.mxu1 %v7511_v59 }
 0x167   : > { %v1495_v7 = vpop.permute.xlu0 %1494 }
 0x168   : > { %v1497_v8 = vpop.permute.xlu1 %1496  ;;  %1519 = vst.msk [vmem:[#allocation3] sm:$0xff] %vm1518_vm1, %v1495_v7  ;;  %v8343_v7 = vld [vmem:[%s9461_s27] ss:$0 sm:$0xff]  ;;  %s9472_s27 = sld [smem:[#allocation23_spill]] }
 0x169   : > { %1520 = vst.msk [vmem:[#allocation3 + $0x10] sm:$0xff] %vm1518_vm1, %v1497_v8 }
 0x16b   : > { %v1560_v10 = vpop.permute.xlu0 %1559 }
 0x16c   : > { %v1562_v11 = vpop.permute.xlu1 %1561  ;;  %1584 = vst.msk [vmem:[#allocation3] sm:$0xff] %vm1583_vm3, %v1560_v10 }
 0x16d   : > { %1585 = vst.msk [vmem:[#allocation3 + $0x10] sm:$0xff] %vm1583_vm3, %v1562_v11 }
 0x16f   : > { %v1625_v29 = vpop.permute.xlu0 %1624 }
 0x170   : > { %v1627_v12 = vpop.permute.xlu1 %1626  ;;  %1649 = vst.msk [vmem:[#allocation3] sm:$0xff] %vm1648_vm4, %v1625_v29 }
 0x171   : > { %1650 = vst.msk [vmem:[#allocation3 + $0x10] sm:$0xff] %vm1648_vm4, %v1627_v12 }
 0x173   : > { %v1690_v13 = vpop.permute.xlu0 %1689 }
 0x174   : > { %v1692_v14 = vpop.permute.xlu1 %1691  ;;  %1714 = vst.msk [vmem:[#allocation3] sm:$0xff] %vm1713_vm5, %v1690_v13 }
 0x175   : > { %1715 = vst.msk [vmem:[#allocation3 + $0x10] sm:$0xff] %vm1713_vm5, %v1692_v14 }
 0x177   : > { %v1755_v15 = vpop.permute.xlu0 %1754 }
 0x178   : > { %v1757_v45 = vpop.permute.xlu1 %1756  ;;  %1779 = vst.msk [vmem:[#allocation3] sm:$0xff] %vm1778_vm6, %v1755_v15 }
 0x179   : > { %1780 = vst.msk [vmem:[#allocation3 + $0x10] sm:$0xff] %vm1778_vm6, %v1757_v45 }
 0x17b   : > { %v1820_v57 = vpop.permute.xlu0 %1819 }
 0x17c   : > { %v1822_v16 = vpop.permute.xlu1 %1821  ;;  %1844 = vst.msk [vmem:[#allocation3] sm:$0xff] %vm1843_vm7, %v1820_v57 }
 0x17d   : > { %1845 = vst.msk [vmem:[#allocation3 + $0x10] sm:$0xff] %vm1843_vm7, %v1822_v16 }
 0x17f   : > { %v1499_v17 = vpop.permute.xlu0 %1498 }
 0x180   : > { %v1501_v18 = vpop.permute.xlu1 %1500  ;;  %1521 = vst.msk [vmem:[#allocation3 + $0x20] sm:$0xff] %vm1518_vm1, %v1499_v17 }
 0x181   : > { %1522 = vst.msk [vmem:[#allocation3 + $0x30] sm:$0xff] %vm1518_vm1, %v1501_v18 }
 0x183   : > { %v1564_v34 = vpop.permute.xlu0 %1563  ;;  %v1852_v19 = vld [vmem:[#allocation3] sm:$0xff] }
 0x184   : > { %v1566_v20 = vpop.permute.xlu1 %1565  ;;  %1586 = vst.msk [vmem:[#allocation3 + $0x20] sm:$0xff] %vm1583_vm3, %v1564_v34  ;;  %6805 = vmatprep.mubr.bf16.mxu0 %v1852_v19  ;;  %v1853_v21 = vld [vmem:[#allocation3 + $0x10] sm:$0xff]  ;;  %v7512_v19 = vld [vmem:[%s9460_s29 + $0x60] sm:$0xff]  }
 0x185   : > { %1587 = vst.msk [vmem:[#allocation3 + $0x30] sm:$0xff] %vm1583_vm3, %v1566_v20  ;;  %6806 = vmatmul.mubr.bf16.vlgmr.msra.gmra.mrb[0].mxu0 %v1853_v21  ;;  %v7513_v20 = vld [vmem:[%s9460_s29 + $0x20] sm:$0xff]   ;;  %6477 = vmatprep.subr.bf16.mxu1 %v7512_v19 }
 0x186   : > { %6478 = vmatpush3.bf16.msra.mxu1 %v7513_v20 }
 0x187   : > { %v1629_v25 = vpop.permute.xlu0 %1628 }
 0x188   : > { %v1631_v26 = vpop.permute.xlu1 %1630  ;;  %1651 = vst.msk [vmem:[#allocation3 + $0x20] sm:$0xff] %vm1648_vm4, %v1629_v25 }
 0x189   : > { %1652 = vst.msk [vmem:[#allocation3 + $0x30] sm:$0xff] %vm1648_vm4, %v1631_v26  ;;  %v7514_v26 = vld [vmem:[%s9460_s29 + $0x68] sm:$0xff]  }
 0x18a   : > { %6479 = vmatprep.subr.bf16.mxu1 %v7514_v26 }
 0x18b   : > { %v1694_v27 = vpop.permute.xlu0 %1693 }
 0x18c   : > { %v1696_v28 = vpop.permute.xlu1 %1695  ;;  %1716 = vst.msk [vmem:[#allocation3 + $0x20] sm:$0xff] %vm1713_vm5, %v1694_v27  ;;  %v7515_v27 = vld [vmem:[%s9460_s29 + $0x28] sm:$0xff]  }
 0x18d   : > { %1717 = vst.msk [vmem:[#allocation3 + $0x30] sm:$0xff] %vm1713_vm5, %v1696_v28  ;;  %6480 = vmatpush3.bf16.msra.mxu1 %v7515_v27 }
 0x18f   : > { %v1759_v31 = vpop.permute.xlu0 %1758 }
 0x190   : > { %v1761_v62 = vpop.permute.xlu1 %1760  ;;  %1781 = vst.msk [vmem:[#allocation3 + $0x20] sm:$0xff] %vm1778_vm6, %v1759_v31 }
 0x191   : > { %1782 = vst.msk [vmem:[#allocation3 + $0x30] sm:$0xff] %vm1778_vm6, %v1761_v62 }
 0x193   : > { %v1824_v38 = vpop.permute.xlu0 %1823 }
 0x194   : > { %v1826_v32 = vpop.permute.xlu1 %1825  ;;  %1846 = vst.msk [vmem:[#allocation3 + $0x20] sm:$0xff] %vm1843_vm7, %v1824_v38 }
 0x195   : > { %1847 = vst.msk [vmem:[#allocation3 + $0x30] sm:$0xff] %vm1843_vm7, %v1826_v32 }
 0x197   : > { %v1503_v33 = vpop.permute.xlu0 %1502 }
 0x198   : > { %v1505_v35 = vpop.permute.xlu1 %1504  ;;  %1523 = vst.msk [vmem:[#allocation3 + $0x40] sm:$0xff] %vm1518_vm1, %v1503_v33 }
 0x199   : > { %1524 = vst.msk [vmem:[#allocation3 + $0x50] sm:$0xff] %vm1518_vm1, %v1505_v35 }
 0x19b   : > { %v1568_v61 = vpop.permute.xlu0 %1567  ;;  %v1854_v36 = vld [vmem:[#allocation3 + $0x20] sm:$0xff] }
 0x19c   : > { %v1570_v22 = vpop.permute.xlu1 %1569  ;;  %1588 = vst.msk [vmem:[#allocation3 + $0x40] sm:$0xff] %vm1583_vm3, %v1568_v61  ;;  %6809 = vmatprep.mubr.bf16.mxu0 %v1854_v36  ;;  %v1855_v37 = vld [vmem:[#allocation3 + $0x30] sm:$0xff] }
 0x19d   : > { %1589 = vst.msk [vmem:[#allocation3 + $0x50] sm:$0xff] %vm1583_vm3, %v1570_v22  ;;  %6810 = vmatmul.mubr.bf16.gmra.mrb[4].mxu0 %v1855_v37 }
 0x19f   : > { %v1633_v39 = vpop.permute.xlu0 %1632 }
 0x1a0   : > { %v1635_v40 = vpop.permute.xlu1 %1634  ;;  %1653 = vst.msk [vmem:[#allocation3 + $0x40] sm:$0xff] %vm1648_vm4, %v1633_v39 }
 0x1a1   : > { %1654 = vst.msk [vmem:[#allocation3 + $0x50] sm:$0xff] %vm1648_vm4, %v1635_v40 }
 0x1a3   : > { %v1698_v63 = vpop.permute.xlu0 %1697 }
 0x1a4   : > { %v1700_v41 = vpop.permute.xlu1 %1699  ;;  %1718 = vst.msk [vmem:[#allocation3 + $0x40] sm:$0xff] %vm1713_vm5, %v1698_v63 }
 0x1a5   : > { %1719 = vst.msk [vmem:[#allocation3 + $0x50] sm:$0xff] %vm1713_vm5, %v1700_v41 }
 0x1a7   : > { %v1763_v42 = vpop.permute.xlu0 %1762 }
 0x1a8   : > { %v1765_v43 = vpop.permute.xlu1 %1764  ;;  %1783 = vst.msk [vmem:[#allocation3 + $0x40] sm:$0xff] %vm1778_vm6, %v1763_v42 }
 0x1a9   : > { %1784 = vst.msk [vmem:[#allocation3 + $0x50] sm:$0xff] %vm1778_vm6, %v1765_v43 }
 0x1ab   : > { %v1828_v3 = vpop.permute.xlu0 %1827 }
 0x1ac   : > { %v1830_v44 = vpop.permute.xlu1 %1829  ;;  %1848 = vst.msk [vmem:[#allocation3 + $0x40] sm:$0xff] %vm1843_vm7, %v1828_v3 }
 0x1ad   : > { %1849 = vst.msk [vmem:[#allocation3 + $0x50] sm:$0xff] %vm1843_vm7, %v1830_v44 }
 0x1af   : > { %v1507_v46 = vpop.permute.xlu0 %1506 }
 0x1b0   : > { %v1509_v24 = vpop.permute.xlu1 %1508  ;;  %1525 = vst.msk [vmem:[#allocation3 + $0x60] sm:$0xff] %vm1518_vm1, %v1507_v46 }
 0x1b1   : > { %1526 = vst.msk [vmem:[#allocation3 + $0x70] sm:$0xff] %vm1518_vm1, %v1509_v24  ;;  %v7516_v24 = vld [vmem:[%s9460_s29 + $0x70] sm:$0xff]  }
 0x1b2   : > { %6481 = vmatprep.subr.bf16.mxu1 %v7516_v24 }
 0x1b3   : > { %v1572_v47 = vpop.permute.xlu0 %1571  ;;  %v1856_v9 = vld [vmem:[#allocation3 + $0x40] sm:$0xff] }
 0x1b4   : > { %v1574_v23 = vpop.permute.xlu1 %1573  ;;  %1590 = vst.msk [vmem:[#allocation3 + $0x60] sm:$0xff] %vm1583_vm3, %v1572_v47  ;;  %6813 = vmatprep.mubr.bf16.mxu0 %v1856_v9  ;;  %v1857_v48 = vld [vmem:[#allocation3 + $0x50] sm:$0xff] }
 0x1b5   : > { %1591 = vst.msk [vmem:[#allocation3 + $0x70] sm:$0xff] %vm1583_vm3, %v1574_v23  ;;  %6814 = vmatmul.mubr.bf16.gmra.mrb[8].mxu0 %v1857_v48  ;;  %v7517_v47 = vld [vmem:[%s9460_s29 + $0x30] sm:$0xff]  }
 0x1b6   : > { %6482 = vmatpush3.bf16.msra.mxu1 %v7517_v47 }
 0x1b7   : > { %v1637_v49 = vpop.permute.xlu0 %1636 }
 0x1b8   : > { %v1639_v50 = vpop.permute.xlu1 %1638  ;;  %1655 = vst.msk [vmem:[#allocation3 + $0x60] sm:$0xff] %vm1648_vm4, %v1637_v49  ;;  %v7518_v49 = vld [vmem:[%s9460_s29 + $0x78] sm:$0xff]  }
 0x1b9   : > { %1656 = vst.msk [vmem:[#allocation3 + $0x70] sm:$0xff] %vm1648_vm4, %v1639_v50  ;;  %6483 = vmatprep.subr.bf16.mxu1 %v7518_v49 }
 0x1bb   : > { %v1702_v51 = vpop.permute.xlu0 %1701 }
 0x1bc   : > { %v1704_v52 = vpop.permute.xlu1 %1703  ;;  %1720 = vst.msk [vmem:[#allocation3 + $0x60] sm:$0xff] %vm1713_vm5, %v1702_v51 }
 0x1bd   : > { %1721 = vst.msk [vmem:[#allocation3 + $0x70] sm:$0xff] %vm1713_vm5, %v1704_v52 }
 0x1bf   : > { %v1767_v53 = vpop.permute.xlu0 %1766 }
 0x1c0   : > { %v1769_v54 = vpop.permute.xlu1 %1768  ;;  %1785 = vst.msk [vmem:[#allocation3 + $0x60] sm:$0xff] %vm1778_vm6, %v1767_v53 }
 0x1c1   : > { %1786 = vst.msk [vmem:[#allocation3 + $0x70] sm:$0xff] %vm1778_vm6, %v1769_v54  ;;  %v7519_v54 = vld [vmem:[%s9460_s29 + $0x38] sm:$0xff]   ;;  %s9468_s29 = smov %s9467_s30 }
 0x1c2   : > { %6484 = vmatpush3.bf16.msra.mxu1 %v7519_v54 }
 0x1c3   : > { %v1832_v56 = vpop.permute.xlu0 %1831 }
 0x1c4   : > { %v1834_v4 = vpop.permute.xlu1 %1833  ;;  %1850 = vst.msk [vmem:[#allocation3 + $0x60] sm:$0xff] %vm1843_vm7, %v1832_v56 }
 0x1c5   : > { %1851 = vst.msk [vmem:[#allocation3 + $0x70] sm:$0xff] %vm1843_vm7, %v1834_v4 }
 0x1cb   : > { %v1858_v58 = vld [vmem:[#allocation3 + $0x60] sm:$0xff] }
 0x1cc   : > { %6817 = vmatprep.mubr.bf16.mxu0 %v1858_v58  ;;  %v1859_v60 = vld [vmem:[#allocation3 + $0x70] sm:$0xff] }
 0x1cd   : > { %6818 = vmatmul.mubr.bf16.gmra.mrb[12].mxu0 %v1859_v60 }
 0x258   : > { %v6807_v8 = vpop.f32.mrb[0].mxu0 }
 0x259   : > { %v1974_v10 = vadd.f32 %v6807_v8, %v8343_v7  ;;  %v1965_v11 = vpop.f32.mrb[1].mxu0 }
 0x25a   : > { %v1966_v29 = vadd.f32 %v8343_v7, %v1965_v11  ;;  %v6808_v12 = vpop.f32.mrb[2].mxu0 }
 0x25b   : > { %vm2030_vm9 = vcmp.ge.f32.partialorder %v1974_v10, 0.0  ;;  %v2046_v13 = vmul.f32 0.2, %v1974_v10  ;;  %v1977_v14 = vadd.f32 %v6808_v12, %v8343_v7  ;;  %v1968_v15 = vpop.f32.mrb[3].mxu0 }
 0x25c   : > { %vm2028_vm11 = vcmp.ge.f32.partialorder %v1966_v29, 0.0  ;;  %v2044_v45 = vmul.f32 0.2, %v1966_v29  ;;  %v1969_v57 = vadd.f32 %v8343_v7, %v1968_v15 }
 0x25d   : > { %v2062_v16 = vsel %vm2030_vm9, %v1974_v10, %v2046_v13  ;;  %vm2031_vm12 = vcmp.ge.f32.partialorder %v1977_v14, 0.0  ;;  %v2047_v17 = vmul.f32 0.2, %v1977_v14 }
 0x25e   : > { %v2060_v18 = vsel %vm2028_vm11, %v1966_v29, %v2044_v45  ;;  %vm2029_vm13 = vcmp.ge.f32.partialorder %v1969_v57, 0.0  ;;  %v2045_v34 = vmul.f32 0.2, %v1969_v57  ;;  %2079 = vst.msk [vmem:[#allocation2 + $0x20] sm:$0xff] %vm2076_vm10, %v2062_v16 }
 0x25f   : > { %v2063_v21 = vsel %vm2031_vm12, %v1977_v14, %v2047_v17  ;;  %2077 = vst.msk [vmem:[#allocation2 + $0x10] sm:$0xff] %vm2076_vm10, %v2060_v18  ;;  %vm2246_vm12 = vcmask 785920  }
 0x260   : > { %v2061_v25 = vsel %vm2029_vm13, %v1969_v57, %v2045_v34  ;;  %2080 = vst.msk [vmem:[#allocation2 + $0x28] sm:$0xff] %vm2076_vm10, %v2063_v21 }
 0x261   : > { %2078 = vst.msk [vmem:[#allocation2 + $0x18] sm:$0xff] %vm2076_vm10, %v2061_v25 }
 0x265   : > { %v2257_v28 = vld [vmem:[#allocation2 + $0x20] sm:$0xff] }
 0x266   : > { %v2125_v38 = vld [vmem:[#allocation2 + $0xe] sm:$0xff] }
 0x267   : > { %v2258_v31 = vld [vmem:[#allocation2 + $0x28] sm:$0xff]  ;;  %v2255_v53 = vld [vmem:[#allocation2 + $0x10] sm:$0xff] }
 0x268   : > { %v2272_v62 = vpack.c.bf16 %v2258_v31, %v2257_v28  ;;  %v2126_v32 = vld [vmem:[#allocation2 + $0x16] sm:$0xff]  ;;  %v2093_v40 = vld [vmem:[#allocation2 + $0xd] sm:$0xff]  ;;  %v2096_v48 = vld [vmem:[#allocation2 + $0x25] sm:$0xff] }
 0x269   : > { %v2141_v33 = vpack.c.bf16 %v2126_v32, %v2125_v38  ;;  %v2351_v35 = vld [vmem:[#allocation2 + $0x12] sm:$0xff]  ;;  %v2352_v61 = vld [vmem:[#allocation2 + $0x1a] sm:$0xff]  ;;  %v2128_v1 = vld [vmem:[#allocation2 + $0x26] sm:$0xff] }
 0x26a   : > { %2289 = vrot.lane.b32.xlu1 %v2272_v62, %s9462_s0  ;;  %v2190_v36 = vld [vmem:[#allocation2 + $0xf] sm:$0xff]  ;;  %v2191_v22 = vld [vmem:[#allocation2 + $0x17] sm:$0xff]  ;;  %v2367_v63 = vpack.c.bf16 %v2352_v61, %v2351_v35  ;;  %v2192_v29 = vld [vmem:[#allocation2 + $0x1f] sm:$0xff] }
 0x26b   : > { %2157 = vrot.lane.b32.xlu0 %v2141_v33, %s9463_s5  ;;  %v2415_v37 = vld [vmem:[#allocation2 + $0x13] sm:$0xff]  ;;  %v2416_v39 = vld [vmem:[#allocation2 + $0x1b] sm:$0xff]  ;;  %v2206_v3 = vpack.c.bf16 %v2191_v22, %v2190_v36  ;;  %v2193_v12 = vld [vmem:[#allocation2 + $0x27] sm:$0xff] }
 0x26c   : > { %v2094_v41 = vld [vmem:[#allocation2 + $0x15] sm:$0xff]  ;;  %v2095_v9 = vld [vmem:[#allocation2 + $0x1d] sm:$0xff]  ;;  %v2431_v52 = vpack.c.bf16 %v2416_v39, %v2415_v37  ;;  %v2207_v57 = vpack.c.bf16 %v2193_v12, %v2192_v29 }
 0x26d   : > { %v2320_v42 = vld [vmem:[#allocation2 + $0x19] sm:$0xff]  ;;  %v2319_v43 = vld [vmem:[#allocation2 + $0x11] sm:$0xff]  ;;  %v2109_v44 = vpack.c.bf16 %v2094_v41, %v2093_v40  ;;  %v2110_v50 = vpack.c.bf16 %v2096_v48, %v2095_v9  ;;  %v2353_v16 = vld [vmem:[#allocation2 + $0x22] sm:$0xff] }
 0x26e   : > { %v2335_v46 = vpack.c.bf16 %v2320_v42, %v2319_v43  ;;  %2383 = vrot.lane.b32.xlu1 %v2367_v63, %s9463_s5  ;;  %v2256_v23 = vld [vmem:[#allocation2 + $0x18] sm:$0xff]  ;;  %v2417_v27 = vld [vmem:[#allocation2 + $0x23] sm:$0xff] }
 0x26f   : > { %2222 = vrot.lane.b32.xlu0 %v2206_v3, %s9464_s28  ;;  %2117 = vst.msk [vmem:[#allocation3] sm:$0xff] %vm2076_vm10, %v2109_v44  ;;  %v2271_v58 = vpack.c.bf16 %v2256_v23, %v2255_v53  ;;  %v2127_v60 = vld [vmem:[#allocation2 + $0x1e] sm:$0xff]  ;;  %2118 = vst.msk [vmem:[#allocation3 + $0x10] sm:$0xff] %vm2076_vm10, %v2110_v50 }
 0x270   : > { %2343 = vst.msk [vmem:[#allocation3 + $0x8] sm:$0xff] %vm2076_vm10, %v2335_v46  ;;  %v6811_v51 = vpop.f32.mrb[4].mxu0  ;;  %v2142_v8 = vpack.c.bf16 %v2128_v1, %v2127_v60  ;;  %v2321_v62 = vld [vmem:[#allocation2 + $0x21] sm:$0xff] }
 0x271   : > { %v1990_v56 = vadd.f32 %v6811_v51, %v8343_v7  ;;  %v1981_v4 = vpop.f32.mrb[5].mxu0 }
 0x272   : > { %v1982_v2 = vadd.f32 %v8343_v7, %v1981_v4  ;;  %2447 = vrot.lane.b32.xlu1 %v2431_v52, %s9464_s28  ;;  %v6812_v30 = vpop.f32.mrb[6].mxu0 }
 0x273   : > { %vm2034_vm14 = vcmp.ge.f32.partialorder %v1990_v56, 0.0  ;;  %v2050_v5 = vmul.f32 0.2, %v1990_v56  ;;  %v1993_v0 = vadd.f32 %v6812_v30, %v8343_v7  ;;  %2287 = vrot.lane.b32.xlu0 %v2271_v58, %s9462_s0  ;;  %v1984_v6 = vpop.f32.mrb[7].mxu0 }
 0x274   : > { %vm2032_vm15 = vcmp.ge.f32.partialorder %v1982_v2, 0.0  ;;  %v2048_v55 = vmul.f32 0.2, %v1982_v2  ;;  %v1985_v59 = vadd.f32 %v8343_v7, %v1984_v6 }
 0x275   : > { %v2066_v10 = vsel %vm2034_vm14, %v1990_v56, %v2050_v5  ;;  %vm2035_vm0 = vcmp.ge.f32.partialorder %v1993_v0, 0.0  ;;  %v2051_v11 = vmul.f32 0.2, %v1993_v0 }
 0x276   : > { %2083 = vst.msk [vmem:[#allocation2 + $0x40] sm:$0xff] %vm2076_vm10, %v2066_v10  ;;  %v2064_v13 = vsel %vm2032_vm15, %v1982_v2, %v2048_v55  ;;  %vm2033_vm2 = vcmp.ge.f32.partialorder %v1985_v59, 0.0  ;;  %v2049_v14 = vmul.f32 0.2, %v1985_v59  ;;  %2159 = vrot.lane.b32.xlu1 %v2142_v8, %s9463_s5 }
 0x277   : > { %2081 = vst.msk [vmem:[#allocation2 + $0x30] sm:$0xff] %vm2076_vm10, %v2064_v13  ;;  %v2067_v15 = vsel %vm2035_vm0, %v1993_v0, %v2051_v11 }
 0x278   : > { %2084 = vst.msk [vmem:[#allocation2 + $0x48] sm:$0xff] %vm2076_vm10, %v2067_v15  ;;  %v2065_v45 = vsel %vm2033_vm2, %v1985_v59, %v2049_v14 }
 0x279   : > { %2082 = vst.msk [vmem:[#allocation2 + $0x38] sm:$0xff] %vm2076_vm10, %v2065_v45 }
 0x27a   : > { %2224 = vrot.lane.b32.xlu1 %v2207_v57, %s9464_s28 }
 0x27d   : > { %v2261_v34 = vld [vmem:[#allocation2 + $0x40] sm:$0xff] }
 0x27e   : > { %v2354_v17 = vld [vmem:[#allocation2 + $0x2a] sm:$0xff] }
 0x27f   : > { %v2368_v18 = vpack.c.bf16 %v2354_v17, %v2353_v16  ;;  %v2262_v19 = vld [vmem:[#allocation2 + $0x48] sm:$0xff] }
 0x280   : > { %v2274_v20 = vpack.c.bf16 %v2262_v19, %v2261_v34  ;;  %v2418_v21 = vld [vmem:[#allocation2 + $0x2b] sm:$0xff]  ;;  %v2356_v26 = vld [vmem:[#allocation2 + $0x3a] sm:$0xff]  ;;  %v2357_v31 = vld [vmem:[#allocation2 + $0x42] sm:$0xff] }
 0x281   : > { %2385 = vrot.lane.b32.xlu0 %v2368_v18, %s9463_s5  ;;  %v2355_v25 = vld [vmem:[#allocation2 + $0x32] sm:$0xff]  ;;  %v2432_v28 = vpack.c.bf16 %v2418_v21, %v2417_v27  ;;  %v2358_v32 = vld [vmem:[#allocation2 + $0x4a] sm:$0xff]  ;;  %v2420_v35 = vld [vmem:[#allocation2 + $0x3b] sm:$0xff] }
 0x282   : > { %2293 = vrot.lane.b32.xlu1 %v2274_v20, %s9462_s0  ;;  %v2369_v38 = vpack.c.bf16 %v2356_v26, %v2355_v25  ;;  %v2419_v33 = vld [vmem:[#allocation2 + $0x33] sm:$0xff]  ;;  %v2322_v61 = vld [vmem:[#allocation2 + $0x29] sm:$0xff]  ;;  %v2325_v40 = vld [vmem:[#allocation2 + $0x41] sm:$0xff]  ;;  %v2370_v42 = vpack.c.bf16 %v2358_v32, %v2357_v31 }
 0x283   : > { %v2324_v36 = vld [vmem:[#allocation2 + $0x39] sm:$0xff]  ;;  %v2323_v22 = vld [vmem:[#allocation2 + $0x31] sm:$0xff]  ;;  %v2336_v37 = vpack.c.bf16 %v2322_v61, %v2321_v62  ;;  %v2326_v63 = vld [vmem:[#allocation2 + $0x49] sm:$0xff]  ;;  %v2433_v47 = vpack.c.bf16 %v2420_v35, %v2419_v33 }
 0x284   : > { %v2337_v39 = vpack.c.bf16 %v2324_v36, %v2323_v22  ;;  %v2099_v41 = vld [vmem:[#allocation2 + $0x3d] sm:$0xff]  ;;  %v2338_v43 = vpack.c.bf16 %v2326_v63, %v2325_v40  ;;  %v2100_v3 = vld [vmem:[#allocation2 + $0x45] sm:$0xff]  ;;  %v2097_v44 = vld [vmem:[#allocation2 + $0x2d] sm:$0xff] }
 0x285   : > { %2449 = vrot.lane.b32.xlu0 %v2432_v28, %s9464_s28  ;;  %v2098_v46 = vld [vmem:[#allocation2 + $0x35] sm:$0xff]  ;;  %v2421_v9 = vld [vmem:[#allocation2 + $0x43] sm:$0xff]  ;;  %v2422_v23 = vld [vmem:[#allocation2 + $0x4b] sm:$0xff]  ;;  %2344 = vst.msk [vmem:[#allocation3 + $0x18] sm:$0xff] %vm2076_vm10, %v2336_v37  ;;  %v2112_v48 = vpack.c.bf16 %v2100_v3, %v2099_v41 }
 0x286   : > { %2387 = vrot.lane.b32.xlu1 %v2369_v38, %s9463_s5  ;;  %2345 = vst.msk [vmem:[#allocation3 + $0x28] sm:$0xff] %vm2076_vm10, %v2337_v39  ;;  %v2111_v49 = vpack.c.bf16 %v2098_v46, %v2097_v44  ;;  %v2131_v52 = vld [vmem:[#allocation2 + $0x3e] sm:$0xff]  ;;  %v2132_v53 = vld [vmem:[#allocation2 + $0x46] sm:$0xff]  ;;  %2346 = vst.msk [vmem:[#allocation3 + $0x38] sm:$0xff] %vm2076_vm10, %v2338_v43  ;;  %v2434_v1 = vpack.c.bf16 %v2422_v23, %v2421_v9 }
 0x287   : > { %2120 = vst.msk [vmem:[#allocation3 + $0x30] sm:$0xff] %vm2076_vm10, %v2112_v48  ;;  %v2144_v5 = vpack.c.bf16 %v2132_v53, %v2131_v52  ;;  %v2130_v0 = vld [vmem:[#allocation2 + $0x36] sm:$0xff]  ;;  %v2196_v59 = vld [vmem:[#allocation2 + $0x3f] sm:$0xff]  ;;  %v2197_v8 = vld [vmem:[#allocation2 + $0x47] sm:$0xff] }
 0x288   : > { %v6815_v24 = vpop.f32.mrb[8].mxu0  ;;  %2119 = vst.msk [vmem:[#allocation3 + $0x20] sm:$0xff] %vm2076_vm10, %v2111_v49  ;;  %v2129_v29 = vld [vmem:[#allocation2 + $0x2e] sm:$0xff]  ;;  %v2209_v15 = vpack.c.bf16 %v2197_v8, %v2196_v59  ;;  %v2195_v45 = vld [vmem:[#allocation2 + $0x37] sm:$0xff] }
 0x289   : > { %v2006_v50 = vadd.f32 %v6815_v24, %v8343_v7  ;;  %2389 = vrot.lane.b32.xlu0 %v2370_v42, %s9463_s5  ;;  %v1997_v51 = vpop.f32.mrb[9].mxu0  ;;  %v2143_v13 = vpack.c.bf16 %v2130_v0, %v2129_v29  ;;  %v2194_v57 = vld [vmem:[#allocation2 + $0x2f] sm:$0xff]  ;;  %v2260_v17 = vld [vmem:[#allocation2 + $0x38] sm:$0xff] }
 0x28a   : > { %v1998_v54 = vadd.f32 %v8343_v7, %v1997_v51  ;;  %2451 = vrot.lane.b32.xlu1 %v2433_v47, %s9464_s28  ;;  %v6816_v56 = vpop.f32.mrb[10].mxu0  ;;  %v2208_v16 = vpack.c.bf16 %v2195_v45, %v2194_v57  ;;  %v2259_v18 = vld [vmem:[#allocation2 + $0x30] sm:$0xff] }
 0x28b   : > { %vm2038_vm1 = vcmp.ge.f32.partialorder %v2006_v50, 0.0  ;;  %v2054_v4 = vmul.f32 0.2, %v2006_v50  ;;  %v2009_v58 = vadd.f32 %v6816_v56, %v8343_v7  ;;  %v2000_v60 = vpop.f32.mrb[11].mxu0  ;;  %v2273_v34 = vpack.c.bf16 %v2260_v17, %v2259_v18 }
 0x28c   : > { %vm2036_vm3 = vcmp.ge.f32.partialorder %v1998_v54, 0.0  ;;  %v2052_v2 = vmul.f32 0.2, %v1998_v54  ;;  %v2001_v30 = vadd.f32 %v8343_v7, %v2000_v60 }
 0x28d   : > { %v2070_v6 = vsel %vm2038_vm1, %v2006_v50, %v2054_v4  ;;  %vm2039_vm4 = vcmp.ge.f32.partialorder %v2009_v58, 0.0  ;;  %v2055_v55 = vmul.f32 0.2, %v2009_v58  ;;  %2453 = vrot.lane.b32.xlu0 %v2434_v1, %s9464_s28 }
 0x28e   : > { %2087 = vst.msk [vmem:[#allocation2 + $0x80] sm:$0xff] %vm2076_vm10, %v2070_v6  ;;  %v2068_v10 = vsel %vm2036_vm3, %v1998_v54, %v2052_v2  ;;  %vm2037_vm5 = vcmp.ge.f32.partialorder %v2001_v30, 0.0  ;;  %v2053_v11 = vmul.f32 0.2, %v2001_v30  ;;  %2163 = vrot.lane.b32.xlu1 %v2144_v5, %s9463_s5 }
 0x28f   : > { %2085 = vst.msk [vmem:[#allocation2 + $0x70] sm:$0xff] %vm2076_vm10, %v2068_v10  ;;  %v2071_v12 = vsel %vm2039_vm4, %v2009_v58, %v2055_v55 }
 0x290   : > { %2088 = vst.msk [vmem:[#allocation2 + $0x88] sm:$0xff] %vm2076_vm10, %v2071_v12  ;;  %v2069_v14 = vsel %vm2037_vm5, %v2001_v30, %v2053_v11 }
 0x291   : > { %2086 = vst.msk [vmem:[#allocation2 + $0x78] sm:$0xff] %vm2076_vm10, %v2069_v14  ;;  %2161 = vrot.lane.b32.xlu0 %v2143_v13, %s9463_s5 }
 0x292   : > { %2228 = vrot.lane.b32.xlu1 %v2209_v15, %s9464_s28 }
 0x295   : > { %2226 = vrot.lane.b32.xlu0 %v2208_v16, %s9464_s28  ;;  %v2265_v19 = vld [vmem:[#allocation2 + $0x80] sm:$0xff] }
 0x296   : > { %v2133_v28 = vld [vmem:[#allocation2 + $0x6e] sm:$0xff] }
 0x297   : > { %v2266_v20 = vld [vmem:[#allocation2 + $0x88] sm:$0xff]  ;;  %v2263_v50 = vld [vmem:[#allocation2 + $0x70] sm:$0xff] }
 0x298   : > { %v2276_v21 = vpack.c.bf16 %v2266_v20, %v2265_v19  ;;  %v2134_v25 = vld [vmem:[#allocation2 + $0x76] sm:$0xff]  ;;  %v2101_v32 = vld [vmem:[#allocation2 + $0x6d] sm:$0xff]  ;;  %v2104_v63 = vld [vmem:[#allocation2 + $0x85] sm:$0xff] }
 0x299   : > { %2291 = vrot.lane.b32.xlu0 %v2273_v34, %s9462_s0  ;;  %v2359_v26 = vld [vmem:[#allocation2 + $0x72] sm:$0xff]  ;;  %v2360_v27 = vld [vmem:[#allocation2 + $0x7a] sm:$0xff]  ;;  %v2145_v31 = vpack.c.bf16 %v2134_v25, %v2133_v28  ;;  %v2136_v23 = vld [vmem:[#allocation2 + $0x86] sm:$0xff] }
 0x29a   : > { %2297 = vrot.lane.b32.xlu1 %v2276_v21, %s9462_s0  ;;  %v2199_v62 = vld [vmem:[#allocation2 + $0x77] sm:$0xff]  ;;  %v2371_v33 = vpack.c.bf16 %v2360_v27, %v2359_v26  ;;  %v2198_v41 = vld [vmem:[#allocation2 + $0x6f] sm:$0xff]  ;;  %v2200_v2 = vld [vmem:[#allocation2 + $0x7f] sm:$0xff] }
 0x29b   : > { %v2423_v38 = vld [vmem:[#allocation2 + $0x73] sm:$0xff]  ;;  %v2424_v22 = vld [vmem:[#allocation2 + $0x7b] sm:$0xff]  ;;  %v2210_v43 = vpack.c.bf16 %v2199_v62, %v2198_v41  ;;  %v2201_v30 = vld [vmem:[#allocation2 + $0x87] sm:$0xff] }
 0x29c   : > { %v2102_v35 = vld [vmem:[#allocation2 + $0x75] sm:$0xff]  ;;  %v2103_v40 = vld [vmem:[#allocation2 + $0x7d] sm:$0xff]  ;;  %v2435_v44 = vpack.c.bf16 %v2424_v22, %v2423_v38  ;;  %v2211_v55 = vpack.c.bf16 %v2201_v30, %v2200_v2 }
 0x29d   : > { %v2328_v61 = vld [vmem:[#allocation2 + $0x79] sm:$0xff]  ;;  %v2327_v36 = vld [vmem:[#allocation2 + $0x71] sm:$0xff]  ;;  %2165 = vrot.lane.b32.xlu0 %v2145_v31, %s9463_s5  ;;  %v2113_v37 = vpack.c.bf16 %v2102_v35, %v2101_v32  ;;  %v2114_v42 = vpack.c.bf16 %v2104_v63, %v2103_v40  ;;  %v2361_v59 = vld [vmem:[#allocation2 + $0x82] sm:$0xff] }
 0x29e   : > { %v2339_v39 = vpack.c.bf16 %v2328_v61, %v2327_v36  ;;  %2391 = vrot.lane.b32.xlu1 %v2371_v33, %s9463_s5  ;;  %v2264_v46 = vld [vmem:[#allocation2 + $0x78] sm:$0xff]  ;;  %v2425_v14 = vld [vmem:[#allocation2 + $0x83] sm:$0xff] }
 0x29f   : > { %2121 = vst.msk [vmem:[#allocation3 + $0x40] sm:$0xff] %vm2076_vm10, %v2113_v37  ;;  %2122 = vst.msk [vmem:[#allocation3 + $0x50] sm:$0xff] %vm2076_vm10, %v2114_v42  ;;  %v2135_v9 = vld [vmem:[#allocation2 + $0x7e] sm:$0xff]  ;;  %v2275_v54 = vpack.c.bf16 %v2264_v46, %v2263_v50 }
 0x2a0   : > { %2347 = vst.msk [vmem:[#allocation3 + $0x48] sm:$0xff] %vm2076_vm10, %v2339_v39  ;;  %v6819_v3 = vpop.f32.mrb[12].mxu0  ;;  %v2146_v58 = vpack.c.bf16 %v2136_v23, %v2135_v9  ;;  %v2329_v16 = vld [vmem:[#allocation2 + $0x81] sm:$0xff] }
 0x2a1   : > { %v2022_v24 = vadd.f32 %v6819_v3, %v8343_v7  ;;  %2230 = vrot.lane.b32.xlu0 %v2210_v43, %s9464_s28  ;;  %v2013_v47 = vpop.f32.mrb[13].mxu0 }
 0x2a2   : > { %v2014_v48 = vadd.f32 %v8343_v7, %v2013_v47  ;;  %2455 = vrot.lane.b32.xlu1 %v2435_v44, %s9464_s28  ;;  %v6820_v49 = vpop.f32.mrb[14].mxu0 }
 0x2a3   : > { %vm2042_vm6 = vcmp.ge.f32.partialorder %v2022_v24, 0.0  ;;  %v2058_v51 = vmul.f32 0.2, %v2022_v24  ;;  %v2025_v52 = vadd.f32 %v6820_v49, %v8343_v7  ;;  %v2016_v53 = vpop.f32.mrb[15].mxu0 }
 0x2a4   : > { %vm2040_vm7 = vcmp.ge.f32.partialorder %v2014_v48, 0.0  ;;  %v2056_v56 = vmul.f32 0.2, %v2014_v48  ;;  %v2017_v4 = vadd.f32 %v8343_v7, %v2016_v53  ;;  %v7520_v53 = vld [vmem:[%s9465_s10] sm:$0xff]  }
 0x2a5   : > { %v2074_v60 = vsel %vm2042_vm6, %v2022_v24, %v2058_v51  ;;  %vm2043_vm9 = vcmp.ge.f32.partialorder %v2025_v52, 0.0  ;;  %v2059_v1 = vmul.f32 0.2, %v2025_v52  ;;  %2295 = vrot.lane.b32.xlu0 %v2275_v54, %s9462_s0  ;;  %6821 = vmatprep.subr.bf16.mxu0 %v7520_v53 }
 0x2a6   : > { %2091 = vst.msk [vmem:[#allocation2 + $0xa0] sm:$0xff] %vm2076_vm10, %v2074_v60  ;;  %v2072_v5 = vsel %vm2040_vm7, %v2014_v48, %v2056_v56  ;;  %vm2041_vm11 = vcmp.ge.f32.partialorder %v2017_v4, 0.0  ;;  %v2057_v0 = vmul.f32 0.2, %v2017_v4  ;;  %2167 = vrot.lane.b32.xlu1 %v2146_v58, %s9463_s5  ;;  %6822 = vmatpush3.bf16.msra.mxu0 %v7520_v53  ;;  %v7527_v53 = vld [vmem:[%s9465_s10 + $0x38] sm:$0xff]  }
 0x2a7   : > { %2089 = vst.msk [vmem:[#allocation2 + $0x90] sm:$0xff] %vm2076_vm10, %v2072_v5  ;;  %v2075_v6 = vsel %vm2043_vm9, %v2025_v52, %v2059_v1 }
 0x2a8   : > { %2092 = vst.msk [vmem:[#allocation2 + $0xa8] sm:$0xff] %vm2076_vm10, %v2075_v6  ;;  %v2073_v7 = vsel %vm2041_vm11, %v2017_v4, %v2057_v0 }
 0x2a9   : > { %2090 = vst.msk [vmem:[#allocation2 + $0x98] sm:$0xff] %vm2076_vm10, %v2073_v7 }
 0x2aa   : > { %2232 = vrot.lane.b32.xlu1 %v2211_v55, %s9464_s28 }
 0x2ad   : > { %v2269_v9 = vld [vmem:[#allocation2 + $0xa0] sm:$0xff] }
 0x2ae   : > { %v2362_v8 = vld [vmem:[#allocation2 + $0x8a] sm:$0xff] }
 0x2af   : > { %v2372_v10 = vpack.c.bf16 %v2362_v8, %v2361_v59  ;;  %v2426_v12 = vld [vmem:[#allocation2 + $0x8b] sm:$0xff]  ;;  %v2333_v61 = vld [vmem:[#allocation2 + $0xa1] sm:$0xff] }
 0x2b0   : > { %v2363_v11 = vld [vmem:[#allocation2 + $0x92] sm:$0xff]  ;;  %v2364_v29 = vld [vmem:[#allocation2 + $0x9a] sm:$0xff]  ;;  %v2436_v57 = vpack.c.bf16 %v2426_v12, %v2425_v14  ;;  %v2140_v19 = vld [vmem:[#allocation2 + $0xa6] sm:$0xff] }
 0x2b1   : > { %2393 = vrot.lane.b32.xlu0 %v2372_v10, %s9463_s5  ;;  %v2373_v13 = vpack.c.bf16 %v2364_v29, %v2363_v11  ;;  %v2427_v15 = vld [vmem:[#allocation2 + $0x93] sm:$0xff]  ;;  %v2428_v45 = vld [vmem:[#allocation2 + $0x9b] sm:$0xff]  ;;  %v2330_v21 = vld [vmem:[#allocation2 + $0x89] sm:$0xff] }
 0x2b2   : > { %v2137_v17 = vld [vmem:[#allocation2 + $0x8e] sm:$0xff]  ;;  %v2138_v18 = vld [vmem:[#allocation2 + $0x96] sm:$0xff]  ;;  %v2139_v34 = vld [vmem:[#allocation2 + $0x9e] sm:$0xff]  ;;  %v2437_v20 = vpack.c.bf16 %v2428_v45, %v2427_v15  ;;  %v2340_v27 = vpack.c.bf16 %v2330_v21, %v2329_v16 }
 0x2b3   : > { %2395 = vrot.lane.b32.xlu1 %v2373_v13, %s9463_s5  ;;  %v2332_v25 = vld [vmem:[#allocation2 + $0x99] sm:$0xff]  ;;  %v2331_v26 = vld [vmem:[#allocation2 + $0x91] sm:$0xff]  ;;  %v2147_v32 = vpack.c.bf16 %v2138_v18, %v2137_v17  ;;  %v2108_v35 = vld [vmem:[#allocation2 + $0xa5] sm:$0xff]  ;;  %v2148_v40 = vpack.c.bf16 %v2140_v19, %v2139_v34 }
 0x2b4   : > { %v2341_v28 = vpack.c.bf16 %v2332_v25, %v2331_v26  ;;  %v2105_v31 = vld [vmem:[#allocation2 + $0x8d] sm:$0xff]  ;;  %v2106_v62 = vld [vmem:[#allocation2 + $0x95] sm:$0xff]  ;;  %v2107_v38 = vld [vmem:[#allocation2 + $0x9d] sm:$0xff]  ;;  %2348 = vst.msk [vmem:[#allocation3 + $0x58] sm:$0xff] %vm2076_vm10, %v2340_v27 }
 0x2b5   : > { %2457 = vrot.lane.b32.xlu0 %v2436_v57, %s9464_s28  ;;  %v2115_v33 = vpack.c.bf16 %v2106_v62, %v2105_v31  ;;  %v2334_v36 = vld [vmem:[#allocation2 + $0xa9] sm:$0xff]  ;;  %v2203_v22 = vld [vmem:[#allocation2 + $0x97] sm:$0xff]  ;;  %v2116_v37 = vpack.c.bf16 %v2108_v35, %v2107_v38  ;;  %v2204_v41 = vld [vmem:[#allocation2 + $0x9f] sm:$0xff] }
 0x2b6   : > { %2349 = vst.msk [vmem:[#allocation3 + $0x68] sm:$0xff] %vm2076_vm10, %v2341_v28  ;;  %v2342_v39 = vpack.c.bf16 %v2334_v36, %v2333_v61  ;;  %v2202_v63 = vld [vmem:[#allocation2 + $0x8f] sm:$0xff]  ;;  %v2205_v42 = vld [vmem:[#allocation2 + $0xa7] sm:$0xff]  ;;  %v2268_v3 = vld [vmem:[#allocation2 + $0x98] sm:$0xff] }
 0x2b7   : > { %2459 = vrot.lane.b32.xlu1 %v2437_v20, %s9464_s28  ;;  %2123 = vst.msk [vmem:[#allocation3 + $0x60] sm:$0xff] %vm2076_vm10, %v2115_v33  ;;  %2124 = vst.msk [vmem:[#allocation3 + $0x70] sm:$0xff] %vm2076_vm10, %v2116_v37  ;;  %v2212_v43 = vpack.c.bf16 %v2203_v22, %v2202_v63  ;;  %v2213_v44 = vpack.c.bf16 %v2205_v42, %v2204_v41  ;;  %v2267_v46 = vld [vmem:[#allocation2 + $0x90] sm:$0xff]  ;;  %v2270_v24 = vld [vmem:[#allocation2 + $0xa8] sm:$0xff] }
 0x2b8   : > { %2350 = vst.msk [vmem:[#allocation3 + $0x78] sm:$0xff] %vm2076_vm10, %v2342_v39  ;;  %v2277_v47 = vpack.c.bf16 %v2268_v3, %v2267_v46  ;;  %v2365_v23 = vld [vmem:[#allocation2 + $0xa2] sm:$0xff]  ;;  %v2366_v48 = vld [vmem:[#allocation2 + $0xaa] sm:$0xff]  ;;  %v2278_v49 = vpack.c.bf16 %v2270_v24, %v2269_v9  ;;  %vm2181_vm10 = vcmask 523520  }
 0x2b9   : > { %2169 = vrot.lane.b32.xlu0 %v2147_v32, %s9463_s5  ;;  %v2374_v50 = vpack.c.bf16 %v2366_v48, %v2365_v23  ;;  %v2429_v51 = vld [vmem:[#allocation2 + $0xa3] sm:$0xff]  ;;  %v2430_v52 = vld [vmem:[#allocation2 + $0xab] sm:$0xff] }
 0x2ba   : > { %v2438_v54 = vpack.c.bf16 %v2430_v52, %v2429_v51  ;;  %v7521_v23 = vld [vmem:[%s9465_s10 + $0x8] sm:$0xff]   ;;  %v7522_v48 = vld [vmem:[%s9465_s10 + $0x10] sm:$0xff]  }
 0x2bb   : > { %2171 = vrot.lane.b32.xlu1 %v2148_v40, %s9463_s5  ;;  %6823 = vmatprep.subr.bf16.mxu0 %v7521_v23  ;;  %v7525_v51 = vld [vmem:[%s9465_s10 + $0x28] sm:$0xff]   ;;  %v7526_v52 = vld [vmem:[%s9465_s10 + $0x30] sm:$0xff]  }
 0x2bc   : > { %6824 = vmatpush3.bf16.msra.mxu0 %v7521_v23 }
 0x2bd   : > { %2234 = vrot.lane.b32.xlu0 %v2212_v43, %s9464_s28  ;;  %6825 = vmatprep.subr.bf16.mxu0 %v7522_v48 }
 0x2bf   : > { %2236 = vrot.lane.b32.xlu1 %v2213_v44, %s9464_s28 }
 0x2c0   : > { %6826 = vmatpush3.bf16.msra.mxu0 %v7522_v48 }
 0x2c1   : > { %2299 = vrot.lane.b32.xlu0 %v2277_v47, %s9462_s0 }
 0x2c3   : > { %2301 = vrot.lane.b32.xlu1 %v2278_v49, %s9462_s0  ;;  %v7523_v49 = vld [vmem:[%s9465_s10 + $0x18] sm:$0xff]   ;;  %s7720_s0 = smov [#allocation4]  }
 0x2c4   : > { %6827 = vmatprep.subr.bf16.mxu0 %v7523_v49 }
 0x2c5   : > { %2397 = vrot.lane.b32.xlu0 %v2374_v50, %s9463_s5  ;;  %v7524_v50 = vld [vmem:[%s9465_s10 + $0x20] sm:$0xff]   ;;  %6828 = vmatpush3.bf16.msra.mxu0 %v7523_v49  ;;  %s9469_s10 = sld [smem:[#allocation20_spill]]  ;;  %s9471_s5 = sld [smem:[#allocation13_spill]] }
 0x2c6   : > { %6829 = vmatprep.subr.bf16.mxu0 %v7524_v50 }
 0x2c9   : > { %2461 = vrot.lane.b32.xlu0 %v2438_v54, %s9464_s28  ;;  %6830 = vmatpush3.bf16.msra.mxu0 %v7524_v50  ;;  %v7528_v54 = vld [vmem:[%s9466_s3] sm:$0xff]  }
 0x2ca   : > { %6831 = vmatprep.subr.bf16.mxu0 %v7525_v51 }
 0x2cd   : > { %6832 = vmatpush3.bf16.msra.mxu0 %v7525_v51 }
 0x2ce   : > { %6833 = vmatprep.subr.bf16.mxu0 %v7526_v52 }
 0x2d1   : > { %6834 = vmatpush3.bf16.msra.mxu0 %v7526_v52 }
 0x2d2   : > { %6835 = vmatprep.subr.bf16.mxu0 %v7527_v53 }
 0x2d5   : > { %6836 = vmatpush3.bf16.msra.mxu0 %v7527_v53 }
 0x2d6   : > { %6853 = vmatprep.subr.bf16.mxu0 %v7528_v54 }
 0x2dc   : > { %v2290_v56 = vpop.permute.xlu1 %2289 }
 0x2dd   : > { %v2158_v4 = vpop.permute.xlu0 %2157 }
 0x2de   : > { %2182 = vst.msk [vmem:[#allocation3] sm:$0xff] %vm2181_vm10, %v2158_v4 }
 0x2e0   : > { %v2384_v58 = vpop.permute.xlu1 %2383 }
 0x2e1   : > { %2407 = vst.msk [vmem:[#allocation3 + $0x8] sm:$0xff] %vm2181_vm10, %v2384_v58  ;;  %v2223_v60 = vpop.permute.xlu0 %2222  ;;  %v7536_v58 = vld [vmem:[%s9467_s30] sm:$0xff]  }
 0x2e2   : > { %2247 = vst.msk [vmem:[#allocation3] sm:$0xff] %vm2246_vm12, %v2223_v60  ;;  %v7537_v60 = vld [vmem:[%s9468_s29 + $0x8] sm:$0xff]   ;;  %6885 = vmatprep.subr.bf16.mxu1 %v7536_v58 }
 0x2e4   : > { %v2448_v1 = vpop.permute.xlu1 %2447 }
 0x2e5   : > { %2471 = vst.msk [vmem:[#allocation3 + $0x8] sm:$0xff] %vm2246_vm12, %v2448_v1  ;;  %v2288_v2 = vpop.permute.xlu0 %2287 }
 0x2e6   : > { %2311 = vst.msk [vmem:[#allocation3] sm:$0xff] %vm866_vm8, %v2288_v2 }
 0x2e8   : > { %v2160_v30 = vpop.permute.xlu1 %2159 }
 0x2e9   : > { %2183 = vst.msk [vmem:[#allocation3 + $0x10] sm:$0xff] %vm2181_vm10, %v2160_v30  ;;  %v8533_v30 = vld [vmem:[%s9469_s10] ss:$0 sm:$0xff]  ;;  %s9470_s10 = sshll.u32 %s9483_s11, 6 }
 0x2ea   : > { %s8590_s6 = scalar_lea.vmem %s9471_s5, %s9470_s10  ;;  %s830_s5 = sand.u32 1, %s7702_s4  }
 0x2eb   : > { %s9340_s10 = scalar_lea.sflag [#allocation5], %s830_s5 }
 0x2ec   : > { %v2225_v5 = vpop.permute.xlu1 %2224  ;;  %v2480_v0 = vld [vmem:[#allocation3 + $0x8] sm:$0xff] }
 0x2ed   : > { %2248 = vst.msk [vmem:[#allocation3 + $0x10] sm:$0xff] %vm2246_vm12, %v2225_v5  ;;  %2662 = vmatprep.mubr.bf16.mxu1 %v2480_v0  ;;  %v2479_v6 = vld [vmem:[#allocation3] sm:$0xff] }
 0x2ee   : > { %2312 = vst.msk [vmem:[#allocation3 + $0x10] sm:$0xff] %vm866_vm8, %v2290_v56  ;;  %2663 = vmatmul.mubr.bf16.vlgmr.msra.gmra.mrb[0].mxu1 %v2479_v6  ;;  %v7538_v6 = vld [vmem:[%s9468_s29 + $0x10] sm:$0xff]  }
 0x2ef   : > { %6886 = vmatpush3.bf16.msra.mxu1 %v7536_v58 }
 0x2f0   : > { %6887 = vmatprep.subr.bf16.mxu1 %v7537_v60 }
 0x2f3   : > { %v2386_v7 = vpop.permute.xlu0 %2385  ;;  %6888 = vmatpush3.bf16.msra.mxu1 %v7537_v60 }
 0x2f4   : > { %2408 = vst.msk [vmem:[#allocation3 + $0x18] sm:$0xff] %vm2181_vm10, %v2386_v7  ;;  %v2294_v55 = vpop.permute.xlu1 %2293  ;;  %6889 = vmatprep.subr.bf16.mxu1 %v7538_v6 }
 0x2f5   : > { %v2481_v14 = vld [vmem:[#allocation3 + $0x10] sm:$0xff] }
 0x2f7   : > { %v2450_v59 = vpop.permute.xlu0 %2449  ;;  %6890 = vmatpush3.bf16.msra.mxu1 %v7538_v6 }
 0x2f8   : > { %2472 = vst.msk [vmem:[#allocation3 + $0x18] sm:$0xff] %vm2246_vm12, %v2450_v59  ;;  %v2388_v8 = vpop.permute.xlu1 %2387 }
 0x2f9   : > { %2409 = vst.msk [vmem:[#allocation3 + $0x28] sm:$0xff] %vm2181_vm10, %v2388_v8  ;;  %v7539_v8 = vld [vmem:[%s9468_s29 + $0x18] sm:$0xff]  }
 0x2fa   : > { %6891 = vmatprep.subr.bf16.mxu1 %v7539_v8 }
 0x2fb   : > { %v2390_v10 = vpop.permute.xlu0 %2389  ;;  %6892 = vmatpush3.bf16.msra.mxu1 %v7539_v8 }
 0x2fc   : > { %2410 = vst.msk [vmem:[#allocation3 + $0x38] sm:$0xff] %vm2181_vm10, %v2390_v10  ;;  %v2452_v11 = vpop.permute.xlu1 %2451  ;;  %v7540_v10 = vld [vmem:[%s9468_s29 + $0x20] sm:$0xff]  }
 0x2fd   : > { %2473 = vst.msk [vmem:[#allocation3 + $0x28] sm:$0xff] %vm2246_vm12, %v2452_v11  ;;  %6893 = vmatprep.subr.bf16.mxu1 %v7540_v10  ;;  %v7541_v11 = vld [vmem:[%s9468_s29 + $0x28] sm:$0xff]  }
 0x2ff   : > { %v2454_v29 = vpop.permute.xlu0 %2453  ;;  %v2482_v12 = vld [vmem:[#allocation3 + $0x18] sm:$0xff]  ;;  %6894 = vmatpush3.bf16.msra.mxu1 %v7540_v10 }
 0x300   : > { %2474 = vst.msk [vmem:[#allocation3 + $0x38] sm:$0xff] %vm2246_vm12, %v2454_v29  ;;  %v2164_v13 = vpop.permute.xlu1 %2163  ;;  %2670 = vmatprep.mubr.bf16.mxu1 %v2482_v12  ;;  %6895 = vmatprep.subr.bf16.mxu1 %v7541_v11 }
 0x301   : > { %2185 = vst.msk [vmem:[#allocation3 + $0x30] sm:$0xff] %vm2181_vm10, %v2164_v13  ;;  %2671 = vmatmul.mubr.bf16.gmra.mrb[4].mxu1 %v2481_v14 }
 0x303   : > { %v2162_v15 = vpop.permute.xlu0 %2161  ;;  %6896 = vmatpush3.bf16.msra.mxu1 %v7541_v11 }
 0x304   : > { %2184 = vst.msk [vmem:[#allocation3 + $0x20] sm:$0xff] %vm2181_vm10, %v2162_v15  ;;  %v2229_v45 = vpop.permute.xlu1 %2228  ;;  %v2484_v57 = vld [vmem:[#allocation3 + $0x28] sm:$0xff]  ;;  %v7542_v15 = vld [vmem:[%s9468_s29 + $0x30] sm:$0xff]  }
 0x305   : > { %2250 = vst.msk [vmem:[#allocation3 + $0x30] sm:$0xff] %vm2246_vm12, %v2229_v45  ;;  %2678 = vmatprep.mubr.bf16.mxu1 %v2484_v57  ;;  %6897 = vmatprep.subr.bf16.mxu1 %v7542_v15 }
 0x306   : > { %2314 = vst.msk [vmem:[#allocation3 + $0x30] sm:$0xff] %vm866_vm8, %v2294_v55 }
 0x307   : > { %v2227_v16 = vpop.permute.xlu0 %2226  ;;  %v2486_v26 = vld [vmem:[#allocation3 + $0x38] sm:$0xff]  ;;  %6898 = vmatpush3.bf16.msra.mxu1 %v7542_v15 }
 0x308   : > { %2249 = vst.msk [vmem:[#allocation3 + $0x20] sm:$0xff] %vm2246_vm12, %v2227_v16 }
 0x30b   : > { %v2292_v17 = vpop.permute.xlu0 %2291 }
 0x30c   : > { %2313 = vst.msk [vmem:[#allocation3 + $0x20] sm:$0xff] %vm866_vm8, %v2292_v17  ;;  %v2298_v18 = vpop.permute.xlu1 %2297 }
 0x30d   : > { %v2485_v31 = vld [vmem:[#allocation3 + $0x30] sm:$0xff] }
 0x30f   : > { %v2166_v34 = vpop.permute.xlu0 %2165 }
 0x310   : > { %2186 = vst.msk [vmem:[#allocation3 + $0x40] sm:$0xff] %vm2181_vm10, %v2166_v34  ;;  %v2392_v19 = vpop.permute.xlu1 %2391  ;;  %v7529_v34 = vld [vmem:[%s9466_s3 + $0x8] sm:$0xff]  }
 0x311   : > { %2411 = vst.msk [vmem:[#allocation3 + $0x48] sm:$0xff] %vm2181_vm10, %v2392_v19  ;;  %v7530_v19 = vld [vmem:[%s9466_s3 + $0x10] sm:$0xff]  }
 0x313   : > { %v2231_v20 = vpop.permute.xlu0 %2230  ;;  %v2483_v21 = vld [vmem:[#allocation3 + $0x20] sm:$0xff] }
 0x314   : > { %2251 = vst.msk [vmem:[#allocation3 + $0x40] sm:$0xff] %vm2246_vm12, %v2231_v20  ;;  %v2456_v25 = vpop.permute.xlu1 %2455  ;;  %2679 = vmatmul.mubr.bf16.gmra.mrb[8].mxu1 %v2483_v21  ;;  %v7531_v20 = vld [vmem:[%s9466_s3 + $0x18] sm:$0xff]  }
 0x315   : > { %2475 = vst.msk [vmem:[#allocation3 + $0x48] sm:$0xff] %vm2246_vm12, %v2456_v25  ;;  %2686 = vmatprep.mubr.bf16.mxu1 %v2486_v26  ;;  %v7532_v26 = vld [vmem:[%s9466_s3 + $0x20] sm:$0xff]  }
 0x317   : > { %v2296_v27 = vpop.permute.xlu0 %2295 }
 0x318   : > { %2315 = vst.msk [vmem:[#allocation3 + $0x40] sm:$0xff] %vm866_vm8, %v2296_v27  ;;  %v2168_v28 = vpop.permute.xlu1 %2167 }
 0x319   : > { %2187 = vst.msk [vmem:[#allocation3 + $0x50] sm:$0xff] %vm2181_vm10, %v2168_v28 }
 0x31c   : > { %v2233_v62 = vpop.permute.xlu1 %2232  ;;  %2687 = vmatmul.mubr.bf16.gmra.mrb[12].mxu1 %v2485_v31  ;;  %v2488_v38 = vld [vmem:[#allocation3 + $0x48] sm:$0xff] }
 0x31d   : > { %2252 = vst.msk [vmem:[#allocation3 + $0x50] sm:$0xff] %vm2246_vm12, %v2233_v62  ;;  %2694 = vmatprep.mubr.bf16.mxu1 %v2488_v38  ;;  %v7533_v38 = vld [vmem:[%s9466_s3 + $0x28] sm:$0xff]  }
 0x31e   : > { %2316 = vst.msk [vmem:[#allocation3 + $0x50] sm:$0xff] %vm866_vm8, %v2298_v18 }
 0x31f   : > { %v2487_v33 = vld [vmem:[#allocation3 + $0x40] sm:$0xff] }
 0x323   : > { %v2394_v32 = vpop.permute.xlu0 %2393 }
 0x324   : > { %2412 = vst.msk [vmem:[#allocation3 + $0x58] sm:$0xff] %vm2181_vm10, %v2394_v32  ;;  %2695 = vmatmul.mubr.bf16.gmra.mrb[16].mxu1 %v2487_v33 }
 0x325   : > { %v2396_v35 = vpop.permute.xlu1 %2395  ;;  %v2489_v63 = vld [vmem:[#allocation3 + $0x50] sm:$0xff] }
 0x326   : > { %2413 = vst.msk [vmem:[#allocation3 + $0x68] sm:$0xff] %vm2181_vm10, %v2396_v35 }
 0x327   : > { %v2458_v61 = vpop.permute.xlu0 %2457 }
 0x328   : > { %2476 = vst.msk [vmem:[#allocation3 + $0x58] sm:$0xff] %vm2246_vm12, %v2458_v61 }
 0x329   : > { %v2460_v36 = vpop.permute.xlu1 %2459 }
 0x32a   : > { %2477 = vst.msk [vmem:[#allocation3 + $0x68] sm:$0xff] %vm2246_vm12, %v2460_v36 }
 0x32b   : > { %v2170_v22 = vpop.permute.xlu0 %2169 }
 0x32c   : > { %2188 = vst.msk [vmem:[#allocation3 + $0x60] sm:$0xff] %vm2181_vm10, %v2170_v22  ;;  %v7534_v22 = vld [vmem:[%s9466_s3 + $0x30] sm:$0xff]  }
 0x32d   : > { %v2172_v37 = vpop.permute.xlu1 %2171 }
 0x32e   : > { %2189 = vst.msk [vmem:[#allocation3 + $0x70] sm:$0xff] %vm2181_vm10, %v2172_v37 }
 0x32f   : > { %v2235_v39 = vpop.permute.xlu0 %2234  ;;  %v2490_v40 = vld [vmem:[#allocation3 + $0x58] sm:$0xff] }
 0x330   : > { %2253 = vst.msk [vmem:[#allocation3 + $0x60] sm:$0xff] %vm2246_vm12, %v2235_v39  ;;  %2702 = vmatprep.mubr.bf16.mxu1 %v2490_v40 }
 0x331   : > { %v2237_v41 = vpop.permute.xlu1 %2236  ;;  %2703 = vmatmul.mubr.bf16.gmra.mrb[20].mxu1 %v2489_v63  ;;  %v2492_v42 = vld [vmem:[#allocation3 + $0x68] sm:$0xff] }
 0x332   : > { %2254 = vst.msk [vmem:[#allocation3 + $0x70] sm:$0xff] %vm2246_vm12, %v2237_v41  ;;  %2710 = vmatprep.mubr.bf16.mxu1 %v2492_v42  ;;  %v7535_v41 = vld [vmem:[%s9466_s3 + $0x38] sm:$0xff]  }
 0x333   : > { %v2300_v43 = vpop.permute.xlu0 %2299 }
 0x334   : > { %2317 = vst.msk [vmem:[#allocation3 + $0x60] sm:$0xff] %vm866_vm8, %v2300_v43 }
 0x335   : > { %v2302_v3 = vpop.permute.xlu1 %2301 }
 0x336   : > { %2318 = vst.msk [vmem:[#allocation3 + $0x70] sm:$0xff] %vm866_vm8, %v2302_v3 }
 0x337   : > { %v2398_v44 = vpop.permute.xlu0 %2397 }
 0x338   : > { %2414 = vst.msk [vmem:[#allocation3 + $0x78] sm:$0xff] %vm2181_vm10, %v2398_v44 }
 0x33b   : > { %v2462_v46 = vpop.permute.xlu0 %2461  ;;  %v2491_v24 = vld [vmem:[#allocation3 + $0x60] sm:$0xff] }
 0x33c   : > { %2478 = vst.msk [vmem:[#allocation3 + $0x78] sm:$0xff] %vm2246_vm12, %v2462_v46  ;;  %2711 = vmatmul.mubr.bf16.gmra.mrb[24].mxu1 %v2491_v24 }
 0x33d   : > { %v2493_v9 = vld [vmem:[#allocation3 + $0x70] sm:$0xff] }
 0x343   : > { %v2494_v47 = vld [vmem:[#allocation3 + $0x78] sm:$0xff] }
 0x344   : > { %2718 = vmatprep.mubr.bf16.mxu1 %v2494_v47 }
 0x345   : > { %2719 = vmatmul.mubr.bf16.gmra.mrb[28].mxu1 %v2493_v9 }
 0x3c1   : > { %v6485_v56 = vpop.f32.mrb[0].mxu1 }
 0x3c2   : > { %v6486_v4 = vpop.f32.mrb[1].mxu1 }
 0x3c3   : > { %v6487_v1 = vadd.f32 %v6486_v4, %v6485_v56  ;;  %v6488_v2 = vpop.f32.mrb[2].mxu1 }
 0x3c4   : > { %v6489_v5 = vpop.f32.mrb[3].mxu1 }
 0x3c5   : > { %v6490_v0 = vadd.f32 %v6489_v5, %v6488_v2  ;;  %v2665_v7 = vadd.f32 %v6487_v1, %v8533_v30 }
 0x3c7   : > { %v2668_v55 = vadd.f32 %v6490_v0, %v8533_v30 }
 0x3c9   : > { %v2783_v59 = vpack.c.bf16 %v2668_v55, %v2665_v7 }
 0x3cb   : > { %6837 = vmatprep.mubr.bf16.mxu0 %v2783_v59 }
 0x3d4   : > { %v6491_v29 = vpop.f32.mrb[4].mxu1 }
 0x3d5   : > { %v6492_v12 = vpop.f32.mrb[5].mxu1 }
 0x3d6   : > { %v6493_v13 = vadd.f32 %v6492_v12, %v6491_v29  ;;  %v6494_v14 = vpop.f32.mrb[6].mxu1 }
 0x3d7   : > { %v6495_v45 = vpop.f32.mrb[7].mxu1 }
 0x3d8   : > { %v6496_v57 = vadd.f32 %v6495_v45, %v6494_v14  ;;  %v2673_v16 = vadd.f32 %v6493_v13, %v8533_v30  ;;  %v2727_v45 = vld [vmem:[%s8590_s6] sm:$0xff] }
 0x3da   : > { %v2676_v17 = vadd.f32 %v6496_v57, %v8533_v30  ;;  %v2728_v57 = vld [vmem:[%s8590_s6 + $0x8] sm:$0xff] }
 0x3dc   : > { %v2784_v18 = vpack.c.bf16 %v2676_v17, %v2673_v16 }
 0x3de   : > { %6838 = vmatmul.mubr.bf16.vlgmr.msra.gmra.mrb[16].mxu0 %v2784_v18  ;;  %v2759_v18 = vpack.c.bf16 %v2728_v57, %v2727_v45 }
 0x3df   : > { %6854 = vmatpush3.bf16.msra.mxu0 %v7528_v54 }
 0x3e0   : > { %6855 = vmatprep.subr.bf16.mxu0 %v7529_v34 }
 0x3e3   : > { %6856 = vmatpush3.bf16.msra.mxu0 %v7529_v34 }
 0x3e4   : > { %6857 = vmatprep.subr.bf16.mxu0 %v7530_v19 }
 0x3e7   : > { %v6497_v21 = vpop.f32.mrb[8].mxu1  ;;  %6858 = vmatpush3.bf16.msra.mxu0 %v7530_v19  ;;  %v2729_v19 = vld [vmem:[%s8590_s6 + $0x10] sm:$0xff] }
 0x3e8   : > { %v6498_v25 = vpop.f32.mrb[9].mxu1  ;;  %6859 = vmatprep.subr.bf16.mxu0 %v7531_v20 }
 0x3e9   : > { %v6499_v27 = vadd.f32 %v6498_v25, %v6497_v21  ;;  %v6500_v28 = vpop.f32.mrb[10].mxu1  ;;  %v2731_v21 = vld [vmem:[%s8590_s6 + $0x20] sm:$0xff]  ;;  %v2732_v25 = vld [vmem:[%s8590_s6 + $0x28] sm:$0xff] }
 0x3ea   : > { %v6501_v31 = vpop.f32.mrb[11].mxu1 }
 0x3eb   : > { %v6502_v62 = vadd.f32 %v6501_v31, %v6500_v28  ;;  %6860 = vmatpush3.bf16.msra.mxu0 %v7531_v20  ;;  %v2681_v32 = vadd.f32 %v6499_v27, %v8533_v30  ;;  %v2730_v20 = vld [vmem:[%s8590_s6 + $0x18] sm:$0xff]  ;;  %v2761_v27 = vpack.c.bf16 %v2732_v25, %v2731_v21  ;;  %v2733_v28 = vld [vmem:[%s8590_s6 + $0x30] sm:$0xff]  ;;  %v2735_v31 = vld [vmem:[%s8590_s6 + $0x40] sm:$0xff] }
 0x3ec   : > { %6861 = vmatprep.subr.bf16.mxu0 %v7532_v26 }
 0x3ed   : > { %v2684_v33 = vadd.f32 %v6502_v62, %v8533_v30  ;;  %v2736_v62 = vld [vmem:[%s8590_s6 + $0x48] sm:$0xff] }
 0x3ef   : > { %v6503_v35 = vpop.f32.mrb[12].mxu1  ;;  %v2785_v61 = vpack.c.bf16 %v2684_v33, %v2681_v32  ;;  %6862 = vmatpush3.bf16.msra.mxu0 %v7532_v26  ;;  %v2760_v26 = vpack.c.bf16 %v2730_v20, %v2729_v19  ;;  %v2763_v32 = vpack.c.bf16 %v2736_v62, %v2735_v31  ;;  %v2737_v33 = vld [vmem:[%s8590_s6 + $0x50] sm:$0xff] }
 0x3f0   : > { %v6504_v36 = vpop.f32.mrb[13].mxu1  ;;  %6863 = vmatprep.subr.bf16.mxu0 %v7533_v38 }
 0x3f1   : > { %v6505_v37 = vadd.f32 %v6504_v36, %v6503_v35  ;;  %v6506_v39 = vpop.f32.mrb[14].mxu1  ;;  %6841 = vmatprep.mubr.bf16.mxu0 %v2785_v61  ;;  %v2738_v35 = vld [vmem:[%s8590_s6 + $0x58] sm:$0xff]  ;;  %v2739_v61 = vld [vmem:[%s8590_s6 + $0x60] sm:$0xff]  ;;  %v2740_v36 = vld [vmem:[%s8590_s6 + $0x68] sm:$0xff] }
 0x3f2   : > { %v6507_v40 = vpop.f32.mrb[15].mxu1 }
 0x3f3   : > { %v6508_v63 = vadd.f32 %v6507_v40, %v6506_v39  ;;  %6864 = vmatpush3.bf16.msra.mxu0 %v7533_v38  ;;  %v2689_v42 = vadd.f32 %v6505_v37, %v8533_v30  ;;  %v2765_v37 = vpack.c.bf16 %v2740_v36, %v2739_v61  ;;  %v2741_v39 = vld [vmem:[%s8590_s6 + $0x70] sm:$0xff]  ;;  %v2742_v40 = vld [vmem:[%s8590_s6 + $0x78] sm:$0xff] }
 0x3f4   : > { %6865 = vmatprep.subr.bf16.mxu0 %v7534_v22 }
 0x3f5   : > { %v2692_v43 = vadd.f32 %v6508_v63, %v8533_v30  ;;  %v2766_v63 = vpack.c.bf16 %v2742_v40, %v2741_v39 }
 0x3f7   : > { %v6509_v3 = vpop.f32.mrb[16].mxu1  ;;  %v2786_v44 = vpack.c.bf16 %v2692_v43, %v2689_v42  ;;  %6866 = vmatpush3.bf16.msra.mxu0 %v7534_v22  ;;  %v2764_v22 = vpack.c.bf16 %v2738_v35, %v2737_v33  ;;  %v7544_v42 = vld [vmem:[%s9394_s13] sm:$0xff]   ;;  %v7545_v43 = vld [vmem:[%s9394_s13 + $0x8] sm:$0xff]  }
 0x3f8   : > { %v6510_v46 = vpop.f32.mrb[17].mxu1  ;;  %6867 = vmatprep.subr.bf16.mxu0 %v7535_v41 }
 0x3f9   : > { %v6511_v24 = vadd.f32 %v6510_v46, %v6509_v3  ;;  %v6512_v47 = vpop.f32.mrb[18].mxu1  ;;  %6842 = vmatmul.mubr.bf16.gmra.mrb[20].mxu0 %v2786_v44  ;;  %v7546_v3 = vld [vmem:[%s9394_s13 + $0x10] sm:$0xff]   ;;  %v7547_v44 = vld [vmem:[%s9394_s13 + $0x18] sm:$0xff]   ;;  %v7548_v46 = vld [vmem:[%s9394_s13 + $0x20] sm:$0xff]  }
 0x3fa   : > { %v6513_v9 = vpop.f32.mrb[19].mxu1 }
 0x3fb   : > { %v6514_v23 = vadd.f32 %v6513_v9, %v6512_v47  ;;  %6868 = vmatpush3.bf16.msra.mxu0 %v7535_v41  ;;  %v2697_v48 = vadd.f32 %v6511_v24, %v8533_v30  ;;  %v7543_v41 = vld [vmem:[%s9468_s29 + $0x38] sm:$0xff]   ;;  %v7549_v24 = vld [vmem:[%s9394_s13 + $0x28] sm:$0xff]   ;;  %v8634_v47 = vld [vmem:[%s9472_s27] ss:$0 sm:$0xff]  ;;  %s9473_s27 = sld [smem:[#allocation25_spill]] }
 0x3fc   : > { %6899 = vmatprep.subr.bf16.mxu1 %v7543_v41  ;;  %6917 = vmatprep.subr.bf16.mxu0 %v7544_v42 }
 0x3fd   : > { %v2700_v49 = vadd.f32 %v6514_v23, %v8533_v30  ;;  %6900 = vmatpush3.bf16.msra.mxu1 %v7543_v41 }
 0x3ff   : > { %v2787_v50 = vpack.c.bf16 %v2700_v49, %v2697_v48 }
 0x401   : > { %6845 = vmatprep.mubr.bf16.mxu0 %v2787_v50  ;;  %s9331_s9 = scalar_lea.hbm %s9473_s27, %s6452_s2 }
 0x404   : > { %v6515_v51 = vpop.f32.mrb[20].mxu1 }
 0x405   : > { %v6516_v52 = vpop.f32.mrb[21].mxu1 }
 0x406   : > { %v6517_v53 = vadd.f32 %v6516_v52, %v6515_v51  ;;  %v6518_v54 = vpop.f32.mrb[22].mxu1 }
 0x407   : > { %v6519_v56 = vpop.f32.mrb[23].mxu1 }
 0x408   : > { %v6520_v4 = vadd.f32 %v6519_v56, %v6518_v54  ;;  %v2705_v58 = vadd.f32 %v6517_v53, %v8533_v30 }
 0x40a   : > { %v2708_v60 = vadd.f32 %v6520_v4, %v8533_v30 }
 0x40c   : > { %v2788_v1 = vpack.c.bf16 %v2708_v60, %v2705_v58 }
 0x40e   : > { %6846 = vmatmul.mubr.bf16.gmra.mrb[24].mxu0 %v2788_v1 }
 0x40f   : > { %v6521_v2 = vpop.f32.mrb[24].mxu1 }
 0x410   : > { %v6522_v5 = vpop.f32.mrb[25].mxu1 }
 0x411   : > { %v6523_v0 = vadd.f32 %v6522_v5, %v6521_v2  ;;  %v6524_v6 = vpop.f32.mrb[26].mxu1 }
 0x412   : > { %v6525_v7 = vpop.f32.mrb[27].mxu1 }
 0x413   : > { %v6526_v55 = vadd.f32 %v6525_v7, %v6524_v6  ;;  %v2713_v59 = vadd.f32 %v6523_v0, %v8533_v30 }
 0x415   : > { %v2716_v8 = vadd.f32 %v6526_v55, %v8533_v30 }
 0x417   : > { %v2789_v10 = vpack.c.bf16 %v2716_v8, %v2713_v59 }
 0x418   : > { %v6527_v11 = vpop.f32.mrb[28].mxu1 }
 0x419   : > { %v6528_v29 = vpop.f32.mrb[29].mxu1  ;;  %6849 = vmatprep.mubr.bf16.mxu0 %v2789_v10 }
 0x41a   : > { %v6529_v12 = vadd.f32 %v6528_v29, %v6527_v11  ;;  %v6530_v13 = vpop.f32.mrb[30].mxu1 }
 0x41b   : > { %v6531_v14 = vpop.f32.mrb[31].mxu1 }
 0x41c   : > { %v6532_v15 = vadd.f32 %v6531_v14, %v6530_v13  ;;  %v2721_v16 = vadd.f32 %v6529_v12, %v8533_v30 }
 0x41e   : > { %v2724_v17 = vadd.f32 %v6532_v15, %v8533_v30  ;;  %v2734_v30 = vld [vmem:[%s8590_s6 + $0x38] sm:$0xff]  ;;  %s6169_s6 = sshll.u32 %s830_s5, 7 }
 0x41f   : > { %v2762_v38 = vpack.c.bf16 %v2734_v30, %v2733_v28  ;;  %s9287_s11 = scalar_lea.vmem [#allocation4], %s6169_s6  ;;  %s7652_s6 = sshll.u32 %s7720_s0, 4  ;;  %s7653_s6 = int_to_ptr.vmem [resolvable:$false] %s7652_s6 }
 0x420   : > { %v2790_v34 = vpack.c.bf16 %v2724_v17, %v2721_v16  ;;  %s6091_s8 = sshll.u32 %s9287_s11, 4  ;;  %s7654_s2 = scalar_lea.vmem %s7653_s6, 4096  ;;  %s9333_s8 = int_to_ptr.vmem [resolvable:$true] %s6091_s8 }
 0x421   : > { %s7648_s30 = scalar_lea.vmem %s9333_s8, 2048  ;;  %p7655_p0 = scmp.lt.s32.totalorder %s9333_s8, %s7653_s6 }
 0x422   : > { %6850 = vmatmul.mubr.bf16.gmra.mrb[28].mxu0 %v2790_v34  ;;  %p7649_p11 = scmp.ne.s32.totalorder %s9333_s8, %s7648_s30  ;;  %p7656_p1 = scmp.lt.s32.totalorder %s7654_s2, %s7648_s30 }
 0x423   : > { %6869 = vmatprep.mubr.bf16.mxu0 %v2759_v18 }
 0x424   : > { %p7650_p12 = pnand %p7649_p11, %p7901_p5  ;;  %p7657_p2 = por %p7656_p1, %p7655_p0 }
 0x426   : > { %p7651_p13 = pneg %p7650_p12 }
 0x428   : > { %p7658_p3 = pnand %p7657_p2, %p7651_p13 }
 0x42a   : > { %6870 = vmatmul.mubr.bf16.vlgmr.msra.gmra.mrb[16].mxu0 %v2760_v26 }
 0x42b   : > { %6873 = vmatprep.mubr.bf16.mxu0 %v2761_v27  ;;  %6918 = vmatpush3.bf16.msra.mxu0 %v7544_v42 }
 0x42c   : > { %6919 = vmatprep.subr.bf16.mxu0 %v7545_v43 }
 0x42f   : > { %6920 = vmatpush3.bf16.msra.mxu0 %v7545_v43 }
 0x430   : > { %6921 = vmatprep.subr.bf16.mxu0 %v7546_v3 }
 0x432   : > { %6874 = vmatmul.mubr.bf16.gmra.mrb[20].mxu0 %v2762_v38 }
 0x433   : > { %6877 = vmatprep.mubr.bf16.mxu0 %v2763_v32  ;;  %6922 = vmatpush3.bf16.msra.mxu0 %v7546_v3 }
 0x434   : > { %6923 = vmatprep.subr.bf16.mxu0 %v7547_v44 }
 0x437   : > { %6924 = vmatpush3.bf16.msra.mxu0 %v7547_v44 }
 0x438   : > { %6925 = vmatprep.subr.bf16.mxu0 %v7548_v46 }
 0x43a   : > { %6878 = vmatmul.mubr.bf16.gmra.mrb[24].mxu0 %v2764_v22 }
 0x43b   : > { %6881 = vmatprep.mubr.bf16.mxu0 %v2765_v37  ;;  %6926 = vmatpush3.bf16.msra.mxu0 %v7548_v46 }
 0x43c   : > { %6927 = vmatprep.subr.bf16.mxu0 %v7549_v24 }
 0x43f   : > { %6928 = vmatpush3.bf16.msra.mxu0 %v7549_v24 }
 0x442   : > { %6882 = vmatmul.mubr.bf16.gmra.mrb[28].mxu0 %v2766_v63 }
 0x4fd   : > { %v6871_v9 = vpop.f32.mrb[16].mxu0 }
 0x4fe   : > { %v3090_v23 = vadd.f32 %v6871_v9, %v8634_v47  ;;  %v3018_v48 = vpop.f32.mrb[17].mxu0 }
 0x4ff   : > { %v3088_v49 = vadd.f32 %v8634_v47, %v3018_v48  ;;  %v6872_v50 = vpop.f32.mrb[18].mxu0 }
 0x500   : > { %v3122_v51 = vmul.f32 0.2, %v3090_v23  ;;  %v3091_v52 = vadd.f32 %v6872_v50, %v8634_v47  ;;  %v3021_v53 = vpop.f32.mrb[19].mxu0  ;;  %vm3106_vm8 = vcmp.ge.f32.partialorder %v3090_v23, 0.0 }
 0x501   : > { %v3120_v54 = vmul.f32 0.2, %v3088_v49  ;;  %v3089_v56 = vadd.f32 %v8634_v47, %v3021_v53  ;;  %vm3104_vm13 = vcmp.ge.f32.partialorder %v3088_v49, 0.0 }
 0x502   : > { %vm3107_vm14 = vcmp.ge.f32.partialorder %v3091_v52, 0.0  ;;  %v3123_v4 = vmul.f32 0.2, %v3091_v52  ;;  %v3138_v60 = vsel %vm3106_vm8, %v3090_v23, %v3122_v51 }
 0x503   : > { %vm3105_vm15 = vcmp.ge.f32.partialorder %v3089_v56, 0.0  ;;  %v3121_v58 = vmul.f32 0.2, %v3089_v56  ;;  %v3136_v0 = vsel %vm3104_vm13, %v3088_v49, %v3120_v54 }
 0x504   : > { %v3139_v1 = vsel %vm3107_vm14, %v3091_v52, %v3123_v4  ;;  %v7552_v4 = vld [vmem:[%s9396_s15 + $0x40] sm:$0xff]  }
 0x505   : > { %v3169_v2 = vpack.c.bf16 %v3139_v1, %v3138_v60  ;;  %v6875_v5 = vpop.f32.mrb[20].mxu0  ;;  %v3137_v6 = vsel %vm3105_vm15, %v3089_v56, %v3121_v58  ;;  %v7550_v56 = vld [vmem:[%s9394_s13 + $0x30] sm:$0xff]   ;;  %v7553_v58 = vld [vmem:[%s9396_s15 + $0x48] sm:$0xff]   ;;  %6949 = vmatprep.subr.bf16.mxu1 %v7552_v4  ;;  %v7555_v1 = vld [vmem:[%s9396_s15 + $0x58] sm:$0xff]  }
 0x506   : > { %v3094_v7 = vadd.f32 %v6875_v5, %v8634_v47  ;;  %v3034_v55 = vpop.f32.mrb[21].mxu0  ;;  %v3168_v59 = vpack.c.bf16 %v3137_v6, %v3136_v0  ;;  %6929 = vmatprep.subr.bf16.mxu0 %v7550_v56  ;;  %v7554_v60 = vld [vmem:[%s9396_s15 + $0x50] sm:$0xff]   ;;  %v7557_v5 = vld [vmem:[%s9396_s15 + $0x68] sm:$0xff]   ;;  %v8679_v0 = vld [vmem:[%s9393_s12] ss:$0 sm:$0xff] }
 0x507   : > { %v3092_v8 = vadd.f32 %v8634_v47, %v3034_v55  ;;  %v6876_v10 = vpop.f32.mrb[22].mxu0  ;;  %6930 = vmatpush3.bf16.msra.mxu0 %v7550_v56 }
 0x508   : > { %v3126_v11 = vmul.f32 0.2, %v3094_v7  ;;  %v3095_v29 = vadd.f32 %v6876_v10, %v8634_v47  ;;  %v3037_v12 = vpop.f32.mrb[23].mxu0  ;;  %6901 = vmatprep.mubr.bf16.mxu1 %v3168_v59  ;;  %vm3110_vm0 = vcmp.ge.f32.partialorder %v3094_v7, 0.0 }
 0x509   : > { %v3124_v13 = vmul.f32 0.2, %v3092_v8  ;;  %v3093_v14 = vadd.f32 %v8634_v47, %v3037_v12  ;;  %6902 = vmatmul.mubr.bf16.vlgmr.msra.gmra.mrb[32].mxu1 %v3169_v2  ;;  %vm3108_vm2 = vcmp.ge.f32.partialorder %v3092_v8, 0.0  ;;  %v7556_v2 = vld [vmem:[%s9396_s15 + $0x60] sm:$0xff]  }
 0x50a   : > { %vm3111_vm1 = vcmp.ge.f32.partialorder %v3095_v29, 0.0  ;;  %v3127_v15 = vmul.f32 0.2, %v3095_v29  ;;  %v3142_v57 = vsel %vm3110_vm0, %v3094_v7, %v3126_v11  ;;  %6950 = vmatpush3.bf16.msra.mxu1 %v7552_v4 }
 0x50b   : > { %vm3109_vm3 = vcmp.ge.f32.partialorder %v3093_v14, 0.0  ;;  %v3125_v45 = vmul.f32 0.2, %v3093_v14  ;;  %v3140_v18 = vsel %vm3108_vm2, %v3092_v8, %v3124_v13  ;;  %6951 = vmatprep.subr.bf16.mxu1 %v7553_v58 }
 0x50c   : > { %v3143_v16 = vsel %vm3111_vm1, %v3095_v29, %v3127_v15 }
 0x50d   : > { %v6879_v17 = vpop.f32.mrb[24].mxu0  ;;  %v3141_v34 = vsel %vm3109_vm3, %v3093_v14, %v3125_v45  ;;  %v3171_v19 = vpack.c.bf16 %v3143_v16, %v3142_v57 }
 0x50e   : > { %v3098_v20 = vadd.f32 %v6879_v17, %v8634_v47  ;;  %v3050_v21 = vpop.f32.mrb[25].mxu0  ;;  %v3170_v25 = vpack.c.bf16 %v3141_v34, %v3140_v18  ;;  %6952 = vmatpush3.bf16.msra.mxu1 %v7553_v58 }
 0x50f   : > { %v3096_v26 = vadd.f32 %v8634_v47, %v3050_v21  ;;  %v6880_v27 = vpop.f32.mrb[26].mxu0  ;;  %6953 = vmatprep.subr.bf16.mxu1 %v7554_v60 }
 0x510   : > { %v3130_v28 = vmul.f32 0.2, %v3098_v20  ;;  %v3099_v30 = vadd.f32 %v6880_v27, %v8634_v47  ;;  %v3053_v31 = vpop.f32.mrb[27].mxu0  ;;  %6905 = vmatprep.mubr.bf16.mxu1 %v3170_v25  ;;  %vm3114_vm4 = vcmp.ge.f32.partialorder %v3098_v20, 0.0 }
 0x511   : > { %v3128_v62 = vmul.f32 0.2, %v3096_v26  ;;  %v3097_v38 = vadd.f32 %v8634_v47, %v3053_v31  ;;  %6906 = vmatmul.mubr.bf16.gmra.mrb[36].mxu1 %v3171_v19  ;;  %vm3112_vm5 = vcmp.ge.f32.partialorder %v3096_v26, 0.0 }
 0x512   : > { %vm3115_vm6 = vcmp.ge.f32.partialorder %v3099_v30, 0.0  ;;  %v3131_v32 = vmul.f32 0.2, %v3099_v30  ;;  %v3146_v35 = vsel %vm3114_vm4, %v3098_v20, %v3130_v28  ;;  %6954 = vmatpush3.bf16.msra.mxu1 %v7554_v60 }
 0x513   : > { %vm3113_vm7 = vcmp.ge.f32.partialorder %v3097_v38, 0.0  ;;  %v3129_v33 = vmul.f32 0.2, %v3097_v38  ;;  %v3144_v22 = vsel %vm3112_vm5, %v3096_v26, %v3128_v62  ;;  %6955 = vmatprep.subr.bf16.mxu1 %v7555_v1 }
 0x514   : > { %v3147_v61 = vsel %vm3115_vm6, %v3099_v30, %v3131_v32 }
 0x515   : > { %v6883_v36 = vpop.f32.mrb[28].mxu0  ;;  %v3145_v37 = vsel %vm3113_vm7, %v3097_v38, %v3129_v33  ;;  %v3173_v39 = vpack.c.bf16 %v3147_v61, %v3146_v35 }
 0x516   : > { %v3102_v40 = vadd.f32 %v6883_v36, %v8634_v47  ;;  %v3066_v63 = vpop.f32.mrb[29].mxu0  ;;  %v3172_v41 = vpack.c.bf16 %v3145_v37, %v3144_v22  ;;  %6956 = vmatpush3.bf16.msra.mxu1 %v7555_v1 }
 0x517   : > { %v3100_v42 = vadd.f32 %v8634_v47, %v3066_v63  ;;  %v6884_v43 = vpop.f32.mrb[30].mxu0  ;;  %6957 = vmatprep.subr.bf16.mxu1 %v7556_v2 }
 0x518   : > { %v3134_v3 = vmul.f32 0.2, %v3102_v40  ;;  %v3103_v44 = vadd.f32 %v6884_v43, %v8634_v47  ;;  %v3069_v46 = vpop.f32.mrb[31].mxu0  ;;  %6909 = vmatprep.mubr.bf16.mxu1 %v3172_v41  ;;  %vm3118_vm9 = vcmp.ge.f32.partialorder %v3102_v40, 0.0 }
 0x519   : > { %v3132_v24 = vmul.f32 0.2, %v3100_v42  ;;  %v3101_v9 = vadd.f32 %v8634_v47, %v3069_v46  ;;  %6910 = vmatmul.mubr.bf16.gmra.mrb[40].mxu1 %v3173_v39  ;;  %vm3116_vm11 = vcmp.ge.f32.partialorder %v3100_v42, 0.0  ;;  %v7551_v47 = vld [vmem:[%s9394_s13 + $0x38] sm:$0xff]  }
 0x51a   : > { %vm3119_vm10 = vcmp.ge.f32.partialorder %v3103_v44, 0.0  ;;  %v3135_v23 = vmul.f32 0.2, %v3103_v44  ;;  %v3150_v49 = vsel %vm3118_vm9, %v3102_v40, %v3134_v3  ;;  %6931 = vmatprep.subr.bf16.mxu0 %v7551_v47  ;;  %6958 = vmatpush3.bf16.msra.mxu1 %v7556_v2 }
 0x51b   : > { %vm3117_vm12 = vcmp.ge.f32.partialorder %v3101_v9, 0.0  ;;  %v3133_v48 = vmul.f32 0.2, %v3101_v9  ;;  %v3148_v51 = vsel %vm3116_vm11, %v3100_v42, %v3132_v24  ;;  %6932 = vmatpush3.bf16.msra.mxu0 %v7551_v47  ;;  %6959 = vmatprep.subr.bf16.mxu1 %v7557_v5 }
 0x51c   : > { %v3151_v50 = vsel %vm3119_vm10, %v3103_v44, %v3135_v23 }
 0x51d   : > { %v3149_v52 = vsel %vm3117_vm12, %v3101_v9, %v3133_v48  ;;  %v3175_v53 = vpack.c.bf16 %v3151_v50, %v3150_v49 }
 0x51e   : > { %v3174_v54 = vpack.c.bf16 %v3149_v52, %v3148_v51  ;;  %6960 = vmatpush3.bf16.msra.mxu1 %v7557_v5 }
 0x520   : > { %6913 = vmatprep.mubr.bf16.mxu1 %v3174_v54 }
 0x521   : > { %6914 = vmatmul.mubr.bf16.gmra.mrb[44].mxu1 %v3175_v53 }
 0x5dc   : > { %v6903_v6 = vpop.f32.mrb[32].mxu1 }
 0x5dd   : > { %v3274_v7 = vadd.f32 %v6903_v6, %v8679_v0  ;;  %v3265_v55 = vpop.f32.mrb[33].mxu1 }
 0x5de   : > { %v3266_v59 = vadd.f32 %v8679_v0, %v3265_v55  ;;  %v6904_v8 = vpop.f32.mrb[34].mxu1 }
 0x5df   : > { %v3346_v10 = vmul.f32 0.2, %v3274_v7  ;;  %v3277_v11 = vadd.f32 %v6904_v8, %v8679_v0  ;;  %v3268_v29 = vpop.f32.mrb[35].mxu1  ;;  %vm3330_vm8 = vcmp.ge.f32.partialorder %v3274_v7, 0.0 }
 0x5e0   : > { %v3344_v12 = vmul.f32 0.2, %v3266_v59  ;;  %v3269_v13 = vadd.f32 %v8679_v0, %v3268_v29  ;;  %vm3328_vm13 = vcmp.ge.f32.partialorder %v3266_v59, 0.0 }
 0x5e1   : > { %vm3331_vm14 = vcmp.ge.f32.partialorder %v3277_v11, 0.0  ;;  %v3347_v14 = vmul.f32 0.2, %v3277_v11  ;;  %v3362_v45 = vsel %vm3330_vm8, %v3274_v7, %v3346_v10 }
 0x5e2   : > { %vm3329_vm15 = vcmp.ge.f32.partialorder %v3269_v13, 0.0  ;;  %v3345_v15 = vmul.f32 0.2, %v3269_v13  ;;  %v3360_v18 = vsel %vm3328_vm13, %v3266_v59, %v3344_v12 }
 0x5e3   : > { %v3363_v57 = vsel %vm3331_vm14, %v3277_v11, %v3347_v14  ;;  %v7560_v14 = vld [vmem:[%s9396_s15] sm:$0xff]  }
 0x5e4   : > { %v3393_v16 = vpack.c.bf16 %v3363_v57, %v3362_v45  ;;  %v6907_v17 = vpop.f32.mrb[36].mxu1  ;;  %v3361_v34 = vsel %vm3329_vm15, %v3269_v13, %v3345_v15  ;;  %v7558_v13 = vld [vmem:[%s9396_s15 + $0x70] sm:$0xff]   ;;  %v7576_v15 = vld [vmem:[%s9398_s17] sm:$0xff]   ;;  %v7577_v45 = vld [vmem:[%s9398_s17 + $0x8] sm:$0xff]  }
 0x5e5   : > { %v3290_v19 = vadd.f32 %v6907_v17, %v8679_v0  ;;  %v3281_v20 = vpop.f32.mrb[37].mxu1  ;;  %v3392_v21 = vpack.c.bf16 %v3361_v34, %v3360_v18  ;;  %6961 = vmatprep.subr.bf16.mxu1 %v7558_v13  ;;  %7045 = vmatprep.subr.bf16.mxu0 %v7576_v15  ;;  %v7578_v57 = vld [vmem:[%s9398_s17 + $0x10] sm:$0xff]   ;;  %v7580_v17 = vld [vmem:[%s9398_s17 + $0x20] sm:$0xff]   ;;  %v7581_v18 = vld [vmem:[%s9398_s17 + $0x28] sm:$0xff]  }
 0x5e6   : > { %v3282_v25 = vadd.f32 %v8679_v0, %v3281_v20  ;;  %v6908_v26 = vpop.f32.mrb[38].mxu1  ;;  %6962 = vmatpush3.bf16.msra.mxu1 %v7558_v13  ;;  %v8727_v34 = vld [vmem:[%s9395_s14] ss:$0 sm:$0xff] }
 0x5e7   : > { %v3350_v27 = vmul.f32 0.2, %v3290_v19  ;;  %v3293_v28 = vadd.f32 %v6908_v26, %v8679_v0  ;;  %v3284_v30 = vpop.f32.mrb[39].mxu1  ;;  %6933 = vmatprep.mubr.bf16.mxu0 %v3392_v21  ;;  %vm3334_vm0 = vcmp.ge.f32.partialorder %v3290_v19, 0.0 }
 0x5e8   : > { %v3348_v31 = vmul.f32 0.2, %v3282_v25  ;;  %v3285_v62 = vadd.f32 %v8679_v0, %v3284_v30  ;;  %6934 = vmatmul.mubr.bf16.vlgmr.msra.gmra.mrb[32].mxu0 %v3393_v16  ;;  %vm3332_vm2 = vcmp.ge.f32.partialorder %v3282_v25, 0.0  ;;  %v7579_v16 = vld [vmem:[%s9398_s17 + $0x18] sm:$0xff]  }
 0x5e9   : > { %vm3335_vm1 = vcmp.ge.f32.partialorder %v3293_v28, 0.0  ;;  %v3351_v38 = vmul.f32 0.2, %v3293_v28  ;;  %v3366_v33 = vsel %vm3334_vm0, %v3290_v19, %v3350_v27  ;;  %7046 = vmatpush3.bf16.msra.mxu0 %v7576_v15 }
 0x5ea   : > { %vm3333_vm3 = vcmp.ge.f32.partialorder %v3285_v62, 0.0  ;;  %v3349_v32 = vmul.f32 0.2, %v3285_v62  ;;  %v3364_v36 = vsel %vm3332_vm2, %v3282_v25, %v3348_v31  ;;  %7047 = vmatprep.subr.bf16.mxu0 %v7577_v45 }
 0x5eb   : > { %v3367_v35 = vsel %vm3335_vm1, %v3293_v28, %v3351_v38  ;;  %v7561_v38 = vld [vmem:[%s9396_s15 + $0x8] sm:$0xff]  }
 0x5ec   : > { %v6911_v61 = vpop.f32.mrb[40].mxu1  ;;  %v3365_v22 = vsel %vm3333_vm3, %v3285_v62, %v3349_v32  ;;  %v3395_v37 = vpack.c.bf16 %v3367_v35, %v3366_v33 }
 0x5ed   : > { %v3306_v39 = vadd.f32 %v6911_v61, %v8679_v0  ;;  %v3297_v40 = vpop.f32.mrb[41].mxu1  ;;  %v3394_v63 = vpack.c.bf16 %v3365_v22, %v3364_v36  ;;  %7048 = vmatpush3.bf16.msra.mxu0 %v7577_v45  ;;  %v7570_v45 = vld [vmem:[%s9396_s15 + $0x90] sm:$0xff]  }
 0x5ee   : > { %v3298_v41 = vadd.f32 %v8679_v0, %v3297_v40  ;;  %v6912_v42 = vpop.f32.mrb[42].mxu1  ;;  %7049 = vmatprep.subr.bf16.mxu0 %v7578_v57 }
 0x5ef   : > { %v3354_v43 = vmul.f32 0.2, %v3306_v39  ;;  %v3309_v3 = vadd.f32 %v6912_v42, %v8679_v0  ;;  %v3300_v44 = vpop.f32.mrb[43].mxu1  ;;  %6937 = vmatprep.mubr.bf16.mxu0 %v3394_v63  ;;  %vm3338_vm4 = vcmp.ge.f32.partialorder %v3306_v39, 0.0  ;;  %v7563_v42 = vld [vmem:[%s9396_s15 + $0x18] sm:$0xff]  }
 0x5f0   : > { %v3352_v46 = vmul.f32 0.2, %v3298_v41  ;;  %v3301_v24 = vadd.f32 %v8679_v0, %v3300_v44  ;;  %6938 = vmatmul.mubr.bf16.gmra.mrb[36].mxu0 %v3395_v37  ;;  %vm3336_vm5 = vcmp.ge.f32.partialorder %v3298_v41, 0.0 }
 0x5f1   : > { %vm3339_vm6 = vcmp.ge.f32.partialorder %v3309_v3, 0.0  ;;  %v3355_v9 = vmul.f32 0.2, %v3309_v3  ;;  %v3370_v48 = vsel %vm3338_vm4, %v3306_v39, %v3354_v43  ;;  %7050 = vmatpush3.bf16.msra.mxu0 %v7578_v57  ;;  %v7562_v39 = vld [vmem:[%s9396_s15 + $0x10] sm:$0xff]  }
 0x5f2   : > { %vm3337_vm7 = vcmp.ge.f32.partialorder %v3301_v24, 0.0  ;;  %v3353_v23 = vmul.f32 0.2, %v3301_v24  ;;  %v3368_v51 = vsel %vm3336_vm5, %v3298_v41, %v3352_v46  ;;  %7051 = vmatprep.subr.bf16.mxu0 %v7579_v16 }
 0x5f3   : > { %v3371_v49 = vsel %vm3339_vm6, %v3309_v3, %v3355_v9 }
 0x5f4   : > { %v6915_v50 = vpop.f32.mrb[44].mxu1  ;;  %v3369_v52 = vsel %vm3337_vm7, %v3301_v24, %v3353_v23  ;;  %v3397_v53 = vpack.c.bf16 %v3371_v49, %v3370_v48  ;;  %v7564_v48 = vld [vmem:[%s9396_s15 + $0x20] sm:$0xff]  }
 0x5f5   : > { %v3322_v54 = vadd.f32 %v6915_v50, %v8679_v0  ;;  %v3313_v56 = vpop.f32.mrb[45].mxu1  ;;  %v3396_v47 = vpack.c.bf16 %v3369_v52, %v3368_v51  ;;  %7052 = vmatpush3.bf16.msra.mxu0 %v7579_v16  ;;  %v7565_v52 = vld [vmem:[%s9396_s15 + $0x28] sm:$0xff]  }
 0x5f6   : > { %v3314_v4 = vadd.f32 %v8679_v0, %v3313_v56  ;;  %v6916_v58 = vpop.f32.mrb[46].mxu1  ;;  %7053 = vmatprep.subr.bf16.mxu0 %v7580_v17 }
 0x5f7   : > { %v3358_v60 = vmul.f32 0.2, %v3322_v54  ;;  %v3325_v1 = vadd.f32 %v6916_v58, %v8679_v0  ;;  %v3316_v2 = vpop.f32.mrb[47].mxu1  ;;  %6941 = vmatprep.mubr.bf16.mxu0 %v3396_v47  ;;  %vm3342_vm9 = vcmp.ge.f32.partialorder %v3322_v54, 0.0 }
 0x5f8   : > { %v3356_v5 = vmul.f32 0.2, %v3314_v4  ;;  %v3317_v6 = vadd.f32 %v8679_v0, %v3316_v2  ;;  %6942 = vmatmul.mubr.bf16.gmra.mrb[40].mxu0 %v3397_v53  ;;  %vm3340_vm11 = vcmp.ge.f32.partialorder %v3314_v4, 0.0  ;;  %v7559_v0 = vld [vmem:[%s9396_s15 + $0x78] sm:$0xff]  }
 0x5f9   : > { %vm3343_vm10 = vcmp.ge.f32.partialorder %v3325_v1, 0.0  ;;  %v3359_v7 = vmul.f32 0.2, %v3325_v1  ;;  %v3374_v59 = vsel %vm3342_vm9, %v3322_v54, %v3358_v60  ;;  %6963 = vmatprep.subr.bf16.mxu1 %v7559_v0  ;;  %7054 = vmatpush3.bf16.msra.mxu0 %v7580_v17 }
 0x5fa   : > { %vm3341_vm12 = vcmp.ge.f32.partialorder %v3317_v6, 0.0  ;;  %v3357_v55 = vmul.f32 0.2, %v3317_v6  ;;  %v3372_v10 = vsel %vm3340_vm11, %v3314_v4, %v3356_v5  ;;  %6964 = vmatpush3.bf16.msra.mxu1 %v7559_v0  ;;  %7055 = vmatprep.subr.bf16.mxu0 %v7581_v18 }
 0x5fb   : > { %v3375_v8 = vsel %vm3343_vm10, %v3325_v1, %v3359_v7  ;;  %6981 = vmatprep.subr.bf16.mxu1 %v7560_v14  ;;  %v7566_v1 = vld [vmem:[%s9396_s15 + $0x30] sm:$0xff]  }
 0x5fc   : > { %v3373_v11 = vsel %vm3341_vm12, %v3317_v6, %v3357_v55  ;;  %v3399_v29 = vpack.c.bf16 %v3375_v8, %v3374_v59  ;;  %v7567_v59 = vld [vmem:[%s9396_s15 + $0x38] sm:$0xff]  }
 0x5fd   : > { %v3398_v12 = vpack.c.bf16 %v3373_v11, %v3372_v10  ;;  %7056 = vmatpush3.bf16.msra.mxu0 %v7581_v18  ;;  %v7568_v10 = vld [vmem:[%s9396_s15 + $0x80] sm:$0xff]  }
 0x5ff   : > { %6945 = vmatprep.mubr.bf16.mxu0 %v3398_v12 }
 0x600   : > { %6946 = vmatmul.mubr.bf16.gmra.mrb[44].mxu0 %v3399_v29 }
 0x6bb   : > { %v6935_v19 = vpop.f32.mrb[32].mxu0 }
 0x6bc   : > { %v8730_v20 = vadd.f32 %v6935_v19, %v8727_v34  ;;  %v3489_v21 = vpop.f32.mrb[33].mxu0  ;;  %v7571_v19 = vld [vmem:[%s9396_s15 + $0x98] sm:$0xff]  }
 0x6bd   : > { %v8733_v25 = vadd.f32 %v8727_v34, %v3489_v21  ;;  %v6936_v26 = vpop.f32.mrb[34].mxu0 }
 0x6be   : > { %3554 = vst [vmem:[#allocation2 + $0x20] sm:$0xff] %v8730_v20  ;;  %v8737_v27 = vadd.f32 %v6936_v26, %v8727_v34  ;;  %v3492_v28 = vpop.f32.mrb[35].mxu0  ;;  %v7572_v26 = vld [vmem:[%s9396_s15 + $0xa0] sm:$0xff]  }
 0x6bf   : > { %3552 = vst [vmem:[#allocation2 + $0x10] sm:$0xff] %v8733_v25  ;;  %v8741_v30 = vadd.f32 %v8727_v34, %v3492_v28 }
 0x6c0   : > { %3555 = vst [vmem:[#allocation2 + $0x28] sm:$0xff] %v8737_v27  ;;  %v3642_v62 = vpack.c.bf16 %v8737_v27, %v8730_v20 }
 0x6c1   : > { %3553 = vst [vmem:[#allocation2 + $0x18] sm:$0xff] %v8741_v30  ;;  %v3641_v31 = vpack.c.bf16 %v8741_v30, %v8733_v25 }
 0x6c3   : > { %v6939_v32 = vpop.f32.mrb[36].mxu0  ;;  %6965 = vmatprep.mubr.bf16.mxu1 %v3641_v31 }
 0x6c4   : > { %v8753_v33 = vadd.f32 %v6939_v32, %v8727_v34  ;;  %v3505_v35 = vpop.f32.mrb[37].mxu0  ;;  %6966 = vmatmul.mubr.bf16.vlgmr.msra.gmra.mrb[48].mxu1 %v3642_v62 }
 0x6c5   : > { %v8756_v61 = vadd.f32 %v8727_v34, %v3505_v35  ;;  %6982 = vmatpush3.bf16.msra.mxu1 %v7560_v14  ;;  %v6940_v36 = vpop.f32.mrb[38].mxu0  ;;  %v7569_v14 = vld [vmem:[%s9396_s15 + $0x88] sm:$0xff]  }
 0x6c6   : > { %3558 = vst [vmem:[#allocation2 + $0x40] sm:$0xff] %v8753_v33  ;;  %v8760_v22 = vadd.f32 %v6940_v36, %v8727_v34  ;;  %v3508_v37 = vpop.f32.mrb[39].mxu0  ;;  %6983 = vmatprep.subr.bf16.mxu1 %v7561_v38  ;;  %v3568_v55 = vld [vmem:[#allocation2 + $0xf] sm:$0xff] }
 0x6c7   : > { %3556 = vst [vmem:[#allocation2 + $0x30] sm:$0xff] %v8756_v61  ;;  %v8767_v40 = vadd.f32 %v8727_v34, %v3508_v37  ;;  %v3571_v29 = vld [vmem:[#allocation2 + $0x27] sm:$0xff]  ;;  %v7574_v37 = vld [vmem:[%s9396_s15 + $0xb0] sm:$0xff]  }
 0x6c8   : > { %3559 = vst [vmem:[#allocation2 + $0x48] sm:$0xff] %v8760_v22  ;;  %v3644_v41 = vpack.c.bf16 %v8760_v22, %v8753_v33  ;;  %v3569_v5 = vld [vmem:[#allocation2 + $0x17] sm:$0xff]  ;;  %v3570_v11 = vld [vmem:[#allocation2 + $0x1f] sm:$0xff]  ;;  %v7573_v35 = vld [vmem:[%s9396_s15 + $0xa8] sm:$0xff]  }
 0x6c9   : > { %3557 = vst [vmem:[#allocation2 + $0x38] sm:$0xff] %v8767_v40  ;;  %6984 = vmatpush3.bf16.msra.mxu1 %v7561_v38  ;;  %v3643_v63 = vpack.c.bf16 %v8767_v40, %v8756_v61  ;;  %v3616_v8 = vpack.c.bf16 %v3569_v5, %v3568_v55  ;;  %v3617_v13 = vpack.c.bf16 %v3571_v29, %v3570_v11 }
 0x6ca   : > { %6985 = vmatprep.subr.bf16.mxu1 %v7562_v39 }
 0x6cb   : > { %v6943_v43 = vpop.f32.mrb[40].mxu0  ;;  %6969 = vmatprep.mubr.bf16.mxu1 %v3643_v63 }
 0x6cc   : > { %v8779_v3 = vadd.f32 %v6943_v43, %v8727_v34  ;;  %v3521_v44 = vpop.f32.mrb[41].mxu0  ;;  %6970 = vmatmul.mubr.bf16.gmra.mrb[52].mxu1 %v3644_v41  ;;  %v3584_v41 = vld [vmem:[#allocation2 + $0x11] sm:$0xff] }
 0x6cd   : > { %v8782_v46 = vadd.f32 %v8727_v34, %v3521_v44  ;;  %6986 = vmatpush3.bf16.msra.mxu1 %v7562_v39  ;;  %v6944_v24 = vpop.f32.mrb[42].mxu0  ;;  %v7575_v44 = vld [vmem:[%s9396_s15 + $0xb8] sm:$0xff]  }
 0x6ce   : > { %3562 = vst [vmem:[#allocation2 + $0x80] sm:$0xff] %v8779_v3  ;;  %v8786_v9 = vadd.f32 %v6944_v24, %v8727_v34  ;;  %v3524_v23 = vpop.f32.mrb[43].mxu0  ;;  %6987 = vmatprep.subr.bf16.mxu1 %v7563_v42  ;;  %v3572_v0 = vld [vmem:[#allocation2 + $0x2f] sm:$0xff] }
 0x6cf   : > { %3560 = vst [vmem:[#allocation2 + $0x70] sm:$0xff] %v8782_v46  ;;  %v8793_v49 = vadd.f32 %v8727_v34, %v3524_v23  ;;  %v3575_v16 = vld [vmem:[#allocation2 + $0x47] sm:$0xff] }
 0x6d0   : > { %3563 = vst [vmem:[#allocation2 + $0x88] sm:$0xff] %v8786_v9  ;;  %v3646_v51 = vpack.c.bf16 %v8786_v9, %v8779_v3  ;;  %v3573_v12 = vld [vmem:[#allocation2 + $0x37] sm:$0xff]  ;;  %v3574_v57 = vld [vmem:[#allocation2 + $0x3f] sm:$0xff]  ;;  %v3587_v23 = vld [vmem:[#allocation2 + $0x29] sm:$0xff] }
 0x6d1   : > { %3561 = vst [vmem:[#allocation2 + $0x78] sm:$0xff] %v8793_v49  ;;  %6988 = vmatpush3.bf16.msra.mxu1 %v7563_v42  ;;  %v3645_v50 = vpack.c.bf16 %v8793_v49, %v8782_v46  ;;  %v3618_v15 = vpack.c.bf16 %v3573_v12, %v3572_v0  ;;  %v3619_v18 = vpack.c.bf16 %v3575_v16, %v3574_v57  ;;  %v3585_v42 = vld [vmem:[#allocation2 + $0x19] sm:$0xff]  ;;  %v7582_v0 = vld [vmem:[%s9398_s17 + $0x30] sm:$0xff]  }
 0x6d2   : > { %6989 = vmatprep.subr.bf16.mxu1 %v7564_v48  ;;  %v3956_v24 = vpack.c.bf16 %v3585_v42, %v3584_v41  ;;  %7057 = vmatprep.subr.bf16.mxu0 %v7582_v0  ;;  %v6301_v57 = vld [vmem:[%s9397_s16] ss:$0 sm:$0xff] }
 0x6d3   : > { %v6947_v53 = vpop.f32.mrb[44].mxu0  ;;  %6973 = vmatprep.mubr.bf16.mxu1 %v3645_v50  ;;  %v3589_v50 = vld [vmem:[#allocation2 + $0x39] sm:$0xff]  ;;  %7058 = vmatpush3.bf16.msra.mxu0 %v7582_v0  ;;  %v7589_v0 = vld [vmem:[%s9400_s19 + $0x68] sm:$0xff]  }
 0x6d4   : > { %v8805_v54 = vadd.f32 %v6947_v53, %v8727_v34  ;;  %v3537_v56 = vpop.f32.mrb[45].mxu0  ;;  %6974 = vmatmul.mubr.bf16.gmra.mrb[56].mxu1 %v3646_v51  ;;  %v3586_v51 = vld [vmem:[#allocation2 + $0x21] sm:$0xff] }
 0x6d5   : > { %v8808_v47 = vadd.f32 %v8727_v34, %v3537_v56  ;;  %6990 = vmatpush3.bf16.msra.mxu1 %v7564_v48  ;;  %v6948_v4 = vpop.f32.mrb[46].mxu0  ;;  %v3588_v48 = vld [vmem:[#allocation2 + $0x31] sm:$0xff]  ;;  %v3590_v56 = vld [vmem:[#allocation2 + $0x41] sm:$0xff] }
 0x6d6   : > { %3566 = vst [vmem:[#allocation2 + $0xa0] sm:$0xff] %v8805_v54  ;;  %v8812_v58 = vadd.f32 %v6948_v4, %v8727_v34  ;;  %v3540_v60 = vpop.f32.mrb[47].mxu0  ;;  %6991 = vmatprep.subr.bf16.mxu1 %v7565_v52  ;;  %v3958_v53 = vpack.c.bf16 %v3589_v50, %v3588_v48  ;;  %v3591_v4 = vld [vmem:[#allocation2 + $0x49] sm:$0xff] }
 0x6d7   : > { %3564 = vst [vmem:[#allocation2 + $0x90] sm:$0xff] %v8808_v47  ;;  %v8819_v2 = vadd.f32 %v8727_v34, %v3540_v60  ;;  %v3576_v34 = vld [vmem:[#allocation2 + $0x6f] sm:$0xff]  ;;  %v3579_v31 = vld [vmem:[#allocation2 + $0x87] sm:$0xff]  ;;  %v3959_v5 = vpack.c.bf16 %v3591_v4, %v3590_v56 }
 0x6d8   : > { %3567 = vst [vmem:[#allocation2 + $0xa8] sm:$0xff] %v8812_v58  ;;  %v3648_v7 = vpack.c.bf16 %v8812_v58, %v8805_v54  ;;  %v3577_v17 = vld [vmem:[#allocation2 + $0x77] sm:$0xff]  ;;  %v3578_v28 = vld [vmem:[#allocation2 + $0x7f] sm:$0xff] }
 0x6d9   : > { %3565 = vst [vmem:[#allocation2 + $0x98] sm:$0xff] %v8819_v2  ;;  %6992 = vmatpush3.bf16.msra.mxu1 %v7565_v52  ;;  %v3647_v6 = vpack.c.bf16 %v8819_v2, %v8808_v47  ;;  %v3620_v21 = vpack.c.bf16 %v3577_v17, %v3576_v34  ;;  %v3621_v38 = vpack.c.bf16 %v3579_v31, %v3578_v28  ;;  %v3592_v60 = vld [vmem:[#allocation2 + $0x71] sm:$0xff]  ;;  %v7588_v56 = vld [vmem:[%s9400_s19 + $0x60] sm:$0xff]  }
 0x6da   : > { %6993 = vmatprep.subr.bf16.mxu1 %v7566_v1  ;;  %v3957_v52 = vpack.c.bf16 %v3587_v23, %v3586_v51 }
 0x6db   : > { %6977 = vmatprep.mubr.bf16.mxu1 %v3647_v6 }
 0x6dc   : > { %6978 = vmatmul.mubr.bf16.gmra.mrb[60].mxu1 %v3648_v7 }
 0x6dd   : > { %6994 = vmatpush3.bf16.msra.mxu1 %v7566_v1  ;;  %6997 = vmatprep.mubr.bf16.mxu1 %v3616_v8  ;;  %v3593_v1 = vld [vmem:[#allocation2 + $0x79] sm:$0xff]  ;;  %v3594_v8 = vld [vmem:[#allocation2 + $0x81] sm:$0xff] }
 0x6de   : > { %6995 = vmatprep.subr.bf16.mxu1 %v7567_v59  ;;  %v3580_v32 = vld [vmem:[#allocation2 + $0x8f] sm:$0xff]  ;;  %v3960_v6 = vpack.c.bf16 %v3593_v1, %v3592_v60 }
 0x6df   : > { %v3583_v63 = vld [vmem:[#allocation2 + $0xa7] sm:$0xff] }
 0x6e0   : > { %v3581_v62 = vld [vmem:[#allocation2 + $0x97] sm:$0xff]  ;;  %v3582_v39 = vld [vmem:[#allocation2 + $0x9f] sm:$0xff]  ;;  %v3595_v7 = vld [vmem:[#allocation2 + $0x89] sm:$0xff] }
 0x6e1   : > { %6996 = vmatpush3.bf16.msra.mxu1 %v7567_v59  ;;  %v3622_v36 = vpack.c.bf16 %v3581_v62, %v3580_v32  ;;  %v3623_v43 = vpack.c.bf16 %v3583_v63, %v3582_v39  ;;  %v3596_v55 = vld [vmem:[#allocation2 + $0x91] sm:$0xff]  ;;  %v3597_v59 = vld [vmem:[#allocation2 + $0x99] sm:$0xff]  ;;  %v3598_v29 = vld [vmem:[#allocation2 + $0xa1] sm:$0xff] }
 0x6e2   : > { %7013 = vmatprep.subr.bf16.mxu1 %v7568_v10  ;;  %v3962_v11 = vpack.c.bf16 %v3597_v59, %v3596_v55  ;;  %v3599_v12 = vld [vmem:[#allocation2 + $0xa9] sm:$0xff] }
 0x6e3   : > { %v7585_v62 = vld [vmem:[%s9400_s19 + $0x48] sm:$0xff]   ;;  %v7586_v63 = vld [vmem:[%s9400_s19 + $0x50] sm:$0xff]  }
 0x6e4   : > { %6998 = vmatmul.mubr.bf16.vlgmr.msra.gmra.mrb[48].mxu1 %v3617_v13  ;;  %v3963_v13 = vpack.c.bf16 %v3599_v12, %v3598_v29 }
 0x6e5   : > { %7014 = vmatpush3.bf16.msra.mxu1 %v7568_v10  ;;  %7001 = vmatprep.mubr.bf16.mxu1 %v3618_v15  ;;  %v3961_v10 = vpack.c.bf16 %v3595_v7, %v3594_v8  ;;  %v7584_v15 = vld [vmem:[%s9400_s19 + $0x40] sm:$0xff]  }
 0x6e6   : > { %7015 = vmatprep.subr.bf16.mxu1 %v7569_v14 }
 0x6e9   : > { %7016 = vmatpush3.bf16.msra.mxu1 %v7569_v14  ;;  %v7583_v14 = vld [vmem:[%s9398_s17 + $0x38] sm:$0xff]  }
 0x6ea   : > { %7017 = vmatprep.subr.bf16.mxu1 %v7570_v45  ;;  %7059 = vmatprep.subr.bf16.mxu0 %v7583_v14 }
 0x6eb   : > { %7060 = vmatpush3.bf16.msra.mxu0 %v7583_v14  ;;  %v7590_v14 = vld [vmem:[%s9400_s19 + $0x70] sm:$0xff]  }
 0x6ec   : > { %7002 = vmatmul.mubr.bf16.gmra.mrb[52].mxu1 %v3619_v18  ;;  %7077 = vmatprep.subr.bf16.mxu0 %v7584_v15 }
 0x6ed   : > { %7018 = vmatpush3.bf16.msra.mxu1 %v7570_v45  ;;  %7005 = vmatprep.mubr.bf16.mxu1 %v3620_v21 }
 0x6ee   : > { %7019 = vmatprep.subr.bf16.mxu1 %v7571_v19 }
 0x6f1   : > { %7020 = vmatpush3.bf16.msra.mxu1 %v7571_v19 }
 0x6f2   : > { %7021 = vmatprep.subr.bf16.mxu1 %v7572_v26 }
 0x6f4   : > { %7006 = vmatmul.mubr.bf16.gmra.mrb[56].mxu1 %v3621_v38 }
 0x6f5   : > { %7022 = vmatpush3.bf16.msra.mxu1 %v7572_v26  ;;  %7009 = vmatprep.mubr.bf16.mxu1 %v3622_v36 }
 0x6f6   : > { %7023 = vmatprep.subr.bf16.mxu1 %v7573_v35 }
 0x6f9   : > { %7024 = vmatpush3.bf16.msra.mxu1 %v7573_v35 }
 0x6fa   : > { %7025 = vmatprep.subr.bf16.mxu1 %v7574_v37 }
 0x6fc   : > { %7010 = vmatmul.mubr.bf16.gmra.mrb[60].mxu1 %v3623_v43 }
 0x6fd   : > { %7026 = vmatpush3.bf16.msra.mxu1 %v7574_v37  ;;  %7029 = vmatprep.mubr.bf16.mxu1 %v3956_v24  ;;  %v7587_v24 = vld [vmem:[%s9400_s19 + $0x58] sm:$0xff]  }
 0x6fe   : > { %7027 = vmatprep.subr.bf16.mxu1 %v7575_v44 }
 0x701   : > { %7028 = vmatpush3.bf16.msra.mxu1 %v7575_v44 }
 0x704   : > { %7030 = vmatmul.mubr.bf16.vlgmr.msra.gmra.mrb[48].mxu1 %v3957_v52 }
 0x705   : > { %7033 = vmatprep.mubr.bf16.mxu1 %v3958_v53 }
 0x70c   : > { %7034 = vmatmul.mubr.bf16.gmra.mrb[52].mxu1 %v3959_v5 }
 0x70d   : > { %7037 = vmatprep.mubr.bf16.mxu1 %v3960_v6 }
 0x714   : > { %7038 = vmatmul.mubr.bf16.gmra.mrb[56].mxu1 %v3961_v10 }
 0x715   : > { %7041 = vmatprep.mubr.bf16.mxu1 %v3962_v11 }
 0x71c   : > { %7042 = vmatmul.mubr.bf16.gmra.mrb[60].mxu1 %v3963_v13 }
 0x7d7   : > { %v7031_v45 = vpop.f32.mrb[48].mxu1 }
 0x7d8   : > { %v4046_v16 = vpop.f32.mrb[49].mxu1  ;;  %v4134_v18 = vadd.f32 %v7031_v45, %v6301_v57  ;;  %v8890_v45 = vld [vmem:[%s9400_s19] sm:$0xff]  }
 0x7d9   : > { %v7032_v17 = vpop.f32.mrb[50].mxu1  ;;  %v4132_v21 = vadd.f32 %v6301_v57, %v4046_v16  ;;  %v7609_v16 = vld [vmem:[%s9402_s21 + $0x8] sm:$0xff]  }
 0x7da   : > { %v4135_v34 = vadd.f32 %v7032_v17, %v6301_v57  ;;  %v4049_v19 = vpop.f32.mrb[51].mxu1  ;;  %v7610_v17 = vld [vmem:[%s9402_s21 + $0x10] sm:$0xff]  }
 0x7db   : > { %v4133_v26 = vadd.f32 %v6301_v57, %v4049_v19  ;;  %v7613_v19 = vld [vmem:[%s9402_s21 + $0x28] sm:$0xff]  }
 0x7dc   : > { %v4165_v28 = vpack.c.bf16 %v4135_v34, %v4134_v18  ;;  %v7611_v18 = vld [vmem:[%s9402_s21 + $0x18] sm:$0xff]   ;;  %v7612_v34 = vld [vmem:[%s9402_s21 + $0x20] sm:$0xff]  }
 0x7dd   : > { %v4164_v31 = vpack.c.bf16 %v4133_v26, %v4132_v21  ;;  %v8914_v21 = vld [vmem:[%s9399_s18] ss:$0 sm:$0xff] }
 0x7df   : > { %v7035_v38 = vpop.f32.mrb[52].mxu1  ;;  %7061 = vmatprep.mubr.bf16.mxu0 %v4164_v31 }
 0x7e0   : > { %v4062_v32 = vpop.f32.mrb[53].mxu1  ;;  %7062 = vmatmul.mubr.bf16.vlgmr.msra.gmra.mrb[48].mxu0 %v4165_v28  ;;  %v4138_v36 = vadd.f32 %v7035_v38, %v6301_v57 }
 0x7e1   : > { %v7036_v35 = vpop.f32.mrb[54].mxu1  ;;  %7078 = vmatpush3.bf16.msra.mxu0 %v7584_v15  ;;  %v4136_v41 = vadd.f32 %v6301_v57, %v4062_v32  ;;  %v7591_v15 = vld [vmem:[%s9400_s19 + $0x78] sm:$0xff]  }
 0x7e2   : > { %v4139_v37 = vadd.f32 %v7036_v35, %v6301_v57  ;;  %v4065_v39 = vpop.f32.mrb[55].mxu1  ;;  %7079 = vmatprep.subr.bf16.mxu0 %v7585_v62 }
 0x7e3   : > { %v4137_v42 = vadd.f32 %v6301_v57, %v4065_v39 }
 0x7e4   : > { %v4167_v43 = vpack.c.bf16 %v4139_v37, %v4138_v36 }
 0x7e5   : > { %v4166_v44 = vpack.c.bf16 %v4137_v42, %v4136_v41  ;;  %7080 = vmatpush3.bf16.msra.mxu0 %v7585_v62 }
 0x7e6   : > { %7081 = vmatprep.subr.bf16.mxu0 %v7586_v63 }
 0x7e7   : > { %v7039_v23 = vpop.f32.mrb[56].mxu1  ;;  %7065 = vmatprep.mubr.bf16.mxu0 %v4166_v44 }
 0x7e8   : > { %v4078_v48 = vpop.f32.mrb[57].mxu1  ;;  %7066 = vmatmul.mubr.bf16.gmra.mrb[52].mxu0 %v4167_v43  ;;  %v4142_v51 = vadd.f32 %v7039_v23, %v6301_v57 }
 0x7e9   : > { %v7040_v50 = vpop.f32.mrb[58].mxu1  ;;  %7082 = vmatpush3.bf16.msra.mxu0 %v7586_v63  ;;  %v4140_v4 = vadd.f32 %v6301_v57, %v4078_v48 }
 0x7ea   : > { %v4143_v52 = vadd.f32 %v7040_v50, %v6301_v57  ;;  %v4081_v53 = vpop.f32.mrb[59].mxu1  ;;  %7083 = vmatprep.subr.bf16.mxu0 %v7587_v24 }
 0x7eb   : > { %v4141_v60 = vadd.f32 %v6301_v57, %v4081_v53 }
 0x7ec   : > { %v4169_v1 = vpack.c.bf16 %v4143_v52, %v4142_v51 }
 0x7ed   : > { %v4168_v5 = vpack.c.bf16 %v4141_v60, %v4140_v4  ;;  %7084 = vmatpush3.bf16.msra.mxu0 %v7587_v24 }
 0x7ee   : > { %7085 = vmatprep.subr.bf16.mxu0 %v7588_v56 }
 0x7ef   : > { %v7043_v6 = vpop.f32.mrb[60].mxu1  ;;  %7069 = vmatprep.mubr.bf16.mxu0 %v4168_v5 }
 0x7f0   : > { %v4094_v7 = vpop.f32.mrb[61].mxu1  ;;  %7070 = vmatmul.mubr.bf16.gmra.mrb[56].mxu0 %v4169_v1  ;;  %v4146_v59 = vadd.f32 %v7043_v6, %v6301_v57 }
 0x7f1   : > { %v7044_v55 = vpop.f32.mrb[62].mxu1  ;;  %7086 = vmatpush3.bf16.msra.mxu0 %v7588_v56  ;;  %v4144_v11 = vadd.f32 %v6301_v57, %v4094_v7  ;;  %v7593_v7 = vld [vmem:[%s9400_s19 + $0x8] sm:$0xff]  }
 0x7f2   : > { %v4147_v8 = vadd.f32 %v7044_v55, %v6301_v57  ;;  %v4097_v10 = vpop.f32.mrb[63].mxu1  ;;  %7087 = vmatprep.subr.bf16.mxu0 %v7589_v0 }
 0x7f3   : > { %v4145_v29 = vadd.f32 %v6301_v57, %v4097_v10  ;;  %v7608_v57 = vld [vmem:[%s9402_s21] sm:$0xff]  }
 0x7f4   : > { %v4171_v12 = vpack.c.bf16 %v4147_v8, %v4146_v59  ;;  %7173 = vmatprep.subr.bf16.mxu1 %v7608_v57 }
 0x7f5   : > { %v4170_v13 = vpack.c.bf16 %v4145_v29, %v4144_v11  ;;  %7088 = vmatpush3.bf16.msra.mxu0 %v7589_v0  ;;  %7174 = vmatpush3.bf16.msra.mxu1 %v7608_v57 }
 0x7f6   : > { %7089 = vmatprep.subr.bf16.mxu0 %v7590_v14  ;;  %7175 = vmatprep.subr.bf16.mxu1 %v7609_v16 }
 0x7f7   : > { %7073 = vmatprep.mubr.bf16.mxu0 %v4170_v13 }
 0x7f8   : > { %7074 = vmatmul.mubr.bf16.gmra.mrb[60].mxu0 %v4171_v12 }
 0x7f9   : > { %7090 = vmatpush3.bf16.msra.mxu0 %v7590_v14  ;;  %7176 = vmatpush3.bf16.msra.mxu1 %v7609_v16 }
 0x7fa   : > { %7091 = vmatprep.subr.bf16.mxu0 %v7591_v15  ;;  %7177 = vmatprep.subr.bf16.mxu1 %v7610_v17 }
 0x7fd   : > { %7092 = vmatpush3.bf16.msra.mxu0 %v7591_v15  ;;  %7178 = vmatpush3.bf16.msra.mxu1 %v7610_v17 }
 0x7fe   : > { %7109 = vmatprep.subr.bf16.mxu0 %v8890_v45  ;;  %7179 = vmatprep.subr.bf16.mxu1 %v7611_v18 }
 0x801   : > { %7180 = vmatpush3.bf16.msra.mxu1 %v7611_v18 }
 0x802   : > { %7181 = vmatprep.subr.bf16.mxu1 %v7612_v34 }
 0x805   : > { %7182 = vmatpush3.bf16.msra.mxu1 %v7612_v34 }
 0x806   : > { %7183 = vmatprep.subr.bf16.mxu1 %v7613_v19 }
 0x809   : > { %7184 = vmatpush3.bf16.msra.mxu1 %v7613_v19 }
 0x8b3   : > { %v7063_v26 = vpop.f32.mrb[48].mxu0 }
 0x8b4   : > { %v4270_v28 = vadd.f32 %v7063_v26, %v8914_v21  ;;  %v4261_v31 = vpop.f32.mrb[49].mxu0 }
 0x8b5   : > { %v4262_v62 = vadd.f32 %v8914_v21, %v4261_v31  ;;  %v7064_v38 = vpop.f32.mrb[50].mxu0 }
 0x8b6   : > { %v4326_v32 = vadd.f32 %v4270_v28, %v8730_v20  ;;  %v4273_v35 = vadd.f32 %v7064_v38, %v8914_v21  ;;  %v4264_v36 = vpop.f32.mrb[51].mxu0 }
 0x8b7   : > { %v4324_v37 = vadd.f32 %v4262_v62, %v8733_v25  ;;  %v4265_v39 = vadd.f32 %v8914_v21, %v4264_v36 }
 0x8b8   : > { %vm4342_vm8 = vcmp.ge.f32.partialorder %v4326_v32, 0.0  ;;  %v4358_v63 = vmul.f32 0.2, %v4326_v32  ;;  %v4327_v41 = vadd.f32 %v4273_v35, %v8737_v27 }
 0x8b9   : > { %vm4340_vm13 = vcmp.ge.f32.partialorder %v4324_v37, 0.0  ;;  %v4356_v42 = vmul.f32 0.2, %v4324_v37  ;;  %v4325_v43 = vadd.f32 %v4265_v39, %v8741_v30 }
 0x8ba   : > { %v8924_v44 = vsel %vm4342_vm8, %v4326_v32, %v4358_v63  ;;  %vm4343_vm14 = vcmp.ge.f32.partialorder %v4327_v41, 0.0  ;;  %v4359_v24 = vmul.f32 0.2, %v4327_v41 }
 0x8bb   : > { %4390 = vst [vmem:[#allocation2 + $0x20] sm:$0xff] %v8924_v44  ;;  %vm4341_vm15 = vcmp.ge.f32.partialorder %v4325_v43, 0.0  ;;  %v4357_v20 = vmul.f32 0.2, %v4325_v43  ;;  %v7067_v23 = vpop.f32.mrb[52].mxu0  ;;  %v8927_v25 = vsel %vm4340_vm13, %v4324_v37, %v4356_v42 }
 0x8bc   : > { %v8929_v48 = vsel %vm4343_vm14, %v4327_v41, %v4359_v24  ;;  %v4286_v50 = vadd.f32 %v7067_v23, %v8914_v21  ;;  %v4277_v27 = vpop.f32.mrb[53].mxu0  ;;  %4388 = vst [vmem:[#allocation2 + $0x10] sm:$0xff] %v8927_v25 }
 0x8bd   : > { %4391 = vst [vmem:[#allocation2 + $0x28] sm:$0xff] %v8929_v48  ;;  %v4278_v30 = vadd.f32 %v8914_v21, %v4277_v27  ;;  %v7068_v51 = vpop.f32.mrb[54].mxu0  ;;  %v8935_v52 = vsel %vm4341_vm15, %v4325_v43, %v4357_v20  ;;  %v4478_v1 = vpack.c.bf16 %v8929_v48, %v8924_v44 }
 0x8be   : > { %v4330_v53 = vadd.f32 %v4286_v50, %v8753_v33  ;;  %v4289_v56 = vadd.f32 %v7068_v51, %v8914_v21  ;;  %v4280_v4 = vpop.f32.mrb[55].mxu0  ;;  %v4477_v60 = vpack.c.bf16 %v8935_v52, %v8927_v25  ;;  %4389 = vst [vmem:[#allocation2 + $0x18] sm:$0xff] %v8935_v52 }
 0x8bf   : > { %v4328_v5 = vadd.f32 %v4278_v30, %v8756_v61  ;;  %v4281_v6 = vadd.f32 %v8914_v21, %v4280_v4 }
 0x8c0   : > { %vm4346_vm0 = vcmp.ge.f32.partialorder %v4330_v53, 0.0  ;;  %v4362_v33 = vmul.f32 0.2, %v4330_v53  ;;  %v4331_v55 = vadd.f32 %v4289_v56, %v8760_v22  ;;  %7093 = vmatprep.mubr.bf16.mxu0 %v4477_v60  ;;  %v7594_v22 = vld [vmem:[%s9400_s19 + $0x10] sm:$0xff]  }
 0x8c1   : > { %vm4344_vm2 = vcmp.ge.f32.partialorder %v4328_v5, 0.0  ;;  %v4360_v59 = vmul.f32 0.2, %v4328_v5  ;;  %v4329_v8 = vadd.f32 %v4281_v6, %v8767_v40  ;;  %7094 = vmatmul.mubr.bf16.vlgmr.msra.gmra.mrb[64].mxu0 %v4478_v1 }
 0x8c2   : > { %vm4347_vm1 = vcmp.ge.f32.partialorder %v4331_v55, 0.0  ;;  %v4363_v10 = vmul.f32 0.2, %v4331_v55  ;;  %7110 = vmatpush3.bf16.msra.mxu0 %v8890_v45  ;;  %v8952_v61 = vsel %vm4346_vm0, %v4330_v53, %v4362_v33 }
 0x8c3   : > { %vm4345_vm3 = vcmp.ge.f32.partialorder %v4329_v8, 0.0  ;;  %v4361_v11 = vmul.f32 0.2, %v4329_v8  ;;  %v7071_v29 = vpop.f32.mrb[56].mxu0  ;;  %7111 = vmatprep.subr.bf16.mxu0 %v7593_v7  ;;  %v8954_v12 = vsel %vm4344_vm2, %v4328_v5, %v4360_v59  ;;  %4394 = vst [vmem:[#allocation2 + $0x40] sm:$0xff] %v8952_v61  ;;  %v4404_v59 = vld [vmem:[#allocation2 + $0xd] sm:$0xff] }
 0x8c4   : > { %v4302_v40 = vadd.f32 %v7071_v29, %v8914_v21  ;;  %v4293_v13 = vpop.f32.mrb[57].mxu0  ;;  %4392 = vst [vmem:[#allocation2 + $0x30] sm:$0xff] %v8954_v12  ;;  %v8962_v0 = vsel %vm4347_vm1, %v4331_v55, %v4363_v10 }
 0x8c5   : > { %v4294_v14 = vadd.f32 %v8914_v21, %v4293_v13  ;;  %v7072_v15 = vpop.f32.mrb[58].mxu0  ;;  %v8965_v45 = vsel %vm4345_vm3, %v4329_v8, %v4361_v11  ;;  %4395 = vst [vmem:[#allocation2 + $0x48] sm:$0xff] %v8962_v0  ;;  %v4480_v26 = vpack.c.bf16 %v8962_v0, %v8952_v61  ;;  %v7599_v8 = vld [vmem:[%s9400_s19 + $0x38] sm:$0xff]   ;;  %v7600_v11 = vld [vmem:[%s9400_s19 + $0x80] sm:$0xff]  }
 0x8c6   : > { %v4334_v57 = vadd.f32 %v4302_v40, %v8779_v3  ;;  %v4305_v16 = vadd.f32 %v7072_v15, %v8914_v21  ;;  %7112 = vmatpush3.bf16.msra.mxu0 %v7593_v7  ;;  %v4296_v17 = vpop.f32.mrb[59].mxu0  ;;  %v4479_v18 = vpack.c.bf16 %v8965_v45, %v8954_v12  ;;  %4393 = vst [vmem:[#allocation2 + $0x38] sm:$0xff] %v8965_v45  ;;  %v7595_v3 = vld [vmem:[%s9400_s19 + $0x18] sm:$0xff]   ;;  %v7601_v15 = vld [vmem:[%s9400_s19 + $0x88] sm:$0xff]  }
 0x8c7   : > { %v4332_v34 = vadd.f32 %v4294_v14, %v8782_v46  ;;  %v4297_v19 = vadd.f32 %v8914_v21, %v4296_v17  ;;  %7113 = vmatprep.subr.bf16.mxu0 %v7594_v22  ;;  %v4405_v7 = vld [vmem:[#allocation2 + $0x15] sm:$0xff]  ;;  %v4406_v29 = vld [vmem:[#allocation2 + $0x1d] sm:$0xff] }
 0x8c8   : > { %vm4350_vm4 = vcmp.ge.f32.partialorder %v4334_v57, 0.0  ;;  %v4366_v28 = vmul.f32 0.2, %v4334_v57  ;;  %v4335_v31 = vadd.f32 %v4305_v16, %v8786_v9  ;;  %7097 = vmatprep.mubr.bf16.mxu0 %v4479_v18  ;;  %v7596_v9 = vld [vmem:[%s9400_s19 + $0x20] sm:$0xff]   ;;  %v4452_v10 = vpack.c.bf16 %v4405_v7, %v4404_v59  ;;  %v7602_v16 = vld [vmem:[%s9400_s19 + $0x90] sm:$0xff]  }
 0x8c9   : > { %vm4348_vm5 = vcmp.ge.f32.partialorder %v4332_v34, 0.0  ;;  %v4364_v62 = vmul.f32 0.2, %v4332_v34  ;;  %v4333_v38 = vadd.f32 %v4297_v19, %v8793_v49  ;;  %7098 = vmatmul.mubr.bf16.gmra.mrb[68].mxu0 %v4480_v26 }
 0x8ca   : > { %vm4351_vm6 = vcmp.ge.f32.partialorder %v4335_v31, 0.0  ;;  %v4367_v46 = vmul.f32 0.2, %v4335_v31  ;;  %7114 = vmatpush3.bf16.msra.mxu0 %v7594_v22  ;;  %v8982_v32 = vsel %vm4350_vm4, %v4334_v57, %v4366_v28  ;;  %v4407_v22 = vld [vmem:[#allocation2 + $0x25] sm:$0xff] }
 0x8cb   : > { %vm4349_vm7 = vcmp.ge.f32.partialorder %v4333_v38, 0.0  ;;  %v4365_v35 = vmul.f32 0.2, %v4333_v38  ;;  %v7075_v36 = vpop.f32.mrb[60].mxu0  ;;  %7115 = vmatprep.subr.bf16.mxu0 %v7595_v3  ;;  %v8984_v37 = vsel %vm4348_vm5, %v4332_v34, %v4364_v62  ;;  %4398 = vst [vmem:[#allocation2 + $0x80] sm:$0xff] %v8982_v32  ;;  %v4453_v13 = vpack.c.bf16 %v4407_v22, %v4406_v29  ;;  %v4408_v14 = vld [vmem:[#allocation2 + $0x2d] sm:$0xff] }
 0x8cc   : > { %v4318_v49 = vadd.f32 %v7075_v36, %v8914_v21  ;;  %v4309_v39 = vpop.f32.mrb[61].mxu0  ;;  %4396 = vst [vmem:[#allocation2 + $0x70] sm:$0xff] %v8984_v37  ;;  %v8992_v63 = vsel %vm4351_vm6, %v4335_v31, %v4367_v46  ;;  %v4411_v18 = vld [vmem:[#allocation2 + $0x45] sm:$0xff] }
 0x8cd   : > { %v4310_v41 = vadd.f32 %v8914_v21, %v4309_v39  ;;  %v7076_v42 = vpop.f32.mrb[62].mxu0  ;;  %v8995_v43 = vsel %vm4349_vm7, %v4333_v38, %v4365_v35  ;;  %4399 = vst [vmem:[#allocation2 + $0x88] sm:$0xff] %v8992_v63  ;;  %v4482_v51 = vpack.c.bf16 %v8992_v63, %v8982_v32  ;;  %v4409_v40 = vld [vmem:[#allocation2 + $0x35] sm:$0xff]  ;;  %v4410_v17 = vld [vmem:[#allocation2 + $0x3d] sm:$0xff] }
 0x8ce   : > { %v4338_v24 = vadd.f32 %v4318_v49, %v8805_v54  ;;  %v4321_v20 = vadd.f32 %v7076_v42, %v8914_v21  ;;  %7116 = vmatpush3.bf16.msra.mxu0 %v7595_v3  ;;  %v4312_v23 = vpop.f32.mrb[63].mxu0  ;;  %v4481_v50 = vpack.c.bf16 %v8995_v43, %v8984_v37  ;;  %4397 = vst [vmem:[#allocation2 + $0x78] sm:$0xff] %v8995_v43  ;;  %v7597_v54 = vld [vmem:[%s9400_s19 + $0x28] sm:$0xff]   ;;  %v7603_v3 = vld [vmem:[%s9400_s19 + $0x98] sm:$0xff]   ;;  %v7604_v31 = vld [vmem:[%s9400_s19 + $0xa0] sm:$0xff]  }
 0x8cf   : > { %v4336_v27 = vadd.f32 %v4310_v41, %v8808_v47  ;;  %v4313_v30 = vadd.f32 %v8914_v21, %v4312_v23  ;;  %7117 = vmatprep.subr.bf16.mxu0 %v7596_v9  ;;  %v4454_v57 = vpack.c.bf16 %v4409_v40, %v4408_v14  ;;  %v4455_v19 = vpack.c.bf16 %v4411_v18, %v4410_v17  ;;  %v7606_v39 = vld [vmem:[%s9400_s19 + $0xb0] sm:$0xff]   ;;  %v6367_v17 = vld [vmem:[%s9401_s20] ss:$0 sm:$0xff] }
 0x8d0   : > { %vm4354_vm9 = vcmp.ge.f32.partialorder %v4338_v24, 0.0  ;;  %v4370_v53 = vmul.f32 0.2, %v4338_v24  ;;  %v4339_v56 = vadd.f32 %v4321_v20, %v8812_v58  ;;  %7101 = vmatprep.mubr.bf16.mxu0 %v4481_v50  ;;  %v7598_v58 = vld [vmem:[%s9400_s19 + $0x30] sm:$0xff]   ;;  %v4421_v20 = vld [vmem:[#allocation2 + $0x1b] sm:$0xff] }
 0x8d1   : > { %vm4352_vm11 = vcmp.ge.f32.partialorder %v4336_v27, 0.0  ;;  %v4368_v4 = vmul.f32 0.2, %v4336_v27  ;;  %v4337_v60 = vadd.f32 %v4313_v30, %v8819_v2  ;;  %7102 = vmatmul.mubr.bf16.gmra.mrb[72].mxu0 %v4482_v51  ;;  %v7607_v50 = vld [vmem:[%s9400_s19 + $0xb8] sm:$0xff]   ;;  %v4423_v30 = vld [vmem:[#allocation2 + $0x2b] sm:$0xff] }
 0x8d2   : > { %vm4355_vm10 = vcmp.ge.f32.partialorder %v4339_v56, 0.0  ;;  %v4371_v47 = vmul.f32 0.2, %v4339_v56  ;;  %7118 = vmatpush3.bf16.msra.mxu0 %v7596_v9  ;;  %v9012_v21 = vsel %vm4354_vm9, %v4338_v24, %v4370_v53  ;;  %v7605_v9 = vld [vmem:[%s9400_s19 + $0xa8] sm:$0xff]   ;;  %v4420_v24 = vld [vmem:[#allocation2 + $0x13] sm:$0xff] }
 0x8d3   : > { %vm4353_vm12 = vcmp.ge.f32.partialorder %v4337_v60, 0.0  ;;  %v4369_v1 = vmul.f32 0.2, %v4337_v60  ;;  %7119 = vmatprep.subr.bf16.mxu0 %v7597_v54  ;;  %v9014_v5 = vsel %vm4352_vm11, %v4336_v27, %v4368_v4  ;;  %4402 = vst [vmem:[#allocation2 + $0xa0] sm:$0xff] %v9012_v21  ;;  %v4412_v26 = vld [vmem:[#allocation2 + $0x6d] sm:$0xff]  ;;  %v4792_v27 = vpack.c.bf16 %v4421_v20, %v4420_v24  ;;  %v4422_v53 = vld [vmem:[#allocation2 + $0x23] sm:$0xff] }
 0x8d4   : > { %4400 = vst [vmem:[#allocation2 + $0x90] sm:$0xff] %v9014_v5  ;;  %v9021_v2 = vsel %vm4355_vm10, %v4339_v56, %v4371_v47  ;;  %v4415_v38 = vld [vmem:[#allocation2 + $0x85] sm:$0xff]  ;;  %v4424_v51 = vld [vmem:[#allocation2 + $0x33] sm:$0xff]  ;;  %v4793_v56 = vpack.c.bf16 %v4423_v30, %v4422_v53 }
 0x8d5   : > { %v9023_v6 = vsel %vm4353_vm12, %v4337_v60, %v4369_v1  ;;  %4403 = vst [vmem:[#allocation2 + $0xa8] sm:$0xff] %v9021_v2  ;;  %v4484_v55 = vpack.c.bf16 %v9021_v2, %v9012_v21  ;;  %v4413_v34 = vld [vmem:[#allocation2 + $0x75] sm:$0xff]  ;;  %v4414_v62 = vld [vmem:[#allocation2 + $0x7d] sm:$0xff]  ;;  %v4427_v47 = vld [vmem:[#allocation2 + $0x4b] sm:$0xff] }
 0x8d6   : > { %7120 = vmatpush3.bf16.msra.mxu0 %v7597_v54  ;;  %v4483_v33 = vpack.c.bf16 %v9023_v6, %v9014_v5  ;;  %4401 = vst [vmem:[#allocation2 + $0x98] sm:$0xff] %v9023_v6  ;;  %v4456_v28 = vpack.c.bf16 %v4413_v34, %v4412_v26  ;;  %v4457_v35 = vpack.c.bf16 %v4415_v38, %v4414_v62  ;;  %v4425_v54 = vld [vmem:[#allocation2 + $0x3b] sm:$0xff]  ;;  %v4426_v60 = vld [vmem:[#allocation2 + $0x43] sm:$0xff]  ;;  %v4428_v1 = vld [vmem:[#allocation2 + $0x73] sm:$0xff] }
 0x8d7   : > { %7121 = vmatprep.subr.bf16.mxu0 %v7598_v58  ;;  %v4794_v4 = vpack.c.bf16 %v4425_v54, %v4424_v51  ;;  %v4795_v7 = vpack.c.bf16 %v4427_v47, %v4426_v60  ;;  %v7614_v14 = vld [vmem:[%s9402_s21 + $0x30] sm:$0xff]   ;;  %v7620_v60 = vld [vmem:[%s9404_s23 + $0x60] sm:$0xff]  }
 0x8d8   : > { %7105 = vmatprep.mubr.bf16.mxu0 %v4483_v33  ;;  %7185 = vmatprep.subr.bf16.mxu1 %v7614_v14 }
 0x8d9   : > { %7106 = vmatmul.mubr.bf16.gmra.mrb[76].mxu0 %v4484_v55  ;;  %7186 = vmatpush3.bf16.msra.mxu1 %v7614_v14  ;;  %v7621_v14 = vld [vmem:[%s9404_s23 + $0x68] sm:$0xff]  }
 0x8da   : > { %7122 = vmatpush3.bf16.msra.mxu0 %v7598_v58  ;;  %7125 = vmatprep.mubr.bf16.mxu0 %v4452_v10  ;;  %v4429_v58 = vld [vmem:[#allocation2 + $0x7b] sm:$0xff]  ;;  %v4430_v10 = vld [vmem:[#allocation2 + $0x83] sm:$0xff] }
 0x8db   : > { %7123 = vmatprep.subr.bf16.mxu0 %v7599_v8  ;;  %v4416_v36 = vld [vmem:[#allocation2 + $0x8d] sm:$0xff]  ;;  %v4796_v33 = vpack.c.bf16 %v4429_v58, %v4428_v1 }
 0x8dc   : > { %v4419_v42 = vld [vmem:[#allocation2 + $0xa5] sm:$0xff] }
 0x8dd   : > { %v4417_v46 = vld [vmem:[#allocation2 + $0x95] sm:$0xff]  ;;  %v4418_v41 = vld [vmem:[#allocation2 + $0x9d] sm:$0xff]  ;;  %v4431_v55 = vld [vmem:[#allocation2 + $0x8b] sm:$0xff] }
 0x8de   : > { %7124 = vmatpush3.bf16.msra.mxu0 %v7599_v8  ;;  %v4458_v49 = vpack.c.bf16 %v4417_v46, %v4416_v36  ;;  %v4459_v23 = vpack.c.bf16 %v4419_v42, %v4418_v41  ;;  %v4432_v59 = vld [vmem:[#allocation2 + $0x93] sm:$0xff]  ;;  %v4433_v8 = vld [vmem:[#allocation2 + $0x9b] sm:$0xff]  ;;  %v4434_v22 = vld [vmem:[#allocation2 + $0xa3] sm:$0xff] }
 0x8df   : > { %7141 = vmatprep.subr.bf16.mxu0 %v7600_v11  ;;  %v4798_v29 = vpack.c.bf16 %v4433_v8, %v4432_v59  ;;  %v4435_v40 = vld [vmem:[#allocation2 + $0xab] sm:$0xff] }
 0x8e0   : > { %v7617_v46 = vld [vmem:[%s9404_s23 + $0x48] sm:$0xff]   ;;  %v7618_v42 = vld [vmem:[%s9404_s23 + $0x50] sm:$0xff]  }
 0x8e1   : > { %7126 = vmatmul.mubr.bf16.vlgmr.msra.gmra.mrb[64].mxu0 %v4453_v13  ;;  %v4799_v13 = vpack.c.bf16 %v4435_v40, %v4434_v22 }
 0x8e2   : > { %7142 = vmatpush3.bf16.msra.mxu0 %v7600_v11  ;;  %7129 = vmatprep.mubr.bf16.mxu0 %v4454_v57  ;;  %v4797_v11 = vpack.c.bf16 %v4431_v55, %v4430_v10  ;;  %v7616_v57 = vld [vmem:[%s9404_s23 + $0x40] sm:$0xff]  }
 0x8e3   : > { %7143 = vmatprep.subr.bf16.mxu0 %v7601_v15 }
 0x8e6   : > { %7144 = vmatpush3.bf16.msra.mxu0 %v7601_v15  ;;  %v7615_v15 = vld [vmem:[%s9402_s21 + $0x38] sm:$0xff]  }
 0x8e7   : > { %7145 = vmatprep.subr.bf16.mxu0 %v7602_v16  ;;  %7187 = vmatprep.subr.bf16.mxu1 %v7615_v15 }
 0x8e8   : > { %7188 = vmatpush3.bf16.msra.mxu1 %v7615_v15  ;;  %v7622_v15 = vld [vmem:[%s9404_s23 + $0x70] sm:$0xff]  }
 0x8e9   : > { %7130 = vmatmul.mubr.bf16.gmra.mrb[68].mxu0 %v4455_v19  ;;  %7205 = vmatprep.subr.bf16.mxu1 %v7616_v57 }
 0x8ea   : > { %7146 = vmatpush3.bf16.msra.mxu0 %v7602_v16  ;;  %7133 = vmatprep.mubr.bf16.mxu0 %v4456_v28 }
 0x8eb   : > { %7147 = vmatprep.subr.bf16.mxu0 %v7603_v3 }
 0x8ee   : > { %7148 = vmatpush3.bf16.msra.mxu0 %v7603_v3 }
 0x8ef   : > { %7149 = vmatprep.subr.bf16.mxu0 %v7604_v31 }
 0x8f1   : > { %7134 = vmatmul.mubr.bf16.gmra.mrb[72].mxu0 %v4457_v35 }
 0x8f2   : > { %7150 = vmatpush3.bf16.msra.mxu0 %v7604_v31  ;;  %7137 = vmatprep.mubr.bf16.mxu0 %v4458_v49 }
 0x8f3   : > { %7151 = vmatprep.subr.bf16.mxu0 %v7605_v9 }
 0x8f6   : > { %7152 = vmatpush3.bf16.msra.mxu0 %v7605_v9 }
 0x8f7   : > { %7153 = vmatprep.subr.bf16.mxu0 %v7606_v39 }
 0x8f9   : > { %7138 = vmatmul.mubr.bf16.gmra.mrb[76].mxu0 %v4459_v23 }
 0x8fa   : > { %7154 = vmatpush3.bf16.msra.mxu0 %v7606_v39  ;;  %7157 = vmatprep.mubr.bf16.mxu0 %v4792_v27  ;;  %v7619_v27 = vld [vmem:[%s9404_s23 + $0x58] sm:$0xff]  }
 0x8fb   : > { %7155 = vmatprep.subr.bf16.mxu0 %v7607_v50 }
 0x8fe   : > { %7156 = vmatpush3.bf16.msra.mxu0 %v7607_v50 }
 0x901   : > { %7158 = vmatmul.mubr.bf16.vlgmr.msra.gmra.mrb[64].mxu0 %v4793_v56 }
 0x902   : > { %7161 = vmatprep.mubr.bf16.mxu0 %v4794_v4 }
 0x909   : > { %7162 = vmatmul.mubr.bf16.gmra.mrb[68].mxu0 %v4795_v7 }
 0x90a   : > { %7165 = vmatprep.mubr.bf16.mxu0 %v4796_v33 }
 0x911   : > { %7166 = vmatmul.mubr.bf16.gmra.mrb[72].mxu0 %v4797_v11 }
 0x912   : > { %7169 = vmatprep.mubr.bf16.mxu0 %v4798_v29 }
 0x919   : > { %7170 = vmatmul.mubr.bf16.gmra.mrb[76].mxu0 %v4799_v13 }
 0x9d4   : > { %v7159_v16 = vpop.f32.mrb[64].mxu0 }
 0x9d5   : > { %v4882_v18 = vpop.f32.mrb[65].mxu0  ;;  %v4970_v19 = vadd.f32 %v7159_v16, %v6367_v17  ;;  %v9094_v16 = vld [vmem:[%s9404_s23] sm:$0xff]  }
 0x9d6   : > { %v7160_v34 = vpop.f32.mrb[66].mxu0  ;;  %v4968_v28 = vadd.f32 %v6367_v17, %v4882_v18  ;;  %v7641_v18 = vld [vmem:[%s9406_s25 + $0x8] sm:$0xff]  }
 0x9d7   : > { %v4971_v26 = vadd.f32 %v7160_v34, %v6367_v17  ;;  %v4885_v3 = vpop.f32.mrb[67].mxu0  ;;  %v7642_v34 = vld [vmem:[%s9406_s25 + $0x10] sm:$0xff]  }
 0x9d8   : > { %v4969_v31 = vadd.f32 %v6367_v17, %v4885_v3  ;;  %v7645_v3 = vld [vmem:[%s9406_s25 + $0x28] sm:$0xff]  }
 0x9d9   : > { %v5001_v62 = vpack.c.bf16 %v4971_v26, %v4970_v19  ;;  %v7643_v19 = vld [vmem:[%s9406_s25 + $0x18] sm:$0xff]   ;;  %v7644_v26 = vld [vmem:[%s9406_s25 + $0x20] sm:$0xff]  }
 0x9da   : > { %v5000_v38 = vpack.c.bf16 %v4969_v31, %v4968_v28  ;;  %v9118_v28 = vld [vmem:[%s9403_s22] ss:$0 sm:$0xff] }
 0x9dc   : > { %v7163_v35 = vpop.f32.mrb[68].mxu0  ;;  %7189 = vmatprep.mubr.bf16.mxu1 %v5000_v38 }
 0x9dd   : > { %v4898_v36 = vpop.f32.mrb[69].mxu0  ;;  %7190 = vmatmul.mubr.bf16.vlgmr.msra.gmra.mrb[64].mxu1 %v5001_v62  ;;  %v4974_v49 = vadd.f32 %v7163_v35, %v6367_v17 }
 0x9de   : > { %v7164_v9 = vpop.f32.mrb[70].mxu0  ;;  %7206 = vmatpush3.bf16.msra.mxu1 %v7616_v57  ;;  %v4972_v24 = vadd.f32 %v6367_v17, %v4898_v36  ;;  %v7623_v57 = vld [vmem:[%s9404_s23 + $0x78] sm:$0xff]  }
 0x9df   : > { %v4975_v39 = vadd.f32 %v7164_v9, %v6367_v17  ;;  %v4901_v41 = vpop.f32.mrb[71].mxu0  ;;  %7207 = vmatprep.subr.bf16.mxu1 %v7617_v46 }
 0x9e0   : > { %v4973_v20 = vadd.f32 %v6367_v17, %v4901_v41 }
 0x9e1   : > { %v5003_v23 = vpack.c.bf16 %v4975_v39, %v4974_v49 }
 0x9e2   : > { %v5002_v50 = vpack.c.bf16 %v4973_v20, %v4972_v24  ;;  %7208 = vmatpush3.bf16.msra.mxu1 %v7617_v46 }
 0x9e3   : > { %7209 = vmatprep.subr.bf16.mxu1 %v7618_v42 }
 0x9e4   : > { %v7167_v30 = vpop.f32.mrb[72].mxu0  ;;  %7193 = vmatprep.mubr.bf16.mxu1 %v5002_v50 }
 0x9e5   : > { %v4914_v51 = vpop.f32.mrb[73].mxu0  ;;  %7194 = vmatmul.mubr.bf16.gmra.mrb[68].mxu1 %v5003_v23  ;;  %v4978_v53 = vadd.f32 %v7167_v30, %v6367_v17 }
 0x9e6   : > { %v7168_v54 = vpop.f32.mrb[74].mxu0  ;;  %7210 = vmatpush3.bf16.msra.mxu1 %v7618_v42  ;;  %v4976_v47 = vadd.f32 %v6367_v17, %v4914_v51 }
 0x9e7   : > { %v4979_v56 = vadd.f32 %v7168_v54, %v6367_v17  ;;  %v4917_v4 = vpop.f32.mrb[75].mxu0  ;;  %7211 = vmatprep.subr.bf16.mxu1 %v7619_v27 }
 0x9e8   : > { %v4977_v1 = vadd.f32 %v6367_v17, %v4917_v4 }
 0x9e9   : > { %v5005_v58 = vpack.c.bf16 %v4979_v56, %v4978_v53 }
 0x9ea   : > { %v5004_v7 = vpack.c.bf16 %v4977_v1, %v4976_v47  ;;  %7212 = vmatpush3.bf16.msra.mxu1 %v7619_v27 }
 0x9eb   : > { %7213 = vmatprep.subr.bf16.mxu1 %v7620_v60 }
 0x9ec   : > { %v7171_v33 = vpop.f32.mrb[76].mxu0  ;;  %7197 = vmatprep.mubr.bf16.mxu1 %v5004_v7 }
 0x9ed   : > { %v4930_v55 = vpop.f32.mrb[77].mxu0  ;;  %7198 = vmatmul.mubr.bf16.gmra.mrb[72].mxu1 %v5005_v58  ;;  %v4982_v8 = vadd.f32 %v7171_v33, %v6367_v17 }
 0x9ee   : > { %v7172_v59 = vpop.f32.mrb[78].mxu0  ;;  %7214 = vmatpush3.bf16.msra.mxu1 %v7620_v60  ;;  %v4980_v29 = vadd.f32 %v6367_v17, %v4930_v55  ;;  %v7625_v55 = vld [vmem:[%s9404_s23 + $0x8] sm:$0xff]  }
 0x9ef   : > { %v4983_v10 = vadd.f32 %v7172_v59, %v6367_v17  ;;  %v4933_v11 = vpop.f32.mrb[79].mxu0  ;;  %7215 = vmatprep.subr.bf16.mxu1 %v7621_v14 }
 0x9f0   : > { %v4981_v22 = vadd.f32 %v6367_v17, %v4933_v11  ;;  %v7640_v17 = vld [vmem:[%s9406_s25] sm:$0xff]  }
 0x9f1   : > { %v5007_v40 = vpack.c.bf16 %v4983_v10, %v4982_v8  ;;  %7301 = vmatprep.subr.bf16.mxu0 %v7640_v17 }
 0x9f2   : > { %v5006_v13 = vpack.c.bf16 %v4981_v22, %v4980_v29  ;;  %7216 = vmatpush3.bf16.msra.mxu1 %v7621_v14  ;;  %7302 = vmatpush3.bf16.msra.mxu0 %v7640_v17 }
 0x9f3   : > { %7217 = vmatprep.subr.bf16.mxu1 %v7622_v15  ;;  %7303 = vmatprep.subr.bf16.mxu0 %v7641_v18 }
 0x9f4   : > { %7201 = vmatprep.mubr.bf16.mxu1 %v5006_v13 }
 0x9f5   : > { %7202 = vmatmul.mubr.bf16.gmra.mrb[76].mxu1 %v5007_v40 }
 0x9f6   : > { %7218 = vmatpush3.bf16.msra.mxu1 %v7622_v15  ;;  %7304 = vmatpush3.bf16.msra.mxu0 %v7641_v18 }
 0x9f7   : > { %7219 = vmatprep.subr.bf16.mxu1 %v7623_v57  ;;  %7305 = vmatprep.subr.bf16.mxu0 %v7642_v34 }
 0x9fa   : > { %7220 = vmatpush3.bf16.msra.mxu1 %v7623_v57  ;;  %7306 = vmatpush3.bf16.msra.mxu0 %v7642_v34 }
 0x9fb   : > { %7237 = vmatprep.subr.bf16.mxu1 %v9094_v16  ;;  %7307 = vmatprep.subr.bf16.mxu0 %v7643_v19 }
 0x9fe   : > { %7308 = vmatpush3.bf16.msra.mxu0 %v7643_v19 }
 0x9ff   : > { %7309 = vmatprep.subr.bf16.mxu0 %v7644_v26 }
 0xa02   : > { %7310 = vmatpush3.bf16.msra.mxu0 %v7644_v26 }
 0xa03   : > { %7311 = vmatprep.subr.bf16.mxu0 %v7645_v3 }
 0xa06   : > { %7312 = vmatpush3.bf16.msra.mxu0 %v7645_v3 }
 0xab0   : > { %v7191_v31 = vpop.f32.mrb[64].mxu1 }
 0xab1   : > { %v5106_v62 = vadd.f32 %v7191_v31, %v9118_v28  ;;  %v5097_v38 = vpop.f32.mrb[65].mxu1 }
 0xab2   : > { %v5098_v46 = vadd.f32 %v9118_v28, %v5097_v38  ;;  %v7192_v35 = vpop.f32.mrb[66].mxu1 }
 0xab3   : > { %v5162_v36 = vadd.f32 %v5106_v62, %v8924_v44  ;;  %v5109_v9 = vadd.f32 %v7192_v35, %v9118_v28  ;;  %v5100_v49 = vpop.f32.mrb[67].mxu1 }
 0xab4   : > { %v5160_v39 = vadd.f32 %v5098_v46, %v8927_v25  ;;  %v5101_v41 = vadd.f32 %v9118_v28, %v5100_v49 }
 0xab5   : > { %vm5178_vm8 = vcmp.ge.f32.partialorder %v5162_v36, 0.0  ;;  %v5194_v42 = vmul.f32 0.2, %v5162_v36  ;;  %v5163_v24 = vadd.f32 %v5109_v9, %v8929_v48 }
 0xab6   : > { %vm5176_vm13 = vcmp.ge.f32.partialorder %v5160_v39, 0.0  ;;  %v5192_v20 = vmul.f32 0.2, %v5160_v39  ;;  %v5161_v23 = vadd.f32 %v5101_v41, %v8935_v52 }
 0xab7   : > { %v9128_v50 = vsel %vm5178_vm8, %v5162_v36, %v5194_v42  ;;  %vm5179_vm14 = vcmp.ge.f32.partialorder %v5163_v24, 0.0  ;;  %v5195_v27 = vmul.f32 0.2, %v5163_v24 }
 0xab8   : > { %5226 = vst [vmem:[#allocation2 + $0x20] sm:$0xff] %v9128_v50  ;;  %vm5177_vm15 = vcmp.ge.f32.partialorder %v5161_v23, 0.0  ;;  %v5193_v44 = vmul.f32 0.2, %v5161_v23  ;;  %v7195_v30 = vpop.f32.mrb[68].mxu1  ;;  %v9131_v25 = vsel %vm5176_vm13, %v5160_v39, %v5192_v20 }
 0xab9   : > { %v9133_v51 = vsel %vm5179_vm14, %v5163_v24, %v5195_v27  ;;  %v5122_v54 = vadd.f32 %v7195_v30, %v9118_v28  ;;  %v5113_v48 = vpop.f32.mrb[69].mxu1  ;;  %5224 = vst [vmem:[#allocation2 + $0x10] sm:$0xff] %v9131_v25 }
 0xaba   : > { %5227 = vst [vmem:[#allocation2 + $0x28] sm:$0xff] %v9133_v51  ;;  %v5114_v52 = vadd.f32 %v9118_v28, %v5113_v48  ;;  %v7196_v53 = vpop.f32.mrb[70].mxu1  ;;  %v9139_v56 = vsel %vm5177_vm15, %v5161_v23, %v5193_v44  ;;  %v5314_v58 = vpack.c.bf16 %v9133_v51, %v9128_v50 }
 0xabb   : > { %v5166_v4 = vadd.f32 %v5122_v54, %v8952_v61  ;;  %v5125_v60 = vadd.f32 %v7196_v53, %v9118_v28  ;;  %v5116_v47 = vpop.f32.mrb[71].mxu1  ;;  %v5313_v1 = vpack.c.bf16 %v9139_v56, %v9131_v25  ;;  %5225 = vst [vmem:[#allocation2 + $0x18] sm:$0xff] %v9139_v56 }
 0xabc   : > { %v5164_v7 = vadd.f32 %v5114_v52, %v8954_v12  ;;  %v5117_v33 = vadd.f32 %v9118_v28, %v5116_v47 }
 0xabd   : > { %vm5182_vm0 = vcmp.ge.f32.partialorder %v5166_v4, 0.0  ;;  %v5198_v61 = vmul.f32 0.2, %v5166_v4  ;;  %v5167_v59 = vadd.f32 %v5125_v60, %v8962_v0  ;;  %7221 = vmatprep.mubr.bf16.mxu1 %v5313_v1  ;;  %v7626_v0 = vld [vmem:[%s9404_s23 + $0x10] sm:$0xff]  }
 0xabe   : > { %vm5180_vm2 = vcmp.ge.f32.partialorder %v5164_v7, 0.0  ;;  %v5196_v8 = vmul.f32 0.2, %v5164_v7  ;;  %v5165_v10 = vadd.f32 %v5117_v33, %v8965_v45  ;;  %7222 = vmatmul.mubr.bf16.vlgmr.msra.gmra.mrb[80].mxu1 %v5314_v58 }
 0xabf   : > { %vm5183_vm1 = vcmp.ge.f32.partialorder %v5167_v59, 0.0  ;;  %v5199_v11 = vmul.f32 0.2, %v5167_v59  ;;  %7238 = vmatpush3.bf16.msra.mxu1 %v9094_v16  ;;  %v9156_v12 = vsel %vm5182_vm0, %v5166_v4, %v5198_v61 }
 0xac0   : > { %vm5181_vm3 = vcmp.ge.f32.partialorder %v5165_v10, 0.0  ;;  %v5197_v29 = vmul.f32 0.2, %v5165_v10  ;;  %v7199_v22 = vpop.f32.mrb[72].mxu1  ;;  %7239 = vmatprep.subr.bf16.mxu1 %v7625_v55  ;;  %v9158_v40 = vsel %vm5180_vm2, %v5164_v7, %v5196_v8  ;;  %5230 = vst [vmem:[#allocation2 + $0x40] sm:$0xff] %v9156_v12  ;;  %v5241_v61 = vld [vmem:[#allocation2 + $0xf] sm:$0xff] }
 0xac1   : > { %v5138_v45 = vadd.f32 %v7199_v22, %v9118_v28  ;;  %v5129_v13 = vpop.f32.mrb[73].mxu1  ;;  %5228 = vst [vmem:[#allocation2 + $0x30] sm:$0xff] %v9158_v40  ;;  %v9166_v14 = vsel %vm5183_vm1, %v5167_v59, %v5199_v11 }
 0xac2   : > { %v5130_v15 = vadd.f32 %v9118_v28, %v5129_v13  ;;  %v7200_v57 = vpop.f32.mrb[74].mxu1  ;;  %v9169_v16 = vsel %vm5181_vm3, %v5165_v10, %v5197_v29  ;;  %5231 = vst [vmem:[#allocation2 + $0x48] sm:$0xff] %v9166_v14  ;;  %v5316_v31 = vpack.c.bf16 %v9166_v14, %v9156_v12  ;;  %v7631_v10 = vld [vmem:[%s9404_s23 + $0x38] sm:$0xff]   ;;  %v7632_v29 = vld [vmem:[%s9404_s23 + $0x80] sm:$0xff]  }
 0xac3   : > { %v5170_v17 = vadd.f32 %v5138_v45, %v8982_v32  ;;  %v5141_v18 = vadd.f32 %v7200_v57, %v9118_v28  ;;  %7240 = vmatpush3.bf16.msra.mxu1 %v7625_v55  ;;  %v5132_v34 = vpop.f32.mrb[75].mxu1  ;;  %v5315_v19 = vpack.c.bf16 %v9169_v16, %v9158_v40  ;;  %5229 = vst [vmem:[#allocation2 + $0x38] sm:$0xff] %v9169_v16  ;;  %v7627_v32 = vld [vmem:[%s9404_s23 + $0x18] sm:$0xff]   ;;  %v5240_v55 = vld [vmem:[#allocation2 + $0x7] sm:$0xff] }
 0xac4   : > { %v5168_v26 = vadd.f32 %v5130_v15, %v8984_v37  ;;  %v5133_v3 = vadd.f32 %v9118_v28, %v5132_v34  ;;  %7241 = vmatprep.subr.bf16.mxu1 %v7626_v0  ;;  %v5288_v11 = vpack.c.bf16 %v5241_v61, %v5240_v55  ;;  %v5242_v22 = vld [vmem:[#allocation2 + $0x17] sm:$0xff]  ;;  %v5244_v15 = vld [vmem:[#allocation2 + $0x27] sm:$0xff] }
 0xac5   : > { %vm5186_vm4 = vcmp.ge.f32.partialorder %v5170_v17, 0.0  ;;  %v5202_v62 = vmul.f32 0.2, %v5170_v17  ;;  %v5171_v38 = vadd.f32 %v5141_v18, %v8992_v63  ;;  %7225 = vmatprep.mubr.bf16.mxu1 %v5315_v19  ;;  %v7628_v63 = vld [vmem:[%s9404_s23 + $0x20] sm:$0xff]   ;;  %v7633_v57 = vld [vmem:[%s9404_s23 + $0x88] sm:$0xff]   ;;  %v7634_v18 = vld [vmem:[%s9404_s23 + $0x90] sm:$0xff]  }
 0xac6   : > { %vm5184_vm5 = vcmp.ge.f32.partialorder %v5168_v26, 0.0  ;;  %v5200_v46 = vmul.f32 0.2, %v5168_v26  ;;  %v5169_v35 = vadd.f32 %v5133_v3, %v8995_v43  ;;  %7226 = vmatmul.mubr.bf16.gmra.mrb[84].mxu1 %v5316_v31 }
 0xac7   : > { %vm5187_vm6 = vcmp.ge.f32.partialorder %v5171_v38, 0.0  ;;  %v5203_v37 = vmul.f32 0.2, %v5171_v38  ;;  %7242 = vmatpush3.bf16.msra.mxu1 %v7626_v0  ;;  %v9186_v36 = vsel %vm5186_vm4, %v5170_v17, %v5202_v62  ;;  %v5243_v0 = vld [vmem:[#allocation2 + $0x1f] sm:$0xff] }
 0xac8   : > { %vm5185_vm7 = vcmp.ge.f32.partialorder %v5169_v35, 0.0  ;;  %v5201_v9 = vmul.f32 0.2, %v5169_v35  ;;  %v7203_v49 = vpop.f32.mrb[76].mxu1  ;;  %7243 = vmatprep.subr.bf16.mxu1 %v7627_v32  ;;  %v9188_v39 = vsel %vm5184_vm5, %v5168_v26, %v5200_v46  ;;  %5234 = vst [vmem:[#allocation2 + $0x80] sm:$0xff] %v9186_v36  ;;  %v5245_v45 = vld [vmem:[#allocation2 + $0x2f] sm:$0xff]  ;;  %v5289_v13 = vpack.c.bf16 %v5243_v0, %v5242_v22 }
 0xac9   : > { %v5154_v43 = vadd.f32 %v7203_v49, %v9118_v28  ;;  %v5145_v41 = vpop.f32.mrb[77].mxu1  ;;  %5232 = vst [vmem:[#allocation2 + $0x70] sm:$0xff] %v9188_v39  ;;  %v9196_v42 = vsel %vm5187_vm6, %v5171_v38, %v5203_v37  ;;  %v5290_v17 = vpack.c.bf16 %v5245_v45, %v5244_v15  ;;  %v5248_v26 = vld [vmem:[#allocation2 + $0x67] sm:$0xff]  ;;  %v5271_v45 = vld [vmem:[#allocation2 + $0xb1] sm:$0xff] }
 0xaca   : > { %v5146_v24 = vadd.f32 %v9118_v28, %v5145_v41  ;;  %v7204_v20 = vpop.f32.mrb[78].mxu1  ;;  %v9199_v23 = vsel %vm5185_vm7, %v5169_v35, %v5201_v9  ;;  %5235 = vst [vmem:[#allocation2 + $0x88] sm:$0xff] %v9196_v42  ;;  %v5318_v53 = vpack.c.bf16 %v9196_v42, %v9186_v36  ;;  %v5246_v34 = vld [vmem:[#allocation2 + $0x37] sm:$0xff]  ;;  %v5247_v19 = vld [vmem:[#allocation2 + $0x3f] sm:$0xff] }
 0xacb   : > { %v5174_v27 = vadd.f32 %v5154_v43, %v9012_v21  ;;  %v5157_v44 = vadd.f32 %v7204_v20, %v9118_v28  ;;  %7244 = vmatpush3.bf16.msra.mxu1 %v7627_v32  ;;  %v5148_v30 = vpop.f32.mrb[79].mxu1  ;;  %v5317_v54 = vpack.c.bf16 %v9199_v23, %v9188_v39  ;;  %5233 = vst [vmem:[#allocation2 + $0x78] sm:$0xff] %v9199_v23  ;;  %v7629_v21 = vld [vmem:[%s9404_s23 + $0x28] sm:$0xff]   ;;  %v7635_v32 = vld [vmem:[%s9404_s23 + $0x98] sm:$0xff]   ;;  %v7636_v38 = vld [vmem:[%s9404_s23 + $0xa0] sm:$0xff]  }
 0xacc   : > { %v5172_v48 = vadd.f32 %v5146_v24, %v9014_v5  ;;  %v5149_v52 = vadd.f32 %v9118_v28, %v5148_v30  ;;  %7245 = vmatprep.subr.bf16.mxu1 %v7628_v63  ;;  %v5291_v31 = vpack.c.bf16 %v5247_v19, %v5246_v34  ;;  %v7638_v41 = vld [vmem:[%s9404_s23 + $0xb0] sm:$0xff]  }
 0xacd   : > { %vm5190_vm9 = vcmp.ge.f32.partialorder %v5174_v27, 0.0  ;;  %v5206_v4 = vmul.f32 0.2, %v5174_v27  ;;  %v5175_v60 = vadd.f32 %v5157_v44, %v9021_v2  ;;  %7229 = vmatprep.mubr.bf16.mxu1 %v5317_v54  ;;  %v7630_v2 = vld [vmem:[%s9404_s23 + $0x30] sm:$0xff]   ;;  %v5257_v44 = vld [vmem:[#allocation2 + $0x21] sm:$0xff]  ;;  %v7639_v54 = vld [vmem:[%s9404_s23 + $0xb8] sm:$0xff]  }
 0xace   : > { %vm5188_vm11 = vcmp.ge.f32.partialorder %v5172_v48, 0.0  ;;  %v5204_v47 = vmul.f32 0.2, %v5172_v48  ;;  %v5173_v1 = vadd.f32 %v5149_v52, %v9023_v6  ;;  %7230 = vmatmul.mubr.bf16.gmra.mrb[88].mxu1 %v5318_v53  ;;  %v5259_v52 = vld [vmem:[#allocation2 + $0x31] sm:$0xff]  ;;  %v5260_v53 = vld [vmem:[#allocation2 + $0x39] sm:$0xff] }
 0xacf   : > { %vm5191_vm10 = vcmp.ge.f32.partialorder %v5175_v60, 0.0  ;;  %v5207_v5 = vmul.f32 0.2, %v5175_v60  ;;  %7246 = vmatpush3.bf16.msra.mxu1 %v7628_v63  ;;  %v9216_v28 = vsel %vm5190_vm9, %v5174_v27, %v5206_v4  ;;  %v7637_v63 = vld [vmem:[%s9404_s23 + $0xa8] sm:$0xff]   ;;  %v5256_v27 = vld [vmem:[#allocation2 + $0x19] sm:$0xff]  ;;  %v7646_v15 = vld [vmem:[%s9406_s25 + $0x30] sm:$0xff]  }
 0xad0   : > { %vm5189_vm12 = vcmp.ge.f32.partialorder %v5173_v1, 0.0  ;;  %v5205_v58 = vmul.f32 0.2, %v5173_v1  ;;  %7247 = vmatprep.subr.bf16.mxu1 %v7629_v21  ;;  %v9218_v7 = vsel %vm5188_vm11, %v5172_v48, %v5204_v47  ;;  %5238 = vst [vmem:[#allocation2 + $0xa0] sm:$0xff] %v9216_v28  ;;  %v5249_v3 = vld [vmem:[#allocation2 + $0x6f] sm:$0xff]  ;;  %v5628_v48 = vpack.c.bf16 %v5257_v44, %v5256_v27  ;;  %7313 = vmatprep.subr.bf16.mxu0 %v7646_v15 }
 0xad1   : > { %5236 = vst [vmem:[#allocation2 + $0x90] sm:$0xff] %v9218_v7  ;;  %v9225_v6 = vsel %vm5191_vm10, %v5175_v60, %v5207_v5  ;;  %v5292_v62 = vpack.c.bf16 %v5249_v3, %v5248_v26  ;;  %v5252_v49 = vld [vmem:[#allocation2 + $0x87] sm:$0xff]  ;;  %v5263_v5 = vld [vmem:[#allocation2 + $0x51] sm:$0xff]  ;;  %7314 = vmatpush3.bf16.msra.mxu0 %v7646_v15 }
 0xad2   : > { %v9227_v33 = vsel %vm5189_vm12, %v5173_v1, %v5205_v58  ;;  %5239 = vst [vmem:[#allocation2 + $0xa8] sm:$0xff] %v9225_v6  ;;  %v5320_v8 = vpack.c.bf16 %v9225_v6, %v9216_v28  ;;  %v5250_v46 = vld [vmem:[#allocation2 + $0x77] sm:$0xff]  ;;  %v5251_v35 = vld [vmem:[#allocation2 + $0x7f] sm:$0xff]  ;;  %v5258_v4 = vld [vmem:[#allocation2 + $0x29] sm:$0xff] }
 0xad3   : > { %7248 = vmatpush3.bf16.msra.mxu1 %v7629_v21  ;;  %v5319_v59 = vpack.c.bf16 %v9227_v33, %v9218_v7  ;;  %5237 = vst [vmem:[#allocation2 + $0x98] sm:$0xff] %v9227_v33  ;;  %v5293_v9 = vpack.c.bf16 %v5251_v35, %v5250_v46  ;;  %v5261_v21 = vld [vmem:[#allocation2 + $0x41] sm:$0xff]  ;;  %v5629_v60 = vpack.c.bf16 %v5259_v52, %v5258_v4  ;;  %v5262_v1 = vld [vmem:[#allocation2 + $0x49] sm:$0xff]  ;;  %v5264_v58 = vld [vmem:[#allocation2 + $0x79] sm:$0xff] }
 0xad4   : > { %7249 = vmatprep.subr.bf16.mxu1 %v7630_v2  ;;  %v5630_v47 = vpack.c.bf16 %v5261_v21, %v5260_v53  ;;  %v5631_v55 = vpack.c.bf16 %v5263_v5, %v5262_v1 }
 0xad5   : > { %7233 = vmatprep.mubr.bf16.mxu1 %v5319_v59 }
 0xad6   : > { %7234 = vmatmul.mubr.bf16.gmra.mrb[92].mxu1 %v5320_v8 }
 0xad7   : > { %7250 = vmatpush3.bf16.msra.mxu1 %v7630_v2  ;;  %7253 = vmatprep.mubr.bf16.mxu1 %v5288_v11  ;;  %v5265_v2 = vld [vmem:[#allocation2 + $0x81] sm:$0xff] }
 0xad8   : > { %7251 = vmatprep.subr.bf16.mxu1 %v7631_v10  ;;  %v5253_v37 = vld [vmem:[#allocation2 + $0x8f] sm:$0xff]  ;;  %v5632_v61 = vpack.c.bf16 %v5265_v2, %v5264_v58 }
 0xad9   : > { %v5294_v43 = vpack.c.bf16 %v5253_v37, %v5252_v49  ;;  %v5266_v11 = vld [vmem:[#allocation2 + $0x89] sm:$0xff] }
 0xada   : > { %v5254_v24 = vld [vmem:[#allocation2 + $0x97] sm:$0xff]  ;;  %v5255_v20 = vld [vmem:[#allocation2 + $0x9f] sm:$0xff]  ;;  %v5270_v0 = vld [vmem:[#allocation2 + $0xa9] sm:$0xff] }
 0xadb   : > { %7252 = vmatpush3.bf16.msra.mxu1 %v7631_v10  ;;  %v5295_v30 = vpack.c.bf16 %v5255_v20, %v5254_v24  ;;  %v5267_v59 = vld [vmem:[#allocation2 + $0x91] sm:$0xff]  ;;  %v5268_v8 = vld [vmem:[#allocation2 + $0x99] sm:$0xff]  ;;  %v5269_v10 = vld [vmem:[#allocation2 + $0xa1] sm:$0xff] }
 0xadc   : > { %7269 = vmatprep.subr.bf16.mxu1 %v7632_v29  ;;  %v5634_v22 = vpack.c.bf16 %v5269_v10, %v5268_v8 }
 0xade   : > { %7254 = vmatmul.mubr.bf16.vlgmr.msra.gmra.mrb[80].mxu1 %v5289_v13  ;;  %v5635_v13 = vpack.c.bf16 %v5271_v45, %v5270_v0 }
 0xadf   : > { %7270 = vmatpush3.bf16.msra.mxu1 %v7632_v29  ;;  %7257 = vmatprep.mubr.bf16.mxu1 %v5290_v17  ;;  %v5633_v29 = vpack.c.bf16 %v5267_v59, %v5266_v11 }
 0xae0   : > { %7271 = vmatprep.subr.bf16.mxu1 %v7633_v57 }
 0xae3   : > { %7272 = vmatpush3.bf16.msra.mxu1 %v7633_v57  ;;  %v7647_v57 = vld [vmem:[%s9406_s25 + $0x38] sm:$0xff]  }
 0xae4   : > { %7273 = vmatprep.subr.bf16.mxu1 %v7634_v18  ;;  %7315 = vmatprep.subr.bf16.mxu0 %v7647_v57 }
 0xae5   : > { %7316 = vmatpush3.bf16.msra.mxu0 %v7647_v57 }
 0xae6   : > { %7258 = vmatmul.mubr.bf16.gmra.mrb[84].mxu1 %v5291_v31 }
 0xae7   : > { %7274 = vmatpush3.bf16.msra.mxu1 %v7634_v18  ;;  %7261 = vmatprep.mubr.bf16.mxu1 %v5292_v62  ;;  %v6433_v18 = vld [vmem:[%s9405_s24] ss:$0 sm:$0xff] }
 0xae8   : > { %7275 = vmatprep.subr.bf16.mxu1 %v7635_v32 }
 0xaeb   : > { %7276 = vmatpush3.bf16.msra.mxu1 %v7635_v32 }
 0xaec   : > { %7277 = vmatprep.subr.bf16.mxu1 %v7636_v38 }
 0xaee   : > { %7262 = vmatmul.mubr.bf16.gmra.mrb[88].mxu1 %v5293_v9 }
 0xaef   : > { %7278 = vmatpush3.bf16.msra.mxu1 %v7636_v38  ;;  %7265 = vmatprep.mubr.bf16.mxu1 %v5294_v43 }
 0xaf0   : > { %7279 = vmatprep.subr.bf16.mxu1 %v7637_v63 }
 0xaf3   : > { %7280 = vmatpush3.bf16.msra.mxu1 %v7637_v63 }
 0xaf4   : > { %7281 = vmatprep.subr.bf16.mxu1 %v7638_v41 }
 0xaf6   : > { %7266 = vmatmul.mubr.bf16.gmra.mrb[92].mxu1 %v5295_v30 }
 0xaf7   : > { %7282 = vmatpush3.bf16.msra.mxu1 %v7638_v41  ;;  %7285 = vmatprep.mubr.bf16.mxu1 %v5628_v48 }
 0xaf8   : > { %7283 = vmatprep.subr.bf16.mxu1 %v7639_v54 }
 0xafb   : > { %7284 = vmatpush3.bf16.msra.mxu1 %v7639_v54 }
 0xafe   : > { %7286 = vmatmul.mubr.bf16.vlgmr.msra.gmra.mrb[80].mxu1 %v5629_v60 }
 0xaff   : > { %7289 = vmatprep.mubr.bf16.mxu1 %v5630_v47 }
 0xb06   : > { %7290 = vmatmul.mubr.bf16.gmra.mrb[84].mxu1 %v5631_v55 }
 0xb07   : > { %7293 = vmatprep.mubr.bf16.mxu1 %v5632_v61 }
 0xb0e   : > { %7294 = vmatmul.mubr.bf16.gmra.mrb[88].mxu1 %v5633_v29  ;;  %v9274_v29 = vld [vmem:[%s9407_s26] ss:$0 sm:$0xff] }
 0xb0f   : > { %7297 = vmatprep.mubr.bf16.mxu1 %v5634_v22 }
 0xb16   : > { %7298 = vmatmul.mubr.bf16.gmra.mrb[92].mxu1 %v5635_v13 }
 0xbd1   : > { %v7287_v17 = vpop.f32.mrb[80].mxu1 }
 0xbd2   : > { %v5718_v34 = vpop.f32.mrb[81].mxu1  ;;  %v5806_v26 = vadd.f32 %v7287_v17, %v6433_v18 }
 0xbd3   : > { %v7288_v19 = vpop.f32.mrb[82].mxu1  ;;  %v5804_v32 = vadd.f32 %v6433_v18, %v5718_v34 }
 0xbd4   : > { %v5807_v3 = vadd.f32 %v7288_v19, %v6433_v18  ;;  %v5721_v31 = vpop.f32.mrb[83].mxu1 }
 0xbd5   : > { %v5805_v62 = vadd.f32 %v6433_v18, %v5721_v31 }
 0xbd6   : > { %v5837_v38 = vpack.c.bf16 %v5807_v3, %v5806_v26 }
 0xbd7   : > { %v5836_v46 = vpack.c.bf16 %v5805_v62, %v5804_v32 }
 0xbd9   : > { %v7291_v35 = vpop.f32.mrb[84].mxu1  ;;  %7317 = vmatprep.mubr.bf16.mxu0 %v5836_v46 }
 0xbda   : > { %v5734_v37 = vpop.f32.mrb[85].mxu1  ;;  %7318 = vmatmul.mubr.bf16.vlgmr.msra.gmra.mrb[80].mxu0 %v5837_v38  ;;  %v5810_v49 = vadd.f32 %v7291_v35, %v6433_v18 }
 0xbdb   : > { %v7292_v9 = vpop.f32.mrb[86].mxu1  ;;  %v5808_v41 = vadd.f32 %v6433_v18, %v5734_v37 }
 0xbdc   : > { %v5811_v63 = vadd.f32 %v7292_v9, %v6433_v18  ;;  %v5737_v43 = vpop.f32.mrb[87].mxu1 }
 0xbdd   : > { %v5809_v24 = vadd.f32 %v6433_v18, %v5737_v43 }
 0xbde   : > { %v5839_v20 = vpack.c.bf16 %v5811_v63, %v5810_v49 }
 0xbdf   : > { %v5838_v27 = vpack.c.bf16 %v5809_v24, %v5808_v41 }
 0xbe1   : > { %v7295_v44 = vpop.f32.mrb[88].mxu1  ;;  %7321 = vmatprep.mubr.bf16.mxu0 %v5838_v27 }
 0xbe2   : > { %v5750_v30 = vpop.f32.mrb[89].mxu1  ;;  %7322 = vmatmul.mubr.bf16.gmra.mrb[84].mxu0 %v5839_v20  ;;  %v5814_v48 = vadd.f32 %v7295_v44, %v6433_v18 }
 0xbe3   : > { %v7296_v54 = vpop.f32.mrb[90].mxu1  ;;  %v5812_v21 = vadd.f32 %v6433_v18, %v5750_v30 }
 0xbe4   : > { %v5815_v52 = vadd.f32 %v7296_v54, %v6433_v18  ;;  %v5753_v53 = vpop.f32.mrb[91].mxu1 }
 0xbe5   : > { %v5813_v4 = vadd.f32 %v6433_v18, %v5753_v53 }
 0xbe6   : > { %v5841_v60 = vpack.c.bf16 %v5815_v52, %v5814_v48 }
 0xbe7   : > { %v5840_v47 = vpack.c.bf16 %v5813_v4, %v5812_v21 }
 0xbe9   : > { %v7299_v1 = vpop.f32.mrb[92].mxu1  ;;  %7325 = vmatprep.mubr.bf16.mxu0 %v5840_v47 }
 0xbea   : > { %v5766_v5 = vpop.f32.mrb[93].mxu1  ;;  %7326 = vmatmul.mubr.bf16.gmra.mrb[88].mxu0 %v5841_v60  ;;  %v5818_v2 = vadd.f32 %v7299_v1, %v6433_v18 }
 0xbeb   : > { %v7300_v58 = vpop.f32.mrb[94].mxu1  ;;  %v5816_v59 = vadd.f32 %v6433_v18, %v5766_v5 }
 0xbec   : > { %v5819_v55 = vadd.f32 %v7300_v58, %v6433_v18  ;;  %v5769_v61 = vpop.f32.mrb[95].mxu1 }
 0xbed   : > { %v5817_v8 = vadd.f32 %v6433_v18, %v5769_v61 }
 0xbee   : > { %v5843_v10 = vpack.c.bf16 %v5819_v55, %v5818_v2 }
 0xbef   : > { %v5842_v11 = vpack.c.bf16 %v5817_v8, %v5816_v59 }
 0xbf1   : > { %7329 = vmatprep.mubr.bf16.mxu0 %v5842_v11 }
 0xbf2   : > { %7330 = vmatmul.mubr.bf16.gmra.mrb[92].mxu0 %v5843_v10 }
 0xcad   : > { %v7319_v22 = vpop.f32.mrb[80].mxu0 }
 0xcae   : > { %v5942_v0 = vadd.f32 %v7319_v22, %v9274_v29  ;;  %v5933_v45 = vpop.f32.mrb[81].mxu0 }
 0xcaf   : > { %v5934_v13 = vadd.f32 %v9274_v29, %v5933_v45  ;;  %v7320_v15 = vpop.f32.mrb[82].mxu0 }
 0xcb0   : > { %v5998_v57 = vadd.f32 %v5942_v0, %v9128_v50  ;;  %v5945_v17 = vadd.f32 %v7320_v15, %v9274_v29  ;;  %v5936_v18 = vpop.f32.mrb[83].mxu0 }
 0xcb1   : > { %v5996_v34 = vadd.f32 %v5934_v13, %v9131_v25  ;;  %v5937_v19 = vadd.f32 %v9274_v29, %v5936_v18 }
 0xcb2   : > { %vm6014_vm8 = vcmp.ge.f32.partialorder %v5998_v57, 0.0  ;;  %v6030_v26 = vmul.f32 0.2, %v5998_v57  ;;  %v5999_v3 = vadd.f32 %v5945_v17, %v9133_v51 }
 0xcb3   : > { %vm6012_vm13 = vcmp.ge.f32.partialorder %v5996_v34, 0.0  ;;  %v6028_v31 = vmul.f32 0.2, %v5996_v34  ;;  %v5997_v32 = vadd.f32 %v5937_v19, %v9139_v56 }
 0xcb4   : > { %v6046_v62 = vsel %vm6014_vm8, %v5998_v57, %v6030_v26  ;;  %vm6015_vm14 = vcmp.ge.f32.partialorder %v5999_v3, 0.0  ;;  %v6031_v38 = vmul.f32 0.2, %v5999_v3 }
 0xcb5   : > { %6062 = vst [vmem:[%s9287_s11 + $0x10] sm:$0xff] %v6046_v62  ;;  %v6044_v50 = vsel %vm6012_vm13, %v5996_v34, %v6028_v31  ;;  %vm6013_vm15 = vcmp.ge.f32.partialorder %v5997_v32, 0.0  ;;  %v6029_v25 = vmul.f32 0.2, %v5997_v32  ;;  %v7323_v46 = vpop.f32.mrb[84].mxu0 }
 0xcb6   : > { %6060 = vst [vmem:[%s9287_s11] sm:$0xff] %v6044_v50  ;;  %v6047_v51 = vsel %vm6015_vm14, %v5999_v3, %v6031_v38  ;;  %v5958_v35 = vadd.f32 %v7323_v46, %v9274_v29  ;;  %v5949_v37 = vpop.f32.mrb[85].mxu0 }
 0xcb7   : > { %6063 = vst [vmem:[%s9287_s11 + $0x18] sm:$0xff] %v6047_v51  ;;  %v6045_v56 = vsel %vm6013_vm15, %v5997_v32, %v6029_v25  ;;  %v5950_v9 = vadd.f32 %v9274_v29, %v5949_v37  ;;  %v7324_v49 = vpop.f32.mrb[86].mxu0 }
 0xcb8   : > { %6061 = vst [vmem:[%s9287_s11 + $0x8] sm:$0xff] %v6045_v56  ;;  %v6002_v63 = vadd.f32 %v5958_v35, %v9156_v12  ;;  %v5961_v43 = vadd.f32 %v7324_v49, %v9274_v29  ;;  %v5952_v41 = vpop.f32.mrb[87].mxu0 }
 0xcb9   : > { %v6000_v24 = vadd.f32 %v5950_v9, %v9158_v40  ;;  %v5953_v20 = vadd.f32 %v9274_v29, %v5952_v41 }
 0xcba   : > { %vm6018_vm0 = vcmp.ge.f32.partialorder %v6002_v63, 0.0  ;;  %v6034_v27 = vmul.f32 0.2, %v6002_v63  ;;  %v6003_v44 = vadd.f32 %v5961_v43, %v9166_v14 }
 0xcbb   : > { %vm6016_vm2 = vcmp.ge.f32.partialorder %v6000_v24, 0.0  ;;  %v6032_v30 = vmul.f32 0.2, %v6000_v24  ;;  %v6001_v54 = vadd.f32 %v5953_v20, %v9169_v16 }
 0xcbc   : > { %v6050_v48 = vsel %vm6018_vm0, %v6002_v63, %v6034_v27  ;;  %vm6019_vm1 = vcmp.ge.f32.partialorder %v6003_v44, 0.0  ;;  %v6035_v12 = vmul.f32 0.2, %v6003_v44 }
 0xcbd   : > { %6066 = vst [vmem:[%s9287_s11 + $0x30] sm:$0xff] %v6050_v48  ;;  %v6048_v52 = vsel %vm6016_vm2, %v6000_v24, %v6032_v30  ;;  %vm6017_vm3 = vcmp.ge.f32.partialorder %v6001_v54, 0.0  ;;  %v6033_v40 = vmul.f32 0.2, %v6001_v54  ;;  %v7327_v53 = vpop.f32.mrb[88].mxu0 }
 0xcbe   : > { %6064 = vst [vmem:[%s9287_s11 + $0x20] sm:$0xff] %v6048_v52  ;;  %v6051_v21 = vsel %vm6019_vm1, %v6003_v44, %v6035_v12  ;;  %v5974_v4 = vadd.f32 %v7327_v53, %v9274_v29  ;;  %v5965_v60 = vpop.f32.mrb[89].mxu0 }
 0xcbf   : > { %6067 = vst [vmem:[%s9287_s11 + $0x38] sm:$0xff] %v6051_v21  ;;  %v6049_v14 = vsel %vm6017_vm3, %v6001_v54, %v6033_v40  ;;  %v5966_v47 = vadd.f32 %v9274_v29, %v5965_v60  ;;  %v7328_v1 = vpop.f32.mrb[90].mxu0 }
 0xcc0   : > { %6065 = vst [vmem:[%s9287_s11 + $0x28] sm:$0xff] %v6049_v14  ;;  %v6006_v16 = vadd.f32 %v5974_v4, %v9186_v36  ;;  %v5977_v5 = vadd.f32 %v7328_v1, %v9274_v29  ;;  %v5968_v58 = vpop.f32.mrb[91].mxu0 }
 0xcc1   : > { %v6004_v2 = vadd.f32 %v5966_v47, %v9188_v39  ;;  %v5969_v55 = vadd.f32 %v9274_v29, %v5968_v58 }
 0xcc2   : > { %vm6022_vm4 = vcmp.ge.f32.partialorder %v6006_v16, 0.0  ;;  %v6038_v61 = vmul.f32 0.2, %v6006_v16  ;;  %v6007_v59 = vadd.f32 %v5977_v5, %v9196_v42 }
 0xcc3   : > { %vm6020_vm5 = vcmp.ge.f32.partialorder %v6004_v2, 0.0  ;;  %v6036_v8 = vmul.f32 0.2, %v6004_v2  ;;  %v6005_v10 = vadd.f32 %v5969_v55, %v9199_v23 }
 0xcc4   : > { %v6054_v11 = vsel %vm6022_vm4, %v6006_v16, %v6038_v61  ;;  %vm6023_vm6 = vcmp.ge.f32.partialorder %v6007_v59, 0.0  ;;  %v6039_v36 = vmul.f32 0.2, %v6007_v59 }
 0xcc5   : > { %6070 = vst [vmem:[%s9287_s11 + $0x50] sm:$0xff] %v6054_v11  ;;  %v6052_v22 = vsel %vm6020_vm5, %v6004_v2, %v6036_v8  ;;  %vm6021_vm7 = vcmp.ge.f32.partialorder %v6005_v10, 0.0  ;;  %v6037_v39 = vmul.f32 0.2, %v6005_v10  ;;  %v7331_v0 = vpop.f32.mrb[92].mxu0 }
 0xcc6   : > { %6068 = vst [vmem:[%s9287_s11 + $0x40] sm:$0xff] %v6052_v22  ;;  %v6055_v45 = vsel %vm6023_vm6, %v6007_v59, %v6039_v36  ;;  %v5990_v13 = vadd.f32 %v7331_v0, %v9274_v29  ;;  %v5981_v42 = vpop.f32.mrb[93].mxu0 }
 0xcc7   : > { %6071 = vst [vmem:[%s9287_s11 + $0x58] sm:$0xff] %v6055_v45  ;;  %v6053_v15 = vsel %vm6021_vm7, %v6005_v10, %v6037_v39  ;;  %v5982_v23 = vadd.f32 %v9274_v29, %v5981_v42  ;;  %v7332_v57 = vpop.f32.mrb[94].mxu0 }
 0xcc8   : > { %6069 = vst [vmem:[%s9287_s11 + $0x48] sm:$0xff] %v6053_v15  ;;  %v6010_v17 = vadd.f32 %v5990_v13, %v9216_v28  ;;  %v5993_v18 = vadd.f32 %v7332_v57, %v9274_v29  ;;  %v5984_v34 = vpop.f32.mrb[95].mxu0 }
 0xcc9   : > { %v6008_v19 = vadd.f32 %v5982_v23, %v9218_v7  ;;  %v5985_v26 = vadd.f32 %v9274_v29, %v5984_v34 }
 0xcca   : > { %vm6026_vm9 = vcmp.ge.f32.partialorder %v6010_v17, 0.0  ;;  %v6042_v3 = vmul.f32 0.2, %v6010_v17  ;;  %v6011_v31 = vadd.f32 %v5993_v18, %v9225_v6 }
 0xccb   : > { %vm6024_vm11 = vcmp.ge.f32.partialorder %v6008_v19, 0.0  ;;  %v6040_v32 = vmul.f32 0.2, %v6008_v19  ;;  %v6009_v28 = vadd.f32 %v5985_v26, %v9227_v33 }
 0xccc   : > { %v6058_v62 = vsel %vm6026_vm9, %v6010_v17, %v6042_v3  ;;  %vm6027_vm10 = vcmp.ge.f32.partialorder %v6011_v31, 0.0  ;;  %v6043_v7 = vmul.f32 0.2, %v6011_v31 }
 0xccd   : > { %6074 = vst [vmem:[%s9287_s11 + $0x70] sm:$0xff] %v6058_v62  ;;  %v6056_v29 = vsel %vm6024_vm11, %v6008_v19, %v6040_v32  ;;  %vm6025_vm12 = vcmp.ge.f32.partialorder %v6009_v28, 0.0  ;;  %v6041_v38 = vmul.f32 0.2, %v6009_v28 }
 0xcce   : > { %6072 = vst [vmem:[%s9287_s11 + $0x60] sm:$0xff] %v6056_v29  ;;  %v6059_v6 = vsel %vm6027_vm10, %v6011_v31, %v6043_v7 }
 0xccf   : > { %6075 = vst [vmem:[%s9287_s11 + $0x78] sm:$0xff] %v6059_v6  ;;  %v6057_v33 = vsel %vm6025_vm12, %v6009_v28, %v6041_v38 }
 0xcd0   : > { %6073 = vst [vmem:[%s9287_s11 + $0x68] sm:$0xff] %v6057_v33 }
 0xcd1   : > { %7661 = shalt.err (!%p7658_p3)
}
 0xcd2   : > { %s7662_s5 = scalar_lea.hbm %s9331_s9, 2048  ;;  %s7666_s7 = scalar_lea.hbm %s9473_s27, 4096 }
 0xcd3   : > { %p7663_p4 = scmp.ne.s32.totalorder %s9331_s9, %s7662_s5  ;;  %p7667_p9 = scmp.lt.u32.totalorder %s9331_s9, %s9473_s27 }
 0xcd4   : > { %p7668_p10 = scmp.lt.u32.totalorder %s7666_s7, %s7662_s5  ;;  %p7670_p12 = scmp.lt.u32.totalorder %s7662_s5, %s9331_s9 }
 0xcd5   : > { %p7664_p7 = pnand %p7663_p4, %p7901_p5 }
 0xcd6   : > { %p7669_p11 = por %p7668_p10, %p7667_p9 }
 0xcd7   : > { %p7665_p8 = pneg %p7664_p7 }
 0xcd8   : > { %p7671_p13 = por %p7670_p12, %p7669_p11 }
 0xcda   : > { %p7672_p0 = pnand %p7671_p13, %p7665_p8 }
 0xcdc   : > { %7675 = shalt.err (!%p7672_p0)
}
 0xcdd   : > { %s7721_s30 = smov 128   ;;  %s7722_s2 = smov 8  }
 0xcde   : > { %7445 = dma.vmem_to_hbm [thread:$0]  (%p7901_p5), %s9333_s8, 2048, %s9331_s9, %s9340_s10, %s7721_s30, %s7721_s30, %s7722_s2  }
 0xcdf PF: > { %s9474_s11 = sld [smem:[#allocation9_spill]]  ;;  %s9475_s28 = sld [smem:[#allocation7_spill]] }
 0xce5   : > { %p7451_p1 = scmp.ge.s32.totalorder %s9474_s11, 2  ;;  %s6106_s0 = sand.u32 1, %s9475_s28  }
 0xce6   : > { %s6107_s5 = scalar_lea.sflag [#allocation5], %s6106_s0 }
 0xce7   : > { %p7448_p2 = pnand %p7451_p1, %p7905_p6 }
 0xce9   : > { %7693 = dma.done.wait (!%p7448_p2), %s6107_s5, 2048  }
 0xcea   : > { %7695 = vsyncadd (!%p7448_p2), %s6107_s5, 4294965248  ;;  %s9477_s30 = sld [smem:[#allocation10_spill]]  ;;  %s9478_s6 = sld [smem:[#allocation8_spill]] }
 0xceb   : > { %s9479_s8 = sld [smem:[#allocation11_spill]]  ;;  %s9480_s7 = smov %s7702_s4 }
 0xcf0   : > { %p37_p3 = scmp.ge.s32.totalorder %s9477_s30, 4   ;;  %s9481_s4 = smov %s9478_s6 }
 0xcf2   :  { %39 = sbr.rel (!%p37_p3) target bundleno = 17 (0x11), region = 172 }
 0xcf9   :  { %6112 = vsyncpa [#allocation5], 1 }
 0xcfa   :  { %6114 = vsyncpa [#allocation5 + $0x1], 1 }

</bundles_post_ra>
